<compile_context>
chip_gen: v7x
topology: tpu7x:2x2x1
jax: 0.10.0
libtpu: 0.0.40
codegen_flags: <defaults>
</compile_context>

<pallas_src>
import numpy as np
import jax
import jax.numpy as jnp
from jax.experimental import pallas as pl
from jax.experimental.pallas import tpu as pltpu

# Hyperparameters implied by the module (kept small).
VOCAB_SIZE = 32
EMBEDDING_DIM = 16
HIDDEN_SIZE = 32
TARGET_SIZE = 8
WORD_PAD_ID = 0


def _full_spec(shape):
    n = len(shape)
    return pl.BlockSpec(shape, lambda i, _n=n: (0,) * _n)


# --------------------------- Fused forward kernel ---------------------------
def fused_bilstm_crf_kernel(tok2_ref, mask_ref, seqend_ref, tab_ref, whh_ref,
                            wlin_ref, blin_ref, transt_ref, start_ref, end_ref,
                            em_ref, tags_ref):
    """tok2: (2,T,B) int32 (row 0 = tokens, row 1 = time-reversed tokens + V),
    mask: (T,B,1) int32, seq_end: (B,1) int32, tab: (2V,8H) folded projection
    table, whh: (2H,8H) block-diagonal recurrent weights, W_lin: (2H,K),
    b_lin: (1,K), trans_t[j,i] = transitions[i,j], start/end: (1,K).
    Fused gate-column layout: [i_f i_b | f_f f_b | o_f o_b | g_f g_b].
    Outputs: emissions (T*B,K) f32, tags (B,T) int32 (-1 where masked)."""
    _, T, B = tok2_ref.shape
    V2, H8 = tab_ref.shape
    H = H8 // 8
    H2, H4, H6 = 2 * H, 4 * H, 6 * H
    K = start_ref.shape[1]

    # ---- embedding + input projections + biases + backward time reversal:
    #      one two-hot matmul against the folded (2V, 8H) table ----
    tok_f = tok2_ref[0]                                              # (T, B)
    tok_b = tok2_ref[1]                                              # (T, B), +V offset
    vio = jax.lax.broadcasted_iota(jnp.int32, (T, B, V2), 2)
    twohot = ((vio == tok_f[:, :, None]) | (vio == tok_b[:, :, None]))
    twohot = twohot.astype(jnp.float32).reshape(T * B, V2)
    pre = jnp.dot(twohot, tab_ref[...],
                  preferred_element_type=jnp.float32)                # (T*B, 8H)

    whh = whh_ref[...]                                               # (2H, 8H)

    # ---- fused bidirectional recurrence: ONE dot per step ----
    h_cat = jnp.zeros((B, H2), jnp.float32)                          # [h_f | h_b]
    c_cat = jnp.zeros((B, H2), jnp.float32)
    hs = []
    for s in range(T):
        # row-block s of `pre` already pairs fwd time s with bwd time T-1-s
        gates = pre[s * B:(s + 1) * B, :] + jnp.dot(
            h_cat, whh, preferred_element_type=jnp.float32)          # (B, 8H)
        sig = jax.nn.sigmoid(gates[:, 0:H6])                         # i, f, o gates
        g_cat = jnp.tanh(gates[:, H6:H8])                            # g gate
        i_cat = sig[:, 0:H2]
        f_cat = sig[:, H2:H4]
        o_cat = sig[:, H4:H6]
        c_cat = f_cat * c_cat + i_cat * g_cat
        h_cat = o_cat * jnp.tanh(c_cat)
        hs.append(h_cat)

    # ---- pair h_f(t) with h_b(t) in registers; linear head ----
    feats = jnp.concatenate(
        [jnp.concatenate([hs[t][:, 0:H], hs[T - 1 - t][:, H:H2]], axis=1)
         for t in range(T)], axis=0)                                 # (T*B, 2H)
    em2 = jnp.dot(feats, wlin_ref[...],
                  preferred_element_type=jnp.float32) + blin_ref[...]  # (T*B, K)
    em_ref[...] = em2

    # ---- CRF Viterbi decode (torchcrf semantics), unrolled ----
    trans_t = transt_ref[...]                                        # (K, K)
    mask_all = mask_ref[...] > 0                                     # (T, B, 1), loaded once
    score = start_ref[...] + em2[0:B, :]                             # (B, K)
    iota_bkk = jax.lax.broadcasted_iota(jnp.int32, (B, K, K), 2)
    hist = [None] * T
    for t in range(1, T):
        em_t = em2[t * B:(t + 1) * B, :]                             # (B, K)
        # nxt[b, j, i] = score[b, i] + transitions[i, j] + em_t[b, j]
        nxt = score[:, None, :] + trans_t[None, :, :] + em_t[:, :, None]
        best = jnp.max(nxt, axis=2)                                  # (B, K)
        arg = jnp.min(jnp.where(nxt >= best[:, :, None], iota_bkk, K), axis=2)
        score = jnp.where(mask_all[t], best, score)
        hist[t] = arg
    score = score + end_ref[...]                                     # (B, K)

    # ---- backtracking ----
    seq_end = seqend_ref[...]                                        # (B, 1) int32
    iota_bk = jax.lax.broadcasted_iota(jnp.int32, (B, K), 1)
    fmax = jnp.max(score, axis=1, keepdims=True)
    init_tag = jnp.min(jnp.where(score >= fmax, iota_bk, K),
                       axis=1, keepdims=True)                        # (B, 1)

    col_iota = jax.lax.broadcasted_iota(jnp.int32, (B, T), 1)
    tags = jnp.full((B, T), -1, jnp.int32)
    cur = jnp.zeros((B, 1), jnp.int32)
    for s in range(T):
        t = T - 1 - s
        h_idx = min(t + 1, T - 1)
        hist_t1 = (hist[h_idx] if hist[h_idx] is not None
                   else jnp.zeros((B, K), jnp.int32))
        gathered = jnp.sum(jnp.where(iota_bk == cur, hist_t1, 0),
                           axis=1, keepdims=True)                    # (B, 1)
        cur = jnp.where(seq_end == t, init_tag,
                        jnp.where(seq_end > t, gathered, cur))
        val = jnp.where(seq_end >= t, cur, -1)                       # (B, 1)
        tags = jnp.where(col_iota == t, val, tags)
    tags_ref[...] = tags


# ----------------------- Weight packing (wrapper side) -----------------------
def _pack_gate_cols(wf, wb):
    """Map per-direction gate columns (PyTorch order i,f,g,o) into the fused
    kernel column layout [i_f i_b | f_f f_b | o_f o_b | g_f g_b]."""
    H = HIDDEN_SIZE

    def g(w, k):
        return w[..., k * H:(k + 1) * H]

    return jnp.concatenate([g(wf, 0), g(wb, 0), g(wf, 1), g(wb, 1),
                            g(wf, 3), g(wb, 3), g(wf, 2), g(wb, 2)], axis=-1)


def build_fused_tables(p):
    """Precompute (outside the kernel):
      tab (2V, 8H): embedding folded into both input projections (+ biases),
                    rows 0:V feed forward columns, rows V:2V feed backward ones.
      whh (2H, 8H): block-diagonal recurrent matrix for the fused h_cat state."""
    H, V = HIDDEN_SIZE, VOCAB_SIZE
    proj_f = jnp.dot(p["embed"], p["w_ih_f"]) + p["b_f"]             # (V, 4H)
    proj_b = jnp.dot(p["embed"], p["w_ih_b"]) + p["b_b"]             # (V, 4H)
    zv = jnp.zeros((V, 4 * H), jnp.float32)
    tab = jnp.concatenate([_pack_gate_cols(proj_f, zv),
                           _pack_gate_cols(zv, proj_b)], axis=0)     # (2V, 8H)
    zh = jnp.zeros((H, 4 * H), jnp.float32)
    whh = jnp.concatenate([_pack_gate_cols(p["w_hh_f"], zh),
                           _pack_gate_cols(zh, p["w_hh_b"])], axis=0)  # (2H, 8H)
    return tab, whh


def fused_forward(tok2, mask_tb1, seq_end, tab, whh, p):
    _, T, B = tok2.shape
    K = p["w_lin"].shape[1]
    kernel = pl.pallas_call(
        fused_bilstm_crf_kernel,
        out_shape=(jax.ShapeDtypeStruct((T * B, K), jnp.float32),
                   jax.ShapeDtypeStruct((B, T), jnp.int32)),
        grid=(1,),
        in_specs=[_full_spec(tok2.shape), _full_spec(mask_tb1.shape),
                  _full_spec(seq_end.shape), _full_spec(tab.shape),
                  _full_spec(whh.shape),
                  _full_spec(p["w_lin"].shape), _full_spec(p["b_lin"].shape),
                  _full_spec(p["trans"].shape), _full_spec(p["start"].shape),
                  _full_spec(p["end"].shape)],
        out_specs=(_full_spec((T * B, K)), _full_spec((B, T))),
        compiler_params=pltpu.CompilerParams(dimension_semantics=("arbitrary",)),
    )
    return kernel(tok2, mask_tb1, seq_end, tab, whh,
                  p["w_lin"], p["b_lin"], p["trans"].T, p["start"], p["end"])


# ----------------------------- Parameters & wrapper --------------------------
def init_params(key):
    ks = jax.random.split(key, 12)

    def u(k, shape, a):
        return jax.random.uniform(k, shape, jnp.float32, -a, a)

    H, E, K, V = HIDDEN_SIZE, EMBEDDING_DIM, TARGET_SIZE, VOCAB_SIZE
    p = {}
    p["embed"] = u(ks[0], (V, E), 0.5).at[WORD_PAD_ID].set(0.0)  # padding row = 0
    s = 1.0 / np.sqrt(H)
    # LSTM weights stored in canonical layout: W_ih (E, 4H), W_hh (H, 4H),
    # bias = b_ih + b_hh combined -> (1, 4H).  Gate order i, f, g, o.
    p["w_ih_f"] = u(ks[1], (E, 4 * H), s)
    p["w_hh_f"] = u(ks[2], (H, 4 * H), s)
    p["b_f"] = u(ks[3], (1, 4 * H), 2 * s)
    p["w_ih_b"] = u(ks[4], (E, 4 * H), s)
    p["w_hh_b"] = u(ks[5], (H, 4 * H), s)
    p["b_b"] = u(ks[6], (1, 4 * H), 2 * s)
    sl = 1.0 / np.sqrt(2 * H)
    p["w_lin"] = u(ks[7], (2 * H, K), sl)
    p["b_lin"] = u(ks[8], (1, K), sl)
    p["trans"] = u(ks[9], (K, K), 0.1)     # CRF params (torchcrf-style init)
    p["start"] = u(ks[10], (1, K), 0.1)
    p["end"] = u(ks[11], (1, K), 0.1)
    return p


def model_forward(p, tokens, mask):
    """tokens: (B,T) int32, mask: (B,T) bool -> (tags (B,T) int32, emissions (B,T,K))."""
    B, T = tokens.shape
    K = p["w_lin"].shape[1]
    tok_tb = jnp.transpose(tokens.astype(jnp.int32), (1, 0))             # (T, B)
    tok_rev = tok_tb[::-1] + VOCAB_SIZE                                  # reversed, +V offset
    tok2 = jnp.stack([tok_tb, tok_rev], axis=0)                          # (2, T, B)
    mask_i = mask.astype(jnp.int32)
    mask_tb1 = jnp.transpose(mask_i, (1, 0))[:, :, None]                 # (T, B, 1)
    seq_end = jnp.sum(mask_i, axis=1, keepdims=True) - 1                 # (B, 1)
    tab, whh = build_fused_tables(p)
    em_flat, tags = fused_forward(tok2, mask_tb1, seq_end, tab, whh, p)
    emissions = jnp.transpose(em_flat.reshape(T, B, K), (1, 0, 2))       # (B, T, K)
    return tags, emissions


# ----------------------------- Pure numpy reference --------------------------
def _np_sigmoid(x):
    return 1.0 / (1.0 + np.exp(-x))


def reference_emissions(p, tokens):
    """float64 reference: embedding -> BiLSTM -> linear.  Returns (B, T, K)."""
    B, T = tokens.shape
    H = p["w_hh_f"].shape[0]
    emb = p["embed"][tokens]                                  # (B, T, E)

    def run_dir(w_ih, w_hh, b, reverse):
        hs = np.zeros((B, T, H), np.float64)
        for bi in range(B):
            h = np.zeros(H, np.float64)
            c = np.zeros(H, np.float64)
            ts = range(T - 1, -1, -1) if reverse else range(T)
            for t in ts:
                gates = emb[bi, t] @ w_ih + h @ w_hh + b[0]
                i = _np_sigmoid(gates[0:H]); f = _np_sigmoid(gates[H:2 * H])
                g = np.tanh(gates[2 * H:3 * H]); o = _np_sigmoid(gates[3 * H:4 * H])
                c = f * c + i * g
                h = o * np.tanh(c)
                hs[bi, t] = h
        return hs

    hf = run_dir(p["w_ih_f"], p["w_hh_f"], p["b_f"], False)
    hb = run_dir(p["w_ih_b"], p["w_hh_b"], p["b_b"], True)
    return np.concatenate([hf, hb], -1) @ p["w_lin"] + p["b_lin"][0]   # (B, T, K)


def reference_decode(p, emissions, mask):
    """torchcrf-style Viterbi decode on given emissions (B,T,K); -1 padding."""
    B, T, K = emissions.shape
    em = np.transpose(emissions, (1, 0, 2)).astype(np.float64)   # (T, B, K)
    msk = np.transpose(mask, (1, 0)).astype(bool)                # (T, B)
    trans = p["trans"]; start = p["start"][0]; end = p["end"][0]
    score = start + em[0]
    history = []
    for t in range(1, T):
        nxt = score[:, :, None] + trans[None, :, :] + em[t][:, None, :]
        history.append(nxt.argmax(axis=1))
        best = nxt.max(axis=1)
        score = np.where(msk[t][:, None], best, score)
    score = score + end
    seq_ends = msk.sum(0) - 1
    tags = np.full((B, T), -1, np.int64)
    for b in range(B):
        best_last = int(score[b].argmax())
        seq = [best_last]
        for hist in reversed(history[:int(seq_ends[b])]):
            best_last = int(hist[b][seq[-1]])
            seq.append(best_last)
        seq.reverse()
        tags[b, :len(seq)] = seq
    return tags


# ----------------------------- Main ------------------------------------------
if __name__ == "__main__":
    B, T = 2, 8
    key = jax.random.PRNGKey(0)
    kp, kt = jax.random.split(key)
    params = init_params(kp)

    lengths = jnp.array([T, 5], dtype=jnp.int32)
    mask = jnp.arange(T)[None, :] < lengths[:, None]          # (B, T) bool
    tokens = jax.random.randint(kt, (B, T), 1, VOCAB_SIZE, dtype=jnp.int32)
    tokens = jnp.where(mask, tokens, WORD_PAD_ID)

    tags, emissions = jax.jit(model_forward)(params, tokens, mask)
    tags = np.asarray(jax.block_until_ready(tags))
    emissions = np.asarray(jax.block_until_ready(emissions))

    p64 = {k: np.asarray(v, np.float64) for k, v in params.items()}
    tokens_np = np.asarray(tokens)
    mask_np = np.asarray(mask)

    # emissions path (embedding + BiLSTM + linear) vs float64 reference
    ref_em = reference_emissions(p64, tokens_np)
    np.testing.assert_allclose(emissions, ref_em, rtol=3e-2, atol=3e-2)

    # CRF decode checked against a float64 Viterbi run on the kernel's own
    # emissions (same tie-break rule), so the check is independent of the
    # default-precision MXU rounding in the emission path.
    ref_tags = reference_decode(p64, emissions.astype(np.float64), mask_np)
    assert np.array_equal(tags, ref_tags), (tags, ref_tags)
    assert np.all((tags >= -1) & (tags < TARGET_SIZE))
    assert np.all(tags[~mask_np] == -1)

    print("KERNEL_OK")
</pallas_src>

<mosaic_0001>
module attributes {stable_mosaic.version = 11 : i64} {
  func.func @fused_bilstm_crf_kernel(%arg0: i32, %arg1: memref<2x8x2xi32, #tpu.memory_space<vmem>>, %arg2: memref<8x2x1xi32, #tpu.memory_space<vmem>>, %arg3: memref<2x1xi32, #tpu.memory_space<vmem>>, %arg4: memref<64x256xf32, #tpu.memory_space<vmem>>, %arg5: memref<64x256xf32, #tpu.memory_space<vmem>>, %arg6: memref<64x8xf32, #tpu.memory_space<vmem>>, %arg7: memref<1x8xf32, #tpu.memory_space<vmem>>, %arg8: memref<8x8xf32, #tpu.memory_space<vmem>>, %arg9: memref<1x8xf32, #tpu.memory_space<vmem>>, %arg10: memref<1x8xf32, #tpu.memory_space<vmem>>, %arg11: memref<16x8xf32, #tpu.memory_space<vmem>>, %arg12: memref<2x8xi32, #tpu.memory_space<vmem>>) attributes {dimension_semantics = [#tpu.dimension_semantics<arbitrary>], iteration_bounds = array<i64: 1>, scalar_prefetch = 0 : i64, scratch_operands = 0 : i64, tpu.core_type = #tpu.core_type<tc>, window_params = [{pipeline_mode = #tpu.pipeline_mode<synchronous>, transform_indices = @transform_0, window_bounds = array<i64: 2, 8, 2>}, {pipeline_mode = #tpu.pipeline_mode<synchronous>, transform_indices = @transform_1, window_bounds = array<i64: 8, 2, 1>}, {pipeline_mode = #tpu.pipeline_mode<synchronous>, transform_indices = @transform_2, window_bounds = array<i64: 2, 1>}, {pipeline_mode = #tpu.pipeline_mode<synchronous>, transform_indices = @transform_3, window_bounds = array<i64: 64, 256>}, {pipeline_mode = #tpu.pipeline_mode<synchronous>, transform_indices = @transform_4, window_bounds = array<i64: 64, 256>}, {pipeline_mode = #tpu.pipeline_mode<synchronous>, transform_indices = @transform_5, window_bounds = array<i64: 64, 8>}, {pipeline_mode = #tpu.pipeline_mode<synchronous>, transform_indices = @transform_6, window_bounds = array<i64: 1, 8>}, {pipeline_mode = #tpu.pipeline_mode<synchronous>, transform_indices = @transform_7, window_bounds = array<i64: 8, 8>}, {pipeline_mode = #tpu.pipeline_mode<synchronous>, transform_indices = @transform_8, window_bounds = array<i64: 1, 8>}, {pipeline_mode = #tpu.pipeline_mode<synchronous>, transform_indices = @transform_9, window_bounds = array<i64: 1, 8>}, {pipeline_mode = #tpu.pipeline_mode<synchronous>, transform_indices = @transform_10, window_bounds = array<i64: 16, 8>}, {pipeline_mode = #tpu.pipeline_mode<synchronous>, transform_indices = @transform_11, window_bounds = array<i64: 2, 8>}]} {
    %c0 = arith.constant 0 : index
    %c0_0 = arith.constant 0 : index
    %c0_1 = arith.constant 0 : index
    %0 = vector.load %arg1[%c0, %c0_0, %c0_1] : memref<2x8x2xi32, #tpu.memory_space<vmem>>, vector<1x8x2xi32>
    %1 = vector.shape_cast %0 : vector<1x8x2xi32> to vector<8x2xi32>
    %c1 = arith.constant 1 : index
    %c0_2 = arith.constant 0 : index
    %c0_3 = arith.constant 0 : index
    %2 = vector.load %arg1[%c1, %c0_2, %c0_3] : memref<2x8x2xi32, #tpu.memory_space<vmem>>, vector<1x8x2xi32>
    %3 = vector.shape_cast %2 : vector<1x8x2xi32> to vector<8x2xi32>
    %4 = tpu.iota {dimensions = array<i32: 2>} : vector<8x2x64xi32>
    %5 = vector.shape_cast %1 : vector<8x2xi32> to vector<8x2x1xi32>
    %6 = vector.broadcast %5 : vector<8x2x1xi32> to vector<8x2x64xi32>
    %7 = arith.cmpi eq, %4, %6 : vector<8x2x64xi32>
    %8 = vector.shape_cast %3 : vector<8x2xi32> to vector<8x2x1xi32>
    %9 = vector.broadcast %8 : vector<8x2x1xi32> to vector<8x2x64xi32>
    %10 = arith.cmpi eq, %4, %9 : vector<8x2x64xi32>
    %11 = arith.ori %7, %10 : vector<8x2x64xi1>
    %12 = arith.extui %11 : vector<8x2x64xi1> to vector<8x2x64xi32>
    %13 = arith.sitofp %12 : vector<8x2x64xi32> to vector<8x2x64xf32>
    %14 = vector.shape_cast %13 : vector<8x2x64xf32> to vector<16x64xf32>
    %c0_4 = arith.constant 0 : index
    %c0_5 = arith.constant 0 : index
    %15 = vector.load %arg4[%c0_4, %c0_5] : memref<64x256xf32, #tpu.memory_space<vmem>>, vector<64x256xf32>
    %cst = arith.constant dense<0.000000e+00> : vector<16x256xf32>
    %16 = tpu.matmul %14, %15, %cst {dimension_numbers = #tpu.dot_dimension_numbers<[1], [0], [0], [1], [0, 0, 1, 1], [], []>} : vector<16x64xf32>, vector<64x256xf32>, vector<16x256xf32> -> vector<16x256xf32>
    %c0_6 = arith.constant 0 : index
    %c0_7 = arith.constant 0 : index
    %17 = vector.load %arg5[%c0_6, %c0_7] : memref<64x256xf32, #tpu.memory_space<vmem>>, vector<64x256xf32>
    %cst_8 = arith.constant 0.000000e+00 : f32
    %18 = vector.broadcast %cst_8 : f32 to vector<2x64xf32>
    %cst_9 = arith.constant 0.000000e+00 : f32
    %19 = vector.broadcast %cst_9 : f32 to vector<2x64xf32>
    %20 = vector.extract_strided_slice %16 {offsets = [0, 0], sizes = [2, 256], strides = [1, 1]} : vector<16x256xf32> to vector<2x256xf32>
    %cst_10 = arith.constant dense<0.000000e+00> : vector<2x256xf32>
    %21 = tpu.matmul %18, %17, %cst_10 {dimension_numbers = #tpu.dot_dimension_numbers<[1], [0], [0], [1], [0, 0, 1, 1], [], []>} : vector<2x64xf32>, vector<64x256xf32>, vector<2x256xf32> -> vector<2x256xf32>
    %22 = arith.addf %20, %21 : vector<2x256xf32>
    %23 = vector.extract_strided_slice %22 {offsets = [0, 0], sizes = [2, 192], strides = [1, 1]} : vector<2x256xf32> to vector<2x192xf32>
    %24 = arith.negf %23 : vector<2x192xf32>
    %25 = math.exp %24 : vector<2x192xf32>
    %cst_11 = arith.constant 1.000000e+00 : f32
    %26 = vector.broadcast %cst_11 : f32 to vector<2x192xf32>
    %27 = arith.addf %26, %25 : vector<2x192xf32>
    %28 = arith.divf %26, %27 : vector<2x192xf32>
    %29 = vector.extract_strided_slice %22 {offsets = [0, 192], sizes = [2, 64], strides = [1, 1]} : vector<2x256xf32> to vector<2x64xf32>
    %30 = math.tanh %29 : vector<2x64xf32>
    %31 = vector.extract_strided_slice %28 {offsets = [0, 0], sizes = [2, 64], strides = [1, 1]} : vector<2x192xf32> to vector<2x64xf32>
    %32 = vector.extract_strided_slice %28 {offsets = [0, 64], sizes = [2, 64], strides = [1, 1]} : vector<2x192xf32> to vector<2x64xf32>
    %33 = vector.extract_strided_slice %28 {offsets = [0, 128], sizes = [2, 64], strides = [1, 1]} : vector<2x192xf32> to vector<2x64xf32>
    %34 = arith.mulf %32, %19 : vector<2x64xf32>
    %35 = arith.mulf %31, %30 : vector<2x64xf32>
    %36 = arith.addf %34, %35 : vector<2x64xf32>
    %37 = math.tanh %36 : vector<2x64xf32>
    %38 = arith.mulf %33, %37 : vector<2x64xf32>
    %39 = vector.extract_strided_slice %16 {offsets = [2, 0], sizes = [2, 256], strides = [1, 1]} : vector<16x256xf32> to vector<2x256xf32>
    %cst_12 = arith.constant dense<0.000000e+00> : vector<2x256xf32>
    %40 = tpu.matmul %38, %17, %cst_12 {dimension_numbers = #tpu.dot_dimension_numbers<[1], [0], [0], [1], [0, 0, 1, 1], [], []>} : vector<2x64xf32>, vector<64x256xf32>, vector<2x256xf32> -> vector<2x256xf32>
    %41 = arith.addf %39, %40 : vector<2x256xf32>
    %42 = vector.extract_strided_slice %41 {offsets = [0, 0], sizes = [2, 192], strides = [1, 1]} : vector<2x256xf32> to vector<2x192xf32>
    %43 = arith.negf %42 : vector<2x192xf32>
    %44 = math.exp %43 : vector<2x192xf32>
    %cst_13 = arith.constant 1.000000e+00 : f32
    %45 = vector.broadcast %cst_13 : f32 to vector<2x192xf32>
    %46 = arith.addf %45, %44 : vector<2x192xf32>
    %47 = arith.divf %45, %46 : vector<2x192xf32>
    %48 = vector.extract_strided_slice %41 {offsets = [0, 192], sizes = [2, 64], strides = [1, 1]} : vector<2x256xf32> to vector<2x64xf32>
    %49 = math.tanh %48 : vector<2x64xf32>
    %50 = vector.extract_strided_slice %47 {offsets = [0, 0], sizes = [2, 64], strides = [1, 1]} : vector<2x192xf32> to vector<2x64xf32>
    %51 = vector.extract_strided_slice %47 {offsets = [0, 64], sizes = [2, 64], strides = [1, 1]} : vector<2x192xf32> to vector<2x64xf32>
    %52 = vector.extract_strided_slice %47 {offsets = [0, 128], sizes = [2, 64], strides = [1, 1]} : vector<2x192xf32> to vector<2x64xf32>
    %53 = arith.mulf %51, %36 : vector<2x64xf32>
    %54 = arith.mulf %50, %49 : vector<2x64xf32>
    %55 = arith.addf %53, %54 : vector<2x64xf32>
    %56 = math.tanh %55 : vector<2x64xf32>
    %57 = arith.mulf %52, %56 : vector<2x64xf32>
    %58 = vector.extract_strided_slice %16 {offsets = [4, 0], sizes = [2, 256], strides = [1, 1]} : vector<16x256xf32> to vector<2x256xf32>
    %cst_14 = arith.constant dense<0.000000e+00> : vector<2x256xf32>
    %59 = tpu.matmul %57, %17, %cst_14 {dimension_numbers = #tpu.dot_dimension_numbers<[1], [0], [0], [1], [0, 0, 1, 1], [], []>} : vector<2x64xf32>, vector<64x256xf32>, vector<2x256xf32> -> vector<2x256xf32>
    %60 = arith.addf %58, %59 : vector<2x256xf32>
    %61 = vector.extract_strided_slice %60 {offsets = [0, 0], sizes = [2, 192], strides = [1, 1]} : vector<2x256xf32> to vector<2x192xf32>
    %62 = arith.negf %61 : vector<2x192xf32>
    %63 = math.exp %62 : vector<2x192xf32>
    %cst_15 = arith.constant 1.000000e+00 : f32
    %64 = vector.broadcast %cst_15 : f32 to vector<2x192xf32>
    %65 = arith.addf %64, %63 : vector<2x192xf32>
    %66 = arith.divf %64, %65 : vector<2x192xf32>
    %67 = vector.extract_strided_slice %60 {offsets = [0, 192], sizes = [2, 64], strides = [1, 1]} : vector<2x256xf32> to vector<2x64xf32>
    %68 = math.tanh %67 : vector<2x64xf32>
    %69 = vector.extract_strided_slice %66 {offsets = [0, 0], sizes = [2, 64], strides = [1, 1]} : vector<2x192xf32> to vector<2x64xf32>
    %70 = vector.extract_strided_slice %66 {offsets = [0, 64], sizes = [2, 64], strides = [1, 1]} : vector<2x192xf32> to vector<2x64xf32>
    %71 = vector.extract_strided_slice %66 {offsets = [0, 128], sizes = [2, 64], strides = [1, 1]} : vector<2x192xf32> to vector<2x64xf32>
    %72 = arith.mulf %70, %55 : vector<2x64xf32>
    %73 = arith.mulf %69, %68 : vector<2x64xf32>
    %74 = arith.addf %72, %73 : vector<2x64xf32>
    %75 = math.tanh %74 : vector<2x64xf32>
    %76 = arith.mulf %71, %75 : vector<2x64xf32>
    %77 = vector.extract_strided_slice %16 {offsets = [6, 0], sizes = [2, 256], strides = [1, 1]} : vector<16x256xf32> to vector<2x256xf32>
    %cst_16 = arith.constant dense<0.000000e+00> : vector<2x256xf32>
    %78 = tpu.matmul %76, %17, %cst_16 {dimension_numbers = #tpu.dot_dimension_numbers<[1], [0], [0], [1], [0, 0, 1, 1], [], []>} : vector<2x64xf32>, vector<64x256xf32>, vector<2x256xf32> -> vector<2x256xf32>
    %79 = arith.addf %77, %78 : vector<2x256xf32>
    %80 = vector.extract_strided_slice %79 {offsets = [0, 0], sizes = [2, 192], strides = [1, 1]} : vector<2x256xf32> to vector<2x192xf32>
    %81 = arith.negf %80 : vector<2x192xf32>
    %82 = math.exp %81 : vector<2x192xf32>
    %cst_17 = arith.constant 1.000000e+00 : f32
    %83 = vector.broadcast %cst_17 : f32 to vector<2x192xf32>
    %84 = arith.addf %83, %82 : vector<2x192xf32>
    %85 = arith.divf %83, %84 : vector<2x192xf32>
    %86 = vector.extract_strided_slice %79 {offsets = [0, 192], sizes = [2, 64], strides = [1, 1]} : vector<2x256xf32> to vector<2x64xf32>
    %87 = math.tanh %86 : vector<2x64xf32>
    %88 = vector.extract_strided_slice %85 {offsets = [0, 0], sizes = [2, 64], strides = [1, 1]} : vector<2x192xf32> to vector<2x64xf32>
    %89 = vector.extract_strided_slice %85 {offsets = [0, 64], sizes = [2, 64], strides = [1, 1]} : vector<2x192xf32> to vector<2x64xf32>
    %90 = vector.extract_strided_slice %85 {offsets = [0, 128], sizes = [2, 64], strides = [1, 1]} : vector<2x192xf32> to vector<2x64xf32>
    %91 = arith.mulf %89, %74 : vector<2x64xf32>
    %92 = arith.mulf %88, %87 : vector<2x64xf32>
    %93 = arith.addf %91, %92 : vector<2x64xf32>
    %94 = math.tanh %93 : vector<2x64xf32>
    %95 = arith.mulf %90, %94 : vector<2x64xf32>
    %96 = vector.extract_strided_slice %16 {offsets = [8, 0], sizes = [2, 256], strides = [1, 1]} : vector<16x256xf32> to vector<2x256xf32>
    %cst_18 = arith.constant dense<0.000000e+00> : vector<2x256xf32>
    %97 = tpu.matmul %95, %17, %cst_18 {dimension_numbers = #tpu.dot_dimension_numbers<[1], [0], [0], [1], [0, 0, 1, 1], [], []>} : vector<2x64xf32>, vector<64x256xf32>, vector<2x256xf32> -> vector<2x256xf32>
    %98 = arith.addf %96, %97 : vector<2x256xf32>
    %99 = vector.extract_strided_slice %98 {offsets = [0, 0], sizes = [2, 192], strides = [1, 1]} : vector<2x256xf32> to vector<2x192xf32>
    %100 = arith.negf %99 : vector<2x192xf32>
    %101 = math.exp %100 : vector<2x192xf32>
    %cst_19 = arith.constant 1.000000e+00 : f32
    %102 = vector.broadcast %cst_19 : f32 to vector<2x192xf32>
    %103 = arith.addf %102, %101 : vector<2x192xf32>
    %104 = arith.divf %102, %103 : vector<2x192xf32>
    %105 = vector.extract_strided_slice %98 {offsets = [0, 192], sizes = [2, 64], strides = [1, 1]} : vector<2x256xf32> to vector<2x64xf32>
    %106 = math.tanh %105 : vector<2x64xf32>
    %107 = vector.extract_strided_slice %104 {offsets = [0, 0], sizes = [2, 64], strides = [1, 1]} : vector<2x192xf32> to vector<2x64xf32>
    %108 = vector.extract_strided_slice %104 {offsets = [0, 64], sizes = [2, 64], strides = [1, 1]} : vector<2x192xf32> to vector<2x64xf32>
    %109 = vector.extract_strided_slice %104 {offsets = [0, 128], sizes = [2, 64], strides = [1, 1]} : vector<2x192xf32> to vector<2x64xf32>
    %110 = arith.mulf %108, %93 : vector<2x64xf32>
    %111 = arith.mulf %107, %106 : vector<2x64xf32>
    %112 = arith.addf %110, %111 : vector<2x64xf32>
    %113 = math.tanh %112 : vector<2x64xf32>
    %114 = arith.mulf %109, %113 : vector<2x64xf32>
    %115 = vector.extract_strided_slice %16 {offsets = [10, 0], sizes = [2, 256], strides = [1, 1]} : vector<16x256xf32> to vector<2x256xf32>
    %cst_20 = arith.constant dense<0.000000e+00> : vector<2x256xf32>
    %116 = tpu.matmul %114, %17, %cst_20 {dimension_numbers = #tpu.dot_dimension_numbers<[1], [0], [0], [1], [0, 0, 1, 1], [], []>} : vector<2x64xf32>, vector<64x256xf32>, vector<2x256xf32> -> vector<2x256xf32>
    %117 = arith.addf %115, %116 : vector<2x256xf32>
    %118 = vector.extract_strided_slice %117 {offsets = [0, 0], sizes = [2, 192], strides = [1, 1]} : vector<2x256xf32> to vector<2x192xf32>
    %119 = arith.negf %118 : vector<2x192xf32>
    %120 = math.exp %119 : vector<2x192xf32>
    %cst_21 = arith.constant 1.000000e+00 : f32
    %121 = vector.broadcast %cst_21 : f32 to vector<2x192xf32>
    %122 = arith.addf %121, %120 : vector<2x192xf32>
    %123 = arith.divf %121, %122 : vector<2x192xf32>
    %124 = vector.extract_strided_slice %117 {offsets = [0, 192], sizes = [2, 64], strides = [1, 1]} : vector<2x256xf32> to vector<2x64xf32>
    %125 = math.tanh %124 : vector<2x64xf32>
    %126 = vector.extract_strided_slice %123 {offsets = [0, 0], sizes = [2, 64], strides = [1, 1]} : vector<2x192xf32> to vector<2x64xf32>
    %127 = vector.extract_strided_slice %123 {offsets = [0, 64], sizes = [2, 64], strides = [1, 1]} : vector<2x192xf32> to vector<2x64xf32>
    %128 = vector.extract_strided_slice %123 {offsets = [0, 128], sizes = [2, 64], strides = [1, 1]} : vector<2x192xf32> to vector<2x64xf32>
    %129 = arith.mulf %127, %112 : vector<2x64xf32>
    %130 = arith.mulf %126, %125 : vector<2x64xf32>
    %131 = arith.addf %129, %130 : vector<2x64xf32>
    %132 = math.tanh %131 : vector<2x64xf32>
    %133 = arith.mulf %128, %132 : vector<2x64xf32>
    %134 = vector.extract_strided_slice %16 {offsets = [12, 0], sizes = [2, 256], strides = [1, 1]} : vector<16x256xf32> to vector<2x256xf32>
    %cst_22 = arith.constant dense<0.000000e+00> : vector<2x256xf32>
    %135 = tpu.matmul %133, %17, %cst_22 {dimension_numbers = #tpu.dot_dimension_numbers<[1], [0], [0], [1], [0, 0, 1, 1], [], []>} : vector<2x64xf32>, vector<64x256xf32>, vector<2x256xf32> -> vector<2x256xf32>
    %136 = arith.addf %134, %135 : vector<2x256xf32>
    %137 = vector.extract_strided_slice %136 {offsets = [0, 0], sizes = [2, 192], strides = [1, 1]} : vector<2x256xf32> to vector<2x192xf32>
    %138 = arith.negf %137 : vector<2x192xf32>
    %139 = math.exp %138 : vector<2x192xf32>
    %cst_23 = arith.constant 1.000000e+00 : f32
    %140 = vector.broadcast %cst_23 : f32 to vector<2x192xf32>
    %141 = arith.addf %140, %139 : vector<2x192xf32>
    %142 = arith.divf %140, %141 : vector<2x192xf32>
    %143 = vector.extract_strided_slice %136 {offsets = [0, 192], sizes = [2, 64], strides = [1, 1]} : vector<2x256xf32> to vector<2x64xf32>
    %144 = math.tanh %143 : vector<2x64xf32>
    %145 = vector.extract_strided_slice %142 {offsets = [0, 0], sizes = [2, 64], strides = [1, 1]} : vector<2x192xf32> to vector<2x64xf32>
    %146 = vector.extract_strided_slice %142 {offsets = [0, 64], sizes = [2, 64], strides = [1, 1]} : vector<2x192xf32> to vector<2x64xf32>
    %147 = vector.extract_strided_slice %142 {offsets = [0, 128], sizes = [2, 64], strides = [1, 1]} : vector<2x192xf32> to vector<2x64xf32>
    %148 = arith.mulf %146, %131 : vector<2x64xf32>
    %149 = arith.mulf %145, %144 : vector<2x64xf32>
    %150 = arith.addf %148, %149 : vector<2x64xf32>
    %151 = math.tanh %150 : vector<2x64xf32>
    %152 = arith.mulf %147, %151 : vector<2x64xf32>
    %153 = vector.extract_strided_slice %16 {offsets = [14, 0], sizes = [2, 256], strides = [1, 1]} : vector<16x256xf32> to vector<2x256xf32>
    %cst_24 = arith.constant dense<0.000000e+00> : vector<2x256xf32>
    %154 = tpu.matmul %152, %17, %cst_24 {dimension_numbers = #tpu.dot_dimension_numbers<[1], [0], [0], [1], [0, 0, 1, 1], [], []>} : vector<2x64xf32>, vector<64x256xf32>, vector<2x256xf32> -> vector<2x256xf32>
    %155 = arith.addf %153, %154 : vector<2x256xf32>
    %156 = vector.extract_strided_slice %155 {offsets = [0, 0], sizes = [2, 192], strides = [1, 1]} : vector<2x256xf32> to vector<2x192xf32>
    %157 = arith.negf %156 : vector<2x192xf32>
    %158 = math.exp %157 : vector<2x192xf32>
    %cst_25 = arith.constant 1.000000e+00 : f32
    %159 = vector.broadcast %cst_25 : f32 to vector<2x192xf32>
    %160 = arith.addf %159, %158 : vector<2x192xf32>
    %161 = arith.divf %159, %160 : vector<2x192xf32>
    %162 = vector.extract_strided_slice %155 {offsets = [0, 192], sizes = [2, 64], strides = [1, 1]} : vector<2x256xf32> to vector<2x64xf32>
    %163 = math.tanh %162 : vector<2x64xf32>
    %164 = vector.extract_strided_slice %161 {offsets = [0, 0], sizes = [2, 64], strides = [1, 1]} : vector<2x192xf32> to vector<2x64xf32>
    %165 = vector.extract_strided_slice %161 {offsets = [0, 64], sizes = [2, 64], strides = [1, 1]} : vector<2x192xf32> to vector<2x64xf32>
    %166 = vector.extract_strided_slice %161 {offsets = [0, 128], sizes = [2, 64], strides = [1, 1]} : vector<2x192xf32> to vector<2x64xf32>
    %167 = arith.mulf %165, %150 : vector<2x64xf32>
    %168 = arith.mulf %164, %163 : vector<2x64xf32>
    %169 = arith.addf %167, %168 : vector<2x64xf32>
    %170 = math.tanh %169 : vector<2x64xf32>
    %171 = arith.mulf %166, %170 : vector<2x64xf32>
    %172 = vector.extract_strided_slice %38 {offsets = [0, 0], sizes = [2, 32], strides = [1, 1]} : vector<2x64xf32> to vector<2x32xf32>
    %173 = vector.extract_strided_slice %171 {offsets = [0, 32], sizes = [2, 32], strides = [1, 1]} : vector<2x64xf32> to vector<2x32xf32>
    %174 = tpu.concatenate %172, %173 in 1 : vector<2x32xf32>, vector<2x32xf32> -> vector<2x64xf32>
    %175 = vector.extract_strided_slice %57 {offsets = [0, 0], sizes = [2, 32], strides = [1, 1]} : vector<2x64xf32> to vector<2x32xf32>
    %176 = vector.extract_strided_slice %152 {offsets = [0, 32], sizes = [2, 32], strides = [1, 1]} : vector<2x64xf32> to vector<2x32xf32>
    %177 = tpu.concatenate %175, %176 in 1 : vector<2x32xf32>, vector<2x32xf32> -> vector<2x64xf32>
    %178 = vector.extract_strided_slice %76 {offsets = [0, 0], sizes = [2, 32], strides = [1, 1]} : vector<2x64xf32> to vector<2x32xf32>
    %179 = vector.extract_strided_slice %133 {offsets = [0, 32], sizes = [2, 32], strides = [1, 1]} : vector<2x64xf32> to vector<2x32xf32>
    %180 = tpu.concatenate %178, %179 in 1 : vector<2x32xf32>, vector<2x32xf32> -> vector<2x64xf32>
    %181 = vector.extract_strided_slice %95 {offsets = [0, 0], sizes = [2, 32], strides = [1, 1]} : vector<2x64xf32> to vector<2x32xf32>
    %182 = vector.extract_strided_slice %114 {offsets = [0, 32], sizes = [2, 32], strides = [1, 1]} : vector<2x64xf32> to vector<2x32xf32>
    %183 = tpu.concatenate %181, %182 in 1 : vector<2x32xf32>, vector<2x32xf32> -> vector<2x64xf32>
    %184 = vector.extract_strided_slice %114 {offsets = [0, 0], sizes = [2, 32], strides = [1, 1]} : vector<2x64xf32> to vector<2x32xf32>
    %185 = vector.extract_strided_slice %95 {offsets = [0, 32], sizes = [2, 32], strides = [1, 1]} : vector<2x64xf32> to vector<2x32xf32>
    %186 = tpu.concatenate %184, %185 in 1 : vector<2x32xf32>, vector<2x32xf32> -> vector<2x64xf32>
    %187 = vector.extract_strided_slice %133 {offsets = [0, 0], sizes = [2, 32], strides = [1, 1]} : vector<2x64xf32> to vector<2x32xf32>
    %188 = vector.extract_strided_slice %76 {offsets = [0, 32], sizes = [2, 32], strides = [1, 1]} : vector<2x64xf32> to vector<2x32xf32>
    %189 = tpu.concatenate %187, %188 in 1 : vector<2x32xf32>, vector<2x32xf32> -> vector<2x64xf32>
    %190 = vector.extract_strided_slice %152 {offsets = [0, 0], sizes = [2, 32], strides = [1, 1]} : vector<2x64xf32> to vector<2x32xf32>
    %191 = vector.extract_strided_slice %57 {offsets = [0, 32], sizes = [2, 32], strides = [1, 1]} : vector<2x64xf32> to vector<2x32xf32>
    %192 = tpu.concatenate %190, %191 in 1 : vector<2x32xf32>, vector<2x32xf32> -> vector<2x64xf32>
    %193 = vector.extract_strided_slice %171 {offsets = [0, 0], sizes = [2, 32], strides = [1, 1]} : vector<2x64xf32> to vector<2x32xf32>
    %194 = vector.extract_strided_slice %38 {offsets = [0, 32], sizes = [2, 32], strides = [1, 1]} : vector<2x64xf32> to vector<2x32xf32>
    %195 = tpu.concatenate %193, %194 in 1 : vector<2x32xf32>, vector<2x32xf32> -> vector<2x64xf32>
    %196 = tpu.concatenate %174, %177, %180, %183, %186, %189, %192, %195 in 0 : vector<2x64xf32>, vector<2x64xf32>, vector<2x64xf32>, vector<2x64xf32>, vector<2x64xf32>, vector<2x64xf32>, vector<2x64xf32>, vector<2x64xf32> -> vector<16x64xf32>
    %c0_26 = arith.constant 0 : index
    %c0_27 = arith.constant 0 : index
    %197 = vector.load %arg6[%c0_26, %c0_27] : memref<64x8xf32, #tpu.memory_space<vmem>>, vector<64x8xf32>
    %cst_28 = arith.constant dense<0.000000e+00> : vector<16x8xf32>
    %198 = tpu.matmul %196, %197, %cst_28 {dimension_numbers = #tpu.dot_dimension_numbers<[1], [0], [0], [1], [0, 0, 1, 1], [], []>} : vector<16x64xf32>, vector<64x8xf32>, vector<16x8xf32> -> vector<16x8xf32>
    %c0_29 = arith.constant 0 : index
    %c0_30 = arith.constant 0 : index
    %199 = vector.load %arg7[%c0_29, %c0_30] : memref<1x8xf32, #tpu.memory_space<vmem>>, vector<1x8xf32>
    %200 = vector.broadcast %199 : vector<1x8xf32> to vector<16x8xf32>
    %201 = arith.addf %198, %200 : vector<16x8xf32>
    %c0_31 = arith.constant 0 : index
    %c0_32 = arith.constant 0 : index
    %202 = vector.load %arg11[%c0_31, %c0_32] : memref<16x8xf32, #tpu.memory_space<vmem>>, vector<16x8xf32>
    tpu.vector_store %arg11[%c0_31, %c0_32], %201 {strides = array<i32>} : memref<16x8xf32, #tpu.memory_space<vmem>>, vector<16x8xf32>,
    %c0_33 = arith.constant 0 : index
    %c0_34 = arith.constant 0 : index
    %203 = vector.load %arg8[%c0_33, %c0_34] : memref<8x8xf32, #tpu.memory_space<vmem>>, vector<8x8xf32>
    %c0_35 = arith.constant 0 : index
    %c0_36 = arith.constant 0 : index
    %c0_37 = arith.constant 0 : index
    %204 = vector.load %arg2[%c0_35, %c0_36, %c0_37] : memref<8x2x1xi32, #tpu.memory_space<vmem>>, vector<8x2x1xi32>
    %c0_i32 = arith.constant 0 : i32
    %205 = vector.broadcast %c0_i32 : i32 to vector<8x2x1xi32>
    %206 = arith.cmpi sgt, %204, %205 : vector<8x2x1xi32>
    %c0_38 = arith.constant 0 : index
    %c0_39 = arith.constant 0 : index
    %207 = vector.load %arg9[%c0_38, %c0_39] : memref<1x8xf32, #tpu.memory_space<vmem>>, vector<1x8xf32>
    %208 = vector.extract_strided_slice %201 {offsets = [0, 0], sizes = [2, 8], strides = [1, 1]} : vector<16x8xf32> to vector<2x8xf32>
    %209 = vector.broadcast %207 : vector<1x8xf32> to vector<2x8xf32>
    %210 = arith.addf %209, %208 : vector<2x8xf32>
    %211 = tpu.iota {dimensions = array<i32: 2>} : vector<2x8x8xi32>
    %212 = vector.extract_strided_slice %201 {offsets = [2, 0], sizes = [2, 8], strides = [1, 1]} : vector<16x8xf32> to vector<2x8xf32>
    %213 = vector.shape_cast %210 : vector<2x8xf32> to vector<2x1x8xf32>
    %214 = vector.shape_cast %203 : vector<8x8xf32> to vector<1x8x8xf32>
    %215 = vector.broadcast %213 : vector<2x1x8xf32> to vector<2x8x8xf32>
    %216 = vector.broadcast %214 : vector<1x8x8xf32> to vector<2x8x8xf32>
    %217 = arith.addf %215, %216 : vector<2x8x8xf32>
    %218 = vector.shape_cast %212 : vector<2x8xf32> to vector<2x8x1xf32>
    %219 = vector.broadcast %218 : vector<2x8x1xf32> to vector<2x8x8xf32>
    %220 = arith.addf %217, %219 : vector<2x8x8xf32>
    %cst_40 = arith.constant dense<0xFF800000> : vector<2x8xf32>
    %221 = vector.multi_reduction <maximumf>, %220, %cst_40 [2] : vector<2x8x8xf32> to vector<2x8xf32>
    %222 = vector.shape_cast %221 : vector<2x8xf32> to vector<2x8x1xf32>
    %223 = vector.broadcast %222 : vector<2x8x1xf32> to vector<2x8x8xf32>
    %224 = arith.cmpf oge, %220, %223 : vector<2x8x8xf32>
    %c8_i32 = arith.constant 8 : i32
    %225 = vector.broadcast %c8_i32 : i32 to vector<2x8x8xi32>
    %226 = arith.select %224, %211, %225 : vector<2x8x8xi1>, vector<2x8x8xi32>
    %cst_41 = arith.constant dense<2147483647> : vector<2x8xi32>
    %227 = vector.multi_reduction <minsi>, %226, %cst_41 [2] : vector<2x8x8xi32> to vector<2x8xi32>
    %228 = vector.extract_strided_slice %206 {offsets = [1, 0, 0], sizes = [1, 2, 1], strides = [1, 1, 1]} : vector<8x2x1xi1> to vector<1x2x1xi1>
    %229 = vector.shape_cast %228 : vector<1x2x1xi1> to vector<2x1xi1>
    %230 = vector.shape_cast %229 : vector<2x1xi1> to vector<2x1xi1>
    %231 = vector.broadcast %230 : vector<2x1xi1> to vector<2x8xi1>
    %232 = arith.select %231, %221, %210 : vector<2x8xi1>, vector<2x8xf32>
    %233 = vector.extract_strided_slice %201 {offsets = [4, 0], sizes = [2, 8], strides = [1, 1]} : vector<16x8xf32> to vector<2x8xf32>
    %234 = vector.shape_cast %232 : vector<2x8xf32> to vector<2x1x8xf32>
    %235 = vector.shape_cast %203 : vector<8x8xf32> to vector<1x8x8xf32>
    %236 = vector.broadcast %234 : vector<2x1x8xf32> to vector<2x8x8xf32>
    %237 = vector.broadcast %235 : vector<1x8x8xf32> to vector<2x8x8xf32>
    %238 = arith.addf %236, %237 : vector<2x8x8xf32>
    %239 = vector.shape_cast %233 : vector<2x8xf32> to vector<2x8x1xf32>
    %240 = vector.broadcast %239 : vector<2x8x1xf32> to vector<2x8x8xf32>
    %241 = arith.addf %238, %240 : vector<2x8x8xf32>
    %cst_42 = arith.constant dense<0xFF800000> : vector<2x8xf32>
    %242 = vector.multi_reduction <maximumf>, %241, %cst_42 [2] : vector<2x8x8xf32> to vector<2x8xf32>
    %243 = vector.shape_cast %242 : vector<2x8xf32> to vector<2x8x1xf32>
    %244 = vector.broadcast %243 : vector<2x8x1xf32> to vector<2x8x8xf32>
    %245 = arith.cmpf oge, %241, %244 : vector<2x8x8xf32>
    %c8_i32_43 = arith.constant 8 : i32
    %246 = vector.broadcast %c8_i32_43 : i32 to vector<2x8x8xi32>
    %247 = arith.select %245, %211, %246 : vector<2x8x8xi1>, vector<2x8x8xi32>
    %cst_44 = arith.constant dense<2147483647> : vector<2x8xi32>
    %248 = vector.multi_reduction <minsi>, %247, %cst_44 [2] : vector<2x8x8xi32> to vector<2x8xi32>
    %249 = vector.extract_strided_slice %206 {offsets = [2, 0, 0], sizes = [1, 2, 1], strides = [1, 1, 1]} : vector<8x2x1xi1> to vector<1x2x1xi1>
    %250 = vector.shape_cast %249 : vector<1x2x1xi1> to vector<2x1xi1>
    %251 = vector.shape_cast %250 : vector<2x1xi1> to vector<2x1xi1>
    %252 = vector.broadcast %251 : vector<2x1xi1> to vector<2x8xi1>
    %253 = arith.select %252, %242, %232 : vector<2x8xi1>, vector<2x8xf32>
    %254 = vector.extract_strided_slice %201 {offsets = [6, 0], sizes = [2, 8], strides = [1, 1]} : vector<16x8xf32> to vector<2x8xf32>
    %255 = vector.shape_cast %253 : vector<2x8xf32> to vector<2x1x8xf32>
    %256 = vector.shape_cast %203 : vector<8x8xf32> to vector<1x8x8xf32>
    %257 = vector.broadcast %255 : vector<2x1x8xf32> to vector<2x8x8xf32>
    %258 = vector.broadcast %256 : vector<1x8x8xf32> to vector<2x8x8xf32>
    %259 = arith.addf %257, %258 : vector<2x8x8xf32>
    %260 = vector.shape_cast %254 : vector<2x8xf32> to vector<2x8x1xf32>
    %261 = vector.broadcast %260 : vector<2x8x1xf32> to vector<2x8x8xf32>
    %262 = arith.addf %259, %261 : vector<2x8x8xf32>
    %cst_45 = arith.constant dense<0xFF800000> : vector<2x8xf32>
    %263 = vector.multi_reduction <maximumf>, %262, %cst_45 [2] : vector<2x8x8xf32> to vector<2x8xf32>
    %264 = vector.shape_cast %263 : vector<2x8xf32> to vector<2x8x1xf32>
    %265 = vector.broadcast %264 : vector<2x8x1xf32> to vector<2x8x8xf32>
    %266 = arith.cmpf oge, %262, %265 : vector<2x8x8xf32>
    %c8_i32_46 = arith.constant 8 : i32
    %267 = vector.broadcast %c8_i32_46 : i32 to vector<2x8x8xi32>
    %268 = arith.select %266, %211, %267 : vector<2x8x8xi1>, vector<2x8x8xi32>
    %cst_47 = arith.constant dense<2147483647> : vector<2x8xi32>
    %269 = vector.multi_reduction <minsi>, %268, %cst_47 [2] : vector<2x8x8xi32> to vector<2x8xi32>
    %270 = vector.extract_strided_slice %206 {offsets = [3, 0, 0], sizes = [1, 2, 1], strides = [1, 1, 1]} : vector<8x2x1xi1> to vector<1x2x1xi1>
    %271 = vector.shape_cast %270 : vector<1x2x1xi1> to vector<2x1xi1>
    %272 = vector.shape_cast %271 : vector<2x1xi1> to vector<2x1xi1>
    %273 = vector.broadcast %272 : vector<2x1xi1> to vector<2x8xi1>
    %274 = arith.select %273, %263, %253 : vector<2x8xi1>, vector<2x8xf32>
    %275 = vector.extract_strided_slice %201 {offsets = [8, 0], sizes = [2, 8], strides = [1, 1]} : vector<16x8xf32> to vector<2x8xf32>
    %276 = vector.shape_cast %274 : vector<2x8xf32> to vector<2x1x8xf32>
    %277 = vector.shape_cast %203 : vector<8x8xf32> to vector<1x8x8xf32>
    %278 = vector.broadcast %276 : vector<2x1x8xf32> to vector<2x8x8xf32>
    %279 = vector.broadcast %277 : vector<1x8x8xf32> to vector<2x8x8xf32>
    %280 = arith.addf %278, %279 : vector<2x8x8xf32>
    %281 = vector.shape_cast %275 : vector<2x8xf32> to vector<2x8x1xf32>
    %282 = vector.broadcast %281 : vector<2x8x1xf32> to vector<2x8x8xf32>
    %283 = arith.addf %280, %282 : vector<2x8x8xf32>
    %cst_48 = arith.constant dense<0xFF800000> : vector<2x8xf32>
    %284 = vector.multi_reduction <maximumf>, %283, %cst_48 [2] : vector<2x8x8xf32> to vector<2x8xf32>
    %285 = vector.shape_cast %284 : vector<2x8xf32> to vector<2x8x1xf32>
    %286 = vector.broadcast %285 : vector<2x8x1xf32> to vector<2x8x8xf32>
    %287 = arith.cmpf oge, %283, %286 : vector<2x8x8xf32>
    %c8_i32_49 = arith.constant 8 : i32
    %288 = vector.broadcast %c8_i32_49 : i32 to vector<2x8x8xi32>
    %289 = arith.select %287, %211, %288 : vector<2x8x8xi1>, vector<2x8x8xi32>
    %cst_50 = arith.constant dense<2147483647> : vector<2x8xi32>
    %290 = vector.multi_reduction <minsi>, %289, %cst_50 [2] : vector<2x8x8xi32> to vector<2x8xi32>
    %291 = vector.extract_strided_slice %206 {offsets = [4, 0, 0], sizes = [1, 2, 1], strides = [1, 1, 1]} : vector<8x2x1xi1> to vector<1x2x1xi1>
    %292 = vector.shape_cast %291 : vector<1x2x1xi1> to vector<2x1xi1>
    %293 = vector.shape_cast %292 : vector<2x1xi1> to vector<2x1xi1>
    %294 = vector.broadcast %293 : vector<2x1xi1> to vector<2x8xi1>
    %295 = arith.select %294, %284, %274 : vector<2x8xi1>, vector<2x8xf32>
    %296 = vector.extract_strided_slice %201 {offsets = [10, 0], sizes = [2, 8], strides = [1, 1]} : vector<16x8xf32> to vector<2x8xf32>
    %297 = vector.shape_cast %295 : vector<2x8xf32> to vector<2x1x8xf32>
    %298 = vector.shape_cast %203 : vector<8x8xf32> to vector<1x8x8xf32>
    %299 = vector.broadcast %297 : vector<2x1x8xf32> to vector<2x8x8xf32>
    %300 = vector.broadcast %298 : vector<1x8x8xf32> to vector<2x8x8xf32>
    %301 = arith.addf %299, %300 : vector<2x8x8xf32>
    %302 = vector.shape_cast %296 : vector<2x8xf32> to vector<2x8x1xf32>
    %303 = vector.broadcast %302 : vector<2x8x1xf32> to vector<2x8x8xf32>
    %304 = arith.addf %301, %303 : vector<2x8x8xf32>
    %cst_51 = arith.constant dense<0xFF800000> : vector<2x8xf32>
    %305 = vector.multi_reduction <maximumf>, %304, %cst_51 [2] : vector<2x8x8xf32> to vector<2x8xf32>
    %306 = vector.shape_cast %305 : vector<2x8xf32> to vector<2x8x1xf32>
    %307 = vector.broadcast %306 : vector<2x8x1xf32> to vector<2x8x8xf32>
    %308 = arith.cmpf oge, %304, %307 : vector<2x8x8xf32>
    %c8_i32_52 = arith.constant 8 : i32
    %309 = vector.broadcast %c8_i32_52 : i32 to vector<2x8x8xi32>
    %310 = arith.select %308, %211, %309 : vector<2x8x8xi1>, vector<2x8x8xi32>
    %cst_53 = arith.constant dense<2147483647> : vector<2x8xi32>
    %311 = vector.multi_reduction <minsi>, %310, %cst_53 [2] : vector<2x8x8xi32> to vector<2x8xi32>
    %312 = vector.extract_strided_slice %206 {offsets = [5, 0, 0], sizes = [1, 2, 1], strides = [1, 1, 1]} : vector<8x2x1xi1> to vector<1x2x1xi1>
    %313 = vector.shape_cast %312 : vector<1x2x1xi1> to vector<2x1xi1>
    %314 = vector.shape_cast %313 : vector<2x1xi1> to vector<2x1xi1>
    %315 = vector.broadcast %314 : vector<2x1xi1> to vector<2x8xi1>
    %316 = arith.select %315, %305, %295 : vector<2x8xi1>, vector<2x8xf32>
    %317 = vector.extract_strided_slice %201 {offsets = [12, 0], sizes = [2, 8], strides = [1, 1]} : vector<16x8xf32> to vector<2x8xf32>
    %318 = vector.shape_cast %316 : vector<2x8xf32> to vector<2x1x8xf32>
    %319 = vector.shape_cast %203 : vector<8x8xf32> to vector<1x8x8xf32>
    %320 = vector.broadcast %318 : vector<2x1x8xf32> to vector<2x8x8xf32>
    %321 = vector.broadcast %319 : vector<1x8x8xf32> to vector<2x8x8xf32>
    %322 = arith.addf %320, %321 : vector<2x8x8xf32>
    %323 = vector.shape_cast %317 : vector<2x8xf32> to vector<2x8x1xf32>
    %324 = vector.broadcast %323 : vector<2x8x1xf32> to vector<2x8x8xf32>
    %325 = arith.addf %322, %324 : vector<2x8x8xf32>
    %cst_54 = arith.constant dense<0xFF800000> : vector<2x8xf32>
    %326 = vector.multi_reduction <maximumf>, %325, %cst_54 [2] : vector<2x8x8xf32> to vector<2x8xf32>
    %327 = vector.shape_cast %326 : vector<2x8xf32> to vector<2x8x1xf32>
    %328 = vector.broadcast %327 : vector<2x8x1xf32> to vector<2x8x8xf32>
    %329 = arith.cmpf oge, %325, %328 : vector<2x8x8xf32>
    %c8_i32_55 = arith.constant 8 : i32
    %330 = vector.broadcast %c8_i32_55 : i32 to vector<2x8x8xi32>
    %331 = arith.select %329, %211, %330 : vector<2x8x8xi1>, vector<2x8x8xi32>
    %cst_56 = arith.constant dense<2147483647> : vector<2x8xi32>
    %332 = vector.multi_reduction <minsi>, %331, %cst_56 [2] : vector<2x8x8xi32> to vector<2x8xi32>
    %333 = vector.extract_strided_slice %206 {offsets = [6, 0, 0], sizes = [1, 2, 1], strides = [1, 1, 1]} : vector<8x2x1xi1> to vector<1x2x1xi1>
    %334 = vector.shape_cast %333 : vector<1x2x1xi1> to vector<2x1xi1>
    %335 = vector.shape_cast %334 : vector<2x1xi1> to vector<2x1xi1>
    %336 = vector.broadcast %335 : vector<2x1xi1> to vector<2x8xi1>
    %337 = arith.select %336, %326, %316 : vector<2x8xi1>, vector<2x8xf32>
    %338 = vector.extract_strided_slice %201 {offsets = [14, 0], sizes = [2, 8], strides = [1, 1]} : vector<16x8xf32> to vector<2x8xf32>
    %339 = vector.shape_cast %337 : vector<2x8xf32> to vector<2x1x8xf32>
    %340 = vector.shape_cast %203 : vector<8x8xf32> to vector<1x8x8xf32>
    %341 = vector.broadcast %339 : vector<2x1x8xf32> to vector<2x8x8xf32>
    %342 = vector.broadcast %340 : vector<1x8x8xf32> to vector<2x8x8xf32>
    %343 = arith.addf %341, %342 : vector<2x8x8xf32>
    %344 = vector.shape_cast %338 : vector<2x8xf32> to vector<2x8x1xf32>
    %345 = vector.broadcast %344 : vector<2x8x1xf32> to vector<2x8x8xf32>
    %346 = arith.addf %343, %345 : vector<2x8x8xf32>
    %cst_57 = arith.constant dense<0xFF800000> : vector<2x8xf32>
    %347 = vector.multi_reduction <maximumf>, %346, %cst_57 [2] : vector<2x8x8xf32> to vector<2x8xf32>
    %348 = vector.shape_cast %347 : vector<2x8xf32> to vector<2x8x1xf32>
    %349 = vector.broadcast %348 : vector<2x8x1xf32> to vector<2x8x8xf32>
    %350 = arith.cmpf oge, %346, %349 : vector<2x8x8xf32>
    %c8_i32_58 = arith.constant 8 : i32
    %351 = vector.broadcast %c8_i32_58 : i32 to vector<2x8x8xi32>
    %352 = arith.select %350, %211, %351 : vector<2x8x8xi1>, vector<2x8x8xi32>
    %cst_59 = arith.constant dense<2147483647> : vector<2x8xi32>
    %353 = vector.multi_reduction <minsi>, %352, %cst_59 [2] : vector<2x8x8xi32> to vector<2x8xi32>
    %354 = vector.extract_strided_slice %206 {offsets = [7, 0, 0], sizes = [1, 2, 1], strides = [1, 1, 1]} : vector<8x2x1xi1> to vector<1x2x1xi1>
    %355 = vector.shape_cast %354 : vector<1x2x1xi1> to vector<2x1xi1>
    %356 = vector.shape_cast %355 : vector<2x1xi1> to vector<2x1xi1>
    %357 = vector.broadcast %356 : vector<2x1xi1> to vector<2x8xi1>
    %358 = arith.select %357, %347, %337 : vector<2x8xi1>, vector<2x8xf32>
    %c0_60 = arith.constant 0 : index
    %c0_61 = arith.constant 0 : index
    %359 = vector.load %arg10[%c0_60, %c0_61] : memref<1x8xf32, #tpu.memory_space<vmem>>, vector<1x8xf32>
    %360 = vector.broadcast %359 : vector<1x8xf32> to vector<2x8xf32>
    %361 = arith.addf %358, %360 : vector<2x8xf32>
    %c0_62 = arith.constant 0 : index
    %c0_63 = arith.constant 0 : index
    %362 = vector.load %arg3[%c0_62, %c0_63] : memref<2x1xi32, #tpu.memory_space<vmem>>, vector<2x1xi32>
    %363 = tpu.iota {dimensions = array<i32: 1>} : vector<2x8xi32>
    %cst_64 = arith.constant dense<0xFF800000> : vector<2xf32>
    %364 = vector.multi_reduction <maximumf>, %361, %cst_64 [1] : vector<2x8xf32> to vector<2xf32>
    %365 = vector.shape_cast %364 : vector<2xf32> to vector<2x1xf32>
    %366 = vector.broadcast %365 : vector<2x1xf32> to vector<2x8xf32>
    %367 = arith.cmpf oge, %361, %366 : vector<2x8xf32>
    %c8_i32_65 = arith.constant 8 : i32
    %368 = vector.broadcast %c8_i32_65 : i32 to vector<2x8xi32>
    %369 = arith.select %367, %363, %368 : vector<2x8xi1>, vector<2x8xi32>
    %cst_66 = arith.constant dense<2147483647> : vector<2xi32>
    %370 = vector.multi_reduction <minsi>, %369, %cst_66 [1] : vector<2x8xi32> to vector<2xi32>
    %371 = vector.shape_cast %370 : vector<2xi32> to vector<2x1xi32>
    %372 = tpu.iota {dimensions = array<i32: 1>} : vector<2x8xi32>
    %c-1_i32 = arith.constant -1 : i32
    %373 = vector.broadcast %c-1_i32 : i32 to vector<2x8xi32>
    %c0_i32_67 = arith.constant 0 : i32
    %374 = vector.broadcast %c0_i32_67 : i32 to vector<2x1xi32>
    %375 = vector.broadcast %374 : vector<2x1xi32> to vector<2x8xi32>
    %376 = arith.cmpi eq, %363, %375 : vector<2x8xi32>
    %c0_i32_68 = arith.constant 0 : i32
    %377 = vector.broadcast %c0_i32_68 : i32 to vector<2x8xi32>
    %378 = arith.select %376, %353, %377 : vector<2x8xi1>, vector<2x8xi32>
    %cst_69 = arith.constant dense<0> : vector<2xi32>
    %379 = vector.multi_reduction <add>, %378, %cst_69 [1] : vector<2x8xi32> to vector<2xi32>
    %380 = vector.shape_cast %379 : vector<2xi32> to vector<2x1xi32>
    %c7_i32 = arith.constant 7 : i32
    %381 = vector.broadcast %c7_i32 : i32 to vector<2x1xi32>
    %382 = arith.cmpi eq, %362, %381 : vector<2x1xi32>
    %c7_i32_70 = arith.constant 7 : i32
    %383 = vector.broadcast %c7_i32_70 : i32 to vector<2x1xi32>
    %384 = arith.cmpi sgt, %362, %383 : vector<2x1xi32>
    %385 = arith.select %384, %380, %374 : vector<2x1xi1>, vector<2x1xi32>
    %386 = arith.select %382, %371, %385 : vector<2x1xi1>, vector<2x1xi32>
    %c7_i32_71 = arith.constant 7 : i32
    %387 = vector.broadcast %c7_i32_71 : i32 to vector<2x1xi32>
    %388 = arith.cmpi sge, %362, %387 : vector<2x1xi32>
    %c-1_i32_72 = arith.constant -1 : i32
    %389 = vector.broadcast %c-1_i32_72 : i32 to vector<2x1xi32>
    %390 = arith.select %388, %386, %389 : vector<2x1xi1>, vector<2x1xi32>
    %c7_i32_73 = arith.constant 7 : i32
    %391 = vector.broadcast %c7_i32_73 : i32 to vector<2x8xi32>
    %392 = arith.cmpi eq, %372, %391 : vector<2x8xi32>
    %393 = vector.shape_cast %390 : vector<2x1xi32> to vector<2x1xi32>
    %394 = vector.broadcast %393 : vector<2x1xi32> to vector<2x8xi32>
    %395 = arith.select %392, %394, %373 : vector<2x8xi1>, vector<2x8xi32>
    %396 = vector.broadcast %386 : vector<2x1xi32> to vector<2x8xi32>
    %397 = arith.cmpi eq, %363, %396 : vector<2x8xi32>
    %c0_i32_74 = arith.constant 0 : i32
    %398 = vector.broadcast %c0_i32_74 : i32 to vector<2x8xi32>
    %399 = arith.select %397, %353, %398 : vector<2x8xi1>, vector<2x8xi32>
    %cst_75 = arith.constant dense<0> : vector<2xi32>
    %400 = vector.multi_reduction <add>, %399, %cst_75 [1] : vector<2x8xi32> to vector<2xi32>
    %401 = vector.shape_cast %400 : vector<2xi32> to vector<2x1xi32>
    %c6_i32 = arith.constant 6 : i32
    %402 = vector.broadcast %c6_i32 : i32 to vector<2x1xi32>
    %403 = arith.cmpi eq, %362, %402 : vector<2x1xi32>
    %c6_i32_76 = arith.constant 6 : i32
    %404 = vector.broadcast %c6_i32_76 : i32 to vector<2x1xi32>
    %405 = arith.cmpi sgt, %362, %404 : vector<2x1xi32>
    %406 = arith.select %405, %401, %386 : vector<2x1xi1>, vector<2x1xi32>
    %407 = arith.select %403, %371, %406 : vector<2x1xi1>, vector<2x1xi32>
    %c6_i32_77 = arith.constant 6 : i32
    %408 = vector.broadcast %c6_i32_77 : i32 to vector<2x1xi32>
    %409 = arith.cmpi sge, %362, %408 : vector<2x1xi32>
    %c-1_i32_78 = arith.constant -1 : i32
    %410 = vector.broadcast %c-1_i32_78 : i32 to vector<2x1xi32>
    %411 = arith.select %409, %407, %410 : vector<2x1xi1>, vector<2x1xi32>
    %c6_i32_79 = arith.constant 6 : i32
    %412 = vector.broadcast %c6_i32_79 : i32 to vector<2x8xi32>
    %413 = arith.cmpi eq, %372, %412 : vector<2x8xi32>
    %414 = vector.shape_cast %411 : vector<2x1xi32> to vector<2x1xi32>
    %415 = vector.broadcast %414 : vector<2x1xi32> to vector<2x8xi32>
    %416 = arith.select %413, %415, %395 : vector<2x8xi1>, vector<2x8xi32>
    %417 = vector.broadcast %407 : vector<2x1xi32> to vector<2x8xi32>
    %418 = arith.cmpi eq, %363, %417 : vector<2x8xi32>
    %c0_i32_80 = arith.constant 0 : i32
    %419 = vector.broadcast %c0_i32_80 : i32 to vector<2x8xi32>
    %420 = arith.select %418, %332, %419 : vector<2x8xi1>, vector<2x8xi32>
    %cst_81 = arith.constant dense<0> : vector<2xi32>
    %421 = vector.multi_reduction <add>, %420, %cst_81 [1] : vector<2x8xi32> to vector<2xi32>
    %422 = vector.shape_cast %421 : vector<2xi32> to vector<2x1xi32>
    %c5_i32 = arith.constant 5 : i32
    %423 = vector.broadcast %c5_i32 : i32 to vector<2x1xi32>
    %424 = arith.cmpi eq, %362, %423 : vector<2x1xi32>
    %c5_i32_82 = arith.constant 5 : i32
    %425 = vector.broadcast %c5_i32_82 : i32 to vector<2x1xi32>
    %426 = arith.cmpi sgt, %362, %425 : vector<2x1xi32>
    %427 = arith.select %426, %422, %407 : vector<2x1xi1>, vector<2x1xi32>
    %428 = arith.select %424, %371, %427 : vector<2x1xi1>, vector<2x1xi32>
    %c5_i32_83 = arith.constant 5 : i32
    %429 = vector.broadcast %c5_i32_83 : i32 to vector<2x1xi32>
    %430 = arith.cmpi sge, %362, %429 : vector<2x1xi32>
    %c-1_i32_84 = arith.constant -1 : i32
    %431 = vector.broadcast %c-1_i32_84 : i32 to vector<2x1xi32>
    %432 = arith.select %430, %428, %431 : vector<2x1xi1>, vector<2x1xi32>
    %c5_i32_85 = arith.constant 5 : i32
    %433 = vector.broadcast %c5_i32_85 : i32 to vector<2x8xi32>
    %434 = arith.cmpi eq, %372, %433 : vector<2x8xi32>
    %435 = vector.shape_cast %432 : vector<2x1xi32> to vector<2x1xi32>
    %436 = vector.broadcast %435 : vector<2x1xi32> to vector<2x8xi32>
    %437 = arith.select %434, %436, %416 : vector<2x8xi1>, vector<2x8xi32>
    %438 = vector.broadcast %428 : vector<2x1xi32> to vector<2x8xi32>
    %439 = arith.cmpi eq, %363, %438 : vector<2x8xi32>
    %c0_i32_86 = arith.constant 0 : i32
    %440 = vector.broadcast %c0_i32_86 : i32 to vector<2x8xi32>
    %441 = arith.select %439, %311, %440 : vector<2x8xi1>, vector<2x8xi32>
    %cst_87 = arith.constant dense<0> : vector<2xi32>
    %442 = vector.multi_reduction <add>, %441, %cst_87 [1] : vector<2x8xi32> to vector<2xi32>
    %443 = vector.shape_cast %442 : vector<2xi32> to vector<2x1xi32>
    %c4_i32 = arith.constant 4 : i32
    %444 = vector.broadcast %c4_i32 : i32 to vector<2x1xi32>
    %445 = arith.cmpi eq, %362, %444 : vector<2x1xi32>
    %c4_i32_88 = arith.constant 4 : i32
    %446 = vector.broadcast %c4_i32_88 : i32 to vector<2x1xi32>
    %447 = arith.cmpi sgt, %362, %446 : vector<2x1xi32>
    %448 = arith.select %447, %443, %428 : vector<2x1xi1>, vector<2x1xi32>
    %449 = arith.select %445, %371, %448 : vector<2x1xi1>, vector<2x1xi32>
    %c4_i32_89 = arith.constant 4 : i32
    %450 = vector.broadcast %c4_i32_89 : i32 to vector<2x1xi32>
    %451 = arith.cmpi sge, %362, %450 : vector<2x1xi32>
    %c-1_i32_90 = arith.constant -1 : i32
    %452 = vector.broadcast %c-1_i32_90 : i32 to vector<2x1xi32>
    %453 = arith.select %451, %449, %452 : vector<2x1xi1>, vector<2x1xi32>
    %c4_i32_91 = arith.constant 4 : i32
    %454 = vector.broadcast %c4_i32_91 : i32 to vector<2x8xi32>
    %455 = arith.cmpi eq, %372, %454 : vector<2x8xi32>
    %456 = vector.shape_cast %453 : vector<2x1xi32> to vector<2x1xi32>
    %457 = vector.broadcast %456 : vector<2x1xi32> to vector<2x8xi32>
    %458 = arith.select %455, %457, %437 : vector<2x8xi1>, vector<2x8xi32>
    %459 = vector.broadcast %449 : vector<2x1xi32> to vector<2x8xi32>
    %460 = arith.cmpi eq, %363, %459 : vector<2x8xi32>
    %c0_i32_92 = arith.constant 0 : i32
    %461 = vector.broadcast %c0_i32_92 : i32 to vector<2x8xi32>
    %462 = arith.select %460, %290, %461 : vector<2x8xi1>, vector<2x8xi32>
    %cst_93 = arith.constant dense<0> : vector<2xi32>
    %463 = vector.multi_reduction <add>, %462, %cst_93 [1] : vector<2x8xi32> to vector<2xi32>
    %464 = vector.shape_cast %463 : vector<2xi32> to vector<2x1xi32>
    %c3_i32 = arith.constant 3 : i32
    %465 = vector.broadcast %c3_i32 : i32 to vector<2x1xi32>
    %466 = arith.cmpi eq, %362, %465 : vector<2x1xi32>
    %c3_i32_94 = arith.constant 3 : i32
    %467 = vector.broadcast %c3_i32_94 : i32 to vector<2x1xi32>
    %468 = arith.cmpi sgt, %362, %467 : vector<2x1xi32>
    %469 = arith.select %468, %464, %449 : vector<2x1xi1>, vector<2x1xi32>
    %470 = arith.select %466, %371, %469 : vector<2x1xi1>, vector<2x1xi32>
    %c3_i32_95 = arith.constant 3 : i32
    %471 = vector.broadcast %c3_i32_95 : i32 to vector<2x1xi32>
    %472 = arith.cmpi sge, %362, %471 : vector<2x1xi32>
    %c-1_i32_96 = arith.constant -1 : i32
    %473 = vector.broadcast %c-1_i32_96 : i32 to vector<2x1xi32>
    %474 = arith.select %472, %470, %473 : vector<2x1xi1>, vector<2x1xi32>
    %c3_i32_97 = arith.constant 3 : i32
    %475 = vector.broadcast %c3_i32_97 : i32 to vector<2x8xi32>
    %476 = arith.cmpi eq, %372, %475 : vector<2x8xi32>
    %477 = vector.shape_cast %474 : vector<2x1xi32> to vector<2x1xi32>
    %478 = vector.broadcast %477 : vector<2x1xi32> to vector<2x8xi32>
    %479 = arith.select %476, %478, %458 : vector<2x8xi1>, vector<2x8xi32>
    %480 = vector.broadcast %470 : vector<2x1xi32> to vector<2x8xi32>
    %481 = arith.cmpi eq, %363, %480 : vector<2x8xi32>
    %c0_i32_98 = arith.constant 0 : i32
    %482 = vector.broadcast %c0_i32_98 : i32 to vector<2x8xi32>
    %483 = arith.select %481, %269, %482 : vector<2x8xi1>, vector<2x8xi32>
    %cst_99 = arith.constant dense<0> : vector<2xi32>
    %484 = vector.multi_reduction <add>, %483, %cst_99 [1] : vector<2x8xi32> to vector<2xi32>
    %485 = vector.shape_cast %484 : vector<2xi32> to vector<2x1xi32>
    %c2_i32 = arith.constant 2 : i32
    %486 = vector.broadcast %c2_i32 : i32 to vector<2x1xi32>
    %487 = arith.cmpi eq, %362, %486 : vector<2x1xi32>
    %c2_i32_100 = arith.constant 2 : i32
    %488 = vector.broadcast %c2_i32_100 : i32 to vector<2x1xi32>
    %489 = arith.cmpi sgt, %362, %488 : vector<2x1xi32>
    %490 = arith.select %489, %485, %470 : vector<2x1xi1>, vector<2x1xi32>
    %491 = arith.select %487, %371, %490 : vector<2x1xi1>, vector<2x1xi32>
    %c2_i32_101 = arith.constant 2 : i32
    %492 = vector.broadcast %c2_i32_101 : i32 to vector<2x1xi32>
    %493 = arith.cmpi sge, %362, %492 : vector<2x1xi32>
    %c-1_i32_102 = arith.constant -1 : i32
    %494 = vector.broadcast %c-1_i32_102 : i32 to vector<2x1xi32>
    %495 = arith.select %493, %491, %494 : vector<2x1xi1>, vector<2x1xi32>
    %c2_i32_103 = arith.constant 2 : i32
    %496 = vector.broadcast %c2_i32_103 : i32 to vector<2x8xi32>
    %497 = arith.cmpi eq, %372, %496 : vector<2x8xi32>
    %498 = vector.shape_cast %495 : vector<2x1xi32> to vector<2x1xi32>
    %499 = vector.broadcast %498 : vector<2x1xi32> to vector<2x8xi32>
    %500 = arith.select %497, %499, %479 : vector<2x8xi1>, vector<2x8xi32>
    %501 = vector.broadcast %491 : vector<2x1xi32> to vector<2x8xi32>
    %502 = arith.cmpi eq, %363, %501 : vector<2x8xi32>
    %c0_i32_104 = arith.constant 0 : i32
    %503 = vector.broadcast %c0_i32_104 : i32 to vector<2x8xi32>
    %504 = arith.select %502, %248, %503 : vector<2x8xi1>, vector<2x8xi32>
    %cst_105 = arith.constant dense<0> : vector<2xi32>
    %505 = vector.multi_reduction <add>, %504, %cst_105 [1] : vector<2x8xi32> to vector<2xi32>
    %506 = vector.shape_cast %505 : vector<2xi32> to vector<2x1xi32>
    %c1_i32 = arith.constant 1 : i32
    %507 = vector.broadcast %c1_i32 : i32 to vector<2x1xi32>
    %508 = arith.cmpi eq, %362, %507 : vector<2x1xi32>
    %c1_i32_106 = arith.constant 1 : i32
    %509 = vector.broadcast %c1_i32_106 : i32 to vector<2x1xi32>
    %510 = arith.cmpi sgt, %362, %509 : vector<2x1xi32>
    %511 = arith.select %510, %506, %491 : vector<2x1xi1>, vector<2x1xi32>
    %512 = arith.select %508, %371, %511 : vector<2x1xi1>, vector<2x1xi32>
    %c1_i32_107 = arith.constant 1 : i32
    %513 = vector.broadcast %c1_i32_107 : i32 to vector<2x1xi32>
    %514 = arith.cmpi sge, %362, %513 : vector<2x1xi32>
    %c-1_i32_108 = arith.constant -1 : i32
    %515 = vector.broadcast %c-1_i32_108 : i32 to vector<2x1xi32>
    %516 = arith.select %514, %512, %515 : vector<2x1xi1>, vector<2x1xi32>
    %c1_i32_109 = arith.constant 1 : i32
    %517 = vector.broadcast %c1_i32_109 : i32 to vector<2x8xi32>
    %518 = arith.cmpi eq, %372, %517 : vector<2x8xi32>
    %519 = vector.shape_cast %516 : vector<2x1xi32> to vector<2x1xi32>
    %520 = vector.broadcast %519 : vector<2x1xi32> to vector<2x8xi32>
    %521 = arith.select %518, %520, %500 : vector<2x8xi1>, vector<2x8xi32>
    %522 = vector.broadcast %512 : vector<2x1xi32> to vector<2x8xi32>
    %523 = arith.cmpi eq, %363, %522 : vector<2x8xi32>
    %c0_i32_110 = arith.constant 0 : i32
    %524 = vector.broadcast %c0_i32_110 : i32 to vector<2x8xi32>
    %525 = arith.select %523, %227, %524 : vector<2x8xi1>, vector<2x8xi32>
    %cst_111 = arith.constant dense<0> : vector<2xi32>
    %526 = vector.multi_reduction <add>, %525, %cst_111 [1] : vector<2x8xi32> to vector<2xi32>
    %527 = vector.shape_cast %526 : vector<2xi32> to vector<2x1xi32>
    %c0_i32_112 = arith.constant 0 : i32
    %528 = vector.broadcast %c0_i32_112 : i32 to vector<2x1xi32>
    %529 = arith.cmpi eq, %362, %528 : vector<2x1xi32>
    %c0_i32_113 = arith.constant 0 : i32
    %530 = vector.broadcast %c0_i32_113 : i32 to vector<2x1xi32>
    %531 = arith.cmpi sgt, %362, %530 : vector<2x1xi32>
    %532 = arith.select %531, %527, %512 : vector<2x1xi1>, vector<2x1xi32>
    %533 = arith.select %529, %371, %532 : vector<2x1xi1>, vector<2x1xi32>
    %c0_i32_114 = arith.constant 0 : i32
    %534 = vector.broadcast %c0_i32_114 : i32 to vector<2x1xi32>
    %535 = arith.cmpi sge, %362, %534 : vector<2x1xi32>
    %c-1_i32_115 = arith.constant -1 : i32
    %536 = vector.broadcast %c-1_i32_115 : i32 to vector<2x1xi32>
    %537 = arith.select %535, %533, %536 : vector<2x1xi1>, vector<2x1xi32>
    %c0_i32_116 = arith.constant 0 : i32
    %538 = vector.broadcast %c0_i32_116 : i32 to vector<2x8xi32>
    %539 = arith.cmpi eq, %372, %538 : vector<2x8xi32>
    %540 = vector.shape_cast %537 : vector<2x1xi32> to vector<2x1xi32>
    %541 = vector.broadcast %540 : vector<2x1xi32> to vector<2x8xi32>
    %542 = arith.select %539, %541, %521 : vector<2x8xi1>, vector<2x8xi32>
    %c0_117 = arith.constant 0 : index
    %c0_118 = arith.constant 0 : index
    %543 = vector.load %arg12[%c0_117, %c0_118] : memref<2x8xi32, #tpu.memory_space<vmem>>, vector<2x8xi32>
    tpu.vector_store %arg12[%c0_117, %c0_118], %542 {strides = array<i32>} : memref<2x8xi32, #tpu.memory_space<vmem>>, vector<2x8xi32>,
    return
  }
  func.func @transform_0(%arg0: i32) -> (i32, i32, i32) {
    %c0_i32 = arith.constant 0 : i32
    %c0_i32_0 = arith.constant 0 : i32
    %c0_i32_1 = arith.constant 0 : i32
    %c0_i32_2 = arith.constant 0 : i32
    return %c0_i32, %c0_i32_0, %c0_i32_1 : i32, i32, i32
  }
  func.func @transform_1(%arg0: i32) -> (i32, i32, i32) {
    %c0_i32 = arith.constant 0 : i32
    %c0_i32_0 = arith.constant 0 : i32
    %c0_i32_1 = arith.constant 0 : i32
    %c0_i32_2 = arith.constant 0 : i32
    return %c0_i32, %c0_i32_0, %c0_i32_1 : i32, i32, i32
  }
  func.func @transform_2(%arg0: i32) -> (i32, i32) {
    %c0_i32 = arith.constant 0 : i32
    %c0_i32_0 = arith.constant 0 : i32
    %c0_i32_1 = arith.constant 0 : i32
    return %c0_i32, %c0_i32_0 : i32, i32
  }
  func.func @transform_3(%arg0: i32) -> (i32, i32) {
    %c0_i32 = arith.constant 0 : i32
    %c0_i32_0 = arith.constant 0 : i32
    %c0_i32_1 = arith.constant 0 : i32
    return %c0_i32, %c0_i32_0 : i32, i32
  }
  func.func @transform_4(%arg0: i32) -> (i32, i32) {
    %c0_i32 = arith.constant 0 : i32
    %c0_i32_0 = arith.constant 0 : i32
    %c0_i32_1 = arith.constant 0 : i32
    return %c0_i32, %c0_i32_0 : i32, i32
  }
  func.func @transform_5(%arg0: i32) -> (i32, i32) {
    %c0_i32 = arith.constant 0 : i32
    %c0_i32_0 = arith.constant 0 : i32
    %c0_i32_1 = arith.constant 0 : i32
    return %c0_i32, %c0_i32_0 : i32, i32
  }
  func.func @transform_6(%arg0: i32) -> (i32, i32) {
    %c0_i32 = arith.constant 0 : i32
    %c0_i32_0 = arith.constant 0 : i32
    %c0_i32_1 = arith.constant 0 : i32
    return %c0_i32, %c0_i32_0 : i32, i32
  }
  func.func @transform_7(%arg0: i32) -> (i32, i32) {
    %c0_i32 = arith.constant 0 : i32
    %c0_i32_0 = arith.constant 0 : i32
    %c0_i32_1 = arith.constant 0 : i32
    return %c0_i32, %c0_i32_0 : i32, i32
  }
  func.func @transform_8(%arg0: i32) -> (i32, i32) {
    %c0_i32 = arith.constant 0 : i32
    %c0_i32_0 = arith.constant 0 : i32
    %c0_i32_1 = arith.constant 0 : i32
    return %c0_i32, %c0_i32_0 : i32, i32
  }
  func.func @transform_9(%arg0: i32) -> (i32, i32) {
    %c0_i32 = arith.constant 0 : i32
    %c0_i32_0 = arith.constant 0 : i32
    %c0_i32_1 = arith.constant 0 : i32
    return %c0_i32, %c0_i32_0 : i32, i32
  }
  func.func @transform_10(%arg0: i32) -> (i32, i32) {
    %c0_i32 = arith.constant 0 : i32
    %c0_i32_0 = arith.constant 0 : i32
    %c0_i32_1 = arith.constant 0 : i32
    return %c0_i32, %c0_i32_0 : i32, i32
  }
  func.func @transform_11(%arg0: i32) -> (i32, i32) {
    %c0_i32 = arith.constant 0 : i32
    %c0_i32_0 = arith.constant 0 : i32
    %c0_i32_1 = arith.constant 0 : i32
    return %c0_i32, %c0_i32_0 : i32, i32
  }
}

</mosaic_0001>

<bundles_post_ra>
// kernel: model_forward.1
= control target key start
LH: loop header
LB: loop body
LE: loop exit
PB: predicated region body
PF: predicated region fallthrough
CT: control target
= control target key end

     0   :  { %v41_v0 = vlaneseq  ;;  %v2877_v6 = vmov 0.0   ;;  %s3856_s0 = inlined_call_operand.vmem [shape: s32[2,8,2], index: 0, kind: input, shape index: {}]   ;;  %s3857_s1 = inlined_call_operand.vmem [shape: s32[8,2,1], index: 1, kind: input, shape index: {}]   ;;  %s3858_s2 = inlined_call_operand.vmem [shape: s32[2,1], index: 2, kind: input, shape index: {}]   ;;  %s3859_s3 = inlined_call_operand.vmem [shape: f32[64,256], index: 3, kind: input, shape index: {}]   ;;  %s3860_s4 = inlined_call_operand.vmem [shape: f32[64,256], index: 4, kind: input, shape index: {}]   ;;  %s3861_s5 = inlined_call_operand.vmem [shape: f32[64,8], index: 5, kind: input, shape index: {}]   ;;  %s3862_s6 = inlined_call_operand.vmem [shape: f32[1,8], index: 6, kind: input, shape index: {}]   ;;  %s3863_s7 = inlined_call_operand.vmem [shape: f32[8,8], index: 7, kind: input, shape index: {}]   ;;  %s3864_s8 = inlined_call_operand.vmem [shape: f32[1,8], index: 8, kind: input, shape index: {}]   ;;  %s3865_s9 = inlined_call_operand.vmem [shape: f32[1,8], index: 9, kind: input, shape index: {}]   ;;  %s3866_s10 = inlined_call_operand.vmem [shape: f32[16,8], index: 10, kind: output, shape index: {0}]   ;;  %s3867_s11 = inlined_call_operand.hbm [shape: s32[2,8], index: 11, kind: output, shape index: {1}]  }
   0x1   :  { %v336_v1 = vld [vmem:[%s3860_s4 + $0x8] sm:$0xff]  ;;  %v2949_v2 = vld [vmem:[%s3856_s0] sm:$0xff]  ;;  %v338_v3 = vld [vmem:[%s3860_s4 + $0x18] sm:$0xff]  ;;  %418 = vmatprep.mubr.f32.mxu1 %v2877_v6  ;;  %322 = vmatprep.mubr.f32.mxu0 %v2877_v6 }
   0x2   :  { %v196_v4 = vld [vmem:[%s3859_s3 + $0x8] sm:$0xff]  ;;  %v198_v5 = vld [vmem:[%s3859_s3 + $0x18] sm:$0xff]  ;;  %v2963_v7 = vshrl.u32 %v41_v0, 7  ;;  %v2965_v8 = vpack.c.bf16 %v338_v3, %v336_v1  ;;  %v335_v10 = vld [vmem:[%s3860_s4] sm:$0xff] }
   0x3   :  { %v2589_v9 = vpack.c.bf16 %v198_v5, %v196_v4  ;;  %v337_v11 = vld [vmem:[%s3860_s4 + $0x10] sm:$0xff]  ;;  %v195_v12 = vld [vmem:[%s3859_s3] sm:$0xff]  ;;  %v340_v15 = vld [vmem:[%s3860_s4 + $0x28] sm:$0xff] }
   0x4   :  { %v2976_v13 = vpack.c.bf16 %v337_v11, %v335_v10  ;;  %v197_v14 = vld [vmem:[%s3859_s3 + $0x10] sm:$0xff]  ;;  %v342_v16 = vld [vmem:[%s3860_s4 + $0x38] sm:$0xff]  ;;  %v2988_v17 = vsub.s32 0, %v2963_v7  ;;  %v2991_v18 = vsub.s32 2, %v2963_v7  ;;  %v2994_v19 = vsub.s32 3, %v2963_v7  ;;  %2606 = vmatprep.subr.bf16.mxu1 %v2965_v8  ;;  %v200_v20 = vld [vmem:[%s3859_s3 + $0x28] sm:$0xff] }
   0x5   :  { %2590 = vmatprep.subr.bf16.mxu0 %v2589_v9  ;;  %v202_v21 = vld [vmem:[%s3859_s3 + $0x38] sm:$0xff]  ;;  %v339_v22 = vld [vmem:[%s3860_s4 + $0x20] sm:$0xff]  ;;  %v3007_v23 = vsub.s32 1, %v2963_v7  ;;  %v2591_v24 = vpack.c.bf16 %v197_v14, %v195_v12  ;;  %v341_v25 = vld [vmem:[%s3860_s4 + $0x30] sm:$0xff]  ;;  %v3045_v38 = vpack.c.bf16 %v342_v16, %v340_v15 }
   0x6   :  { %2608 = vmatpush1.bf16.msra.mxu1 %v2976_v13  ;;  %v199_v26 = vld [vmem:[%s3859_s3 + $0x20] sm:$0xff]  ;;  %v201_v27 = vld [vmem:[%s3859_s3 + $0x30] sm:$0xff]  ;;  %v60_v28 = vrot.slane %v2949_v2, %v2991_v18  ;;  %v46_v29 = vrot.slane %v2949_v2, %v2988_v17  ;;  %v344_v30 = vld [vmem:[%s3860_s4 + $0x48] sm:$0xff]  ;;  %v67_v33 = vrot.slane %v2949_v2, %v2994_v19  ;;  %v2593_v39 = vpack.c.bf16 %v202_v21, %v200_v20 }
   0x7   :  { %v346_v31 = vld [vmem:[%s3860_s4 + $0x58] sm:$0xff]  ;;  %v204_v32 = vld [vmem:[%s3859_s3 + $0x48] sm:$0xff]  ;;  %2592 = vmatpush1.bf16.msra.mxu0 %v2591_v24  ;;  %v343_v35 = vld [vmem:[%s3860_s4 + $0x40] sm:$0xff]  ;;  %v53_v37 = vrot.slane %v2949_v2, %v3007_v23 }
   0x8   :  { %v206_v34 = vld [vmem:[%s3859_s3 + $0x58] sm:$0xff]  ;;  %v345_v36 = vld [vmem:[%s3860_s4 + $0x50] sm:$0xff]  ;;  %62 = vbcast.lane.b32.xlu1 %v60_v28, 256  ;;  %48 = vbcast.lane.b32.xlu0 %v46_v29, 256  ;;  %v203_v40 = vld [vmem:[%s3859_s3 + $0x40] sm:$0xff] }
   0x9   :  { %v205_v41 = vld [vmem:[%s3859_s3 + $0x50] sm:$0xff] }
   0xa   :  { %17 = vsyncpa [#allocation3], 0  ;;  %v3056_v42 = vld [vmem:[%s3856_s0 + $0x8] sm:$0xff]  ;;  %v3058_v43 = vpack.c.bf16 %v341_v25, %v339_v22  ;;  %v2595_v44 = vpack.c.bf16 %v201_v27, %v199_v26  ;;  %v3060_v45 = vpack.c.bf16 %v346_v31, %v344_v30  ;;  %v2597_v46 = vpack.c.bf16 %v206_v34, %v204_v32  ;;  %2610 = vmatprep.subr.bf16.mxu1 %v3045_v38  ;;  %v350_v48 = vld [vmem:[%s3860_s4 + $0x78] sm:$0xff] }
   0xb   :  { %v348_v47 = vld [vmem:[%s3860_s4 + $0x68] sm:$0xff]  ;;  %2594 = vmatprep.subr.bf16.mxu0 %v2593_v39  ;;  %v210_v50 = vld [vmem:[%s3859_s3 + $0x78] sm:$0xff]  ;;  %v3076_v51 = vpack.c.bf16 %v345_v36, %v343_v35  ;;  %v2599_v52 = vpack.c.bf16 %v205_v41, %v203_v40  ;;  %v347_v53 = vld [vmem:[%s3860_s4 + $0x60] sm:$0xff]  ;;  %v117_v54 = vrot.slane %v3056_v42, %v3007_v23  ;;  %v110_v55 = vrot.slane %v3056_v42, %v2988_v17 }
   0xc   :  { %v208_v49 = vld [vmem:[%s3859_s3 + $0x68] sm:$0xff]  ;;  %2612 = vmatpush1.bf16.msra.mxu1 %v3058_v43  ;;  %2596 = vmatpush1.bf16.msra.mxu0 %v2595_v44  ;;  %v349_v56 = vld [vmem:[%s3860_s4 + $0x70] sm:$0xff]  ;;  %v207_v57 = vld [vmem:[%s3859_s3 + $0x60] sm:$0xff]  ;;  %v3095_v59 = vpack.c.bf16 %v350_v48, %v348_v47  ;;  %v131_v63 = vrot.slane %v3056_v42, %v2994_v19  ;;  %v124_v1 = vrot.slane %v3056_v42, %v2991_v18  ;;  %v3119_v10 = vand.u32 127, %v41_v0 }
   0xd   :  { %69 = vbcast.lane.b32.xlu1 %v67_v33, 256  ;;  %55 = vbcast.lane.b32.xlu0 %v53_v37, 256  ;;  %v209_v58 = vld [vmem:[%s3859_s3 + $0x70] sm:$0xff]  ;;  %v2601_v60 = vpack.c.bf16 %v210_v50, %v208_v49  ;;  %v3098_v61 = vpack.c.bf16 %v349_v56, %v347_v53  ;;  %v2878_v11 = vmov 1983009808   ;;  %vm253_vm12 = vcmask 523264  }
   0xe   :  { %2614 = vmatprep.subr.bf16.mxu1 %v3060_v45  ;;  %2598 = vmatprep.subr.bf16.mxu0 %v2597_v46  ;;  %v2603_v62 = vpack.c.bf16 %v209_v58, %v207_v57  ;;  %v222_v12 = vunpack.c.l.s4 %v2878_v11  ;;  %v3158_v39 = vsub.s32 4, %v2963_v7  ;;  %s2879_s3 = smov 64   ;;  %v3164_v44 = vsub.s32 6, %v2963_v7 }
   0xf   :  { %v3173_v53 = vsub.s32 5, %v2963_v7  ;;  %v3179_v58 = vsub.s32 7, %v2963_v7 }
  0x10   :  { %2616 = vmatpush1.bf16.msra.mxu1 %v3076_v51  ;;  %2600 = vmatpush1.bf16.msra.mxu0 %v2599_v52  ;;  %v223_v16 = vunpack.c.0.s8 %v222_v12  ;;  %v74_v41 = vrot.slane %v2949_v2, %v3158_v39  ;;  %v88_v46 = vrot.slane %v2949_v2, %v3164_v44  ;;  %v138_v47 = vrot.slane %v3056_v42, %v3158_v39 }
  0x11   :  { %119 = vbcast.lane.b32.xlu1 %v117_v54, 256  ;;  %112 = vbcast.lane.b32.xlu0 %v110_v55, 256  ;;  %v152_v48 = vrot.slane %v3056_v42, %v3164_v44  ;;  %v81_v57 = vrot.slane %v2949_v2, %v3173_v53 }
  0x12   :  { %2618 = vmatprep.subr.bf16.mxu1 %v3095_v59  ;;  %2602 = vmatprep.subr.bf16.mxu0 %v2601_v60  ;;  %v3132_v24 = vsub.s32 %v223_v16, %v2963_v7  ;;  %v95_v60 = vrot.slane %v2949_v2, %v3179_v58 }
  0x14   :  { %2620 = vmatpush1.bf16.msra.mxu1 %v3098_v61  ;;  %2604 = vmatpush1.bf16.msra.mxu0 %v2603_v62  ;;  %v145_v62 = vrot.slane %v3056_v42, %v3173_v53 }
  0x15   :  { %133 = vbcast.lane.b32.xlu1 %v131_v63, 256  ;;  %126 = vbcast.lane.b32.xlu0 %v124_v1, 256  ;;  %v159_v63 = vrot.slane %v3056_v42, %v3179_v58 }
  0x16   :  { %2622 = vmatprep.subr.bf16.mxu0 %v2965_v8  ;;  %2638 = vmatprep.subr.bf16.mxu1 %v2965_v8 }
  0x17   :  { %419 = vmatmul.mubr.f32.vlgmr.msra.gmra.mrb[0].mxu1 %v2877_v6 }
  0x18   :  { %2640 = vmatpush1.bf16.msra.mxu1 %v2976_v13  ;;  %640 = vmatprep.mubr.f32.mxu1 %v2877_v6 }
  0x19   :  { %2642 = vmatprep.subr.bf16.mxu1 %v3045_v38 }
  0x1c   :  { %2644 = vmatpush1.bf16.msra.mxu1 %v3058_v43 }
  0x1d   :  { %2646 = vmatprep.subr.bf16.mxu1 %v3060_v45 }
  0x20   :  { %2648 = vmatpush1.bf16.msra.mxu1 %v3076_v51 }
  0x21   :  { %2650 = vmatprep.subr.bf16.mxu1 %v3095_v59 }
  0x24   :  { %2652 = vmatpush1.bf16.msra.mxu1 %v3098_v61 }
  0x25   :  { %2670 = vmatprep.subr.bf16.mxu1 %v2965_v8 }
  0x7a   :  { %v63_v3 = vpop.permute.xlu1 %62  ;;  %v49_v4 = vpop.permute.xlu0 %48 }
  0x7b   :  { %vm99_vm3 = vcmp.eq.s32.totalorder %v3119_v10, %v49_v4  ;;  %vm101_vm9 = vcmp.eq.s32.totalorder %v3119_v10, %v63_v3 }
  0x7f   :  { %v70_v5 = vpop.permute.xlu1 %69  ;;  %v56_v9 = vpop.permute.xlu0 %55 }
  0x80   :  { %vm100_vm0 = vcmp.eq.s32.totalorder %v3119_v10, %v56_v9  ;;  %vm102_vm6 = vcmp.eq.s32.totalorder %v3119_v10, %v70_v5 }
  0x83   :  { %v120_v14 = vpop.permute.xlu1 %119  ;;  %v113_v15 = vpop.permute.xlu0 %112 }
  0x84   :  { %vm164_vm1 = vcmp.eq.s32.totalorder %v3119_v10, %v120_v14  ;;  %vm163_vm2 = vcmp.eq.s32.totalorder %v3119_v10, %v113_v15 }
  0x85   :  { %vm172_vm4 = vmor %vm100_vm0, %vm164_vm1 }
  0x86   :  { %vm171_vm5 = vmor %vm99_vm3, %vm163_vm2  ;;  %v2523_v20 = vsel %vm172_vm4, 1.0, %v2877_v6 }
  0x87   :  { %v2522_v0 = vsel %vm171_vm5, 1.0, %v2877_v6  ;;  %v134_v21 = vpop.permute.xlu1 %133  ;;  %v127_v22 = vpop.permute.xlu0 %126 }
  0x88   :  { %vm166_vm7 = vcmp.eq.s32.totalorder %v3119_v10, %v134_v21  ;;  %vm165_vm8 = vcmp.eq.s32.totalorder %v3119_v10, %v127_v22  ;;  %v219_v25 = vcombine.low %v2522_v0, %v2523_v20 }
  0x89   :  { %vm174_vm10 = vmor %vm102_vm6, %vm166_vm7 }
  0x8a   :  { %v2525_v26 = vsel %vm174_vm10, 1.0, %v2877_v6  ;;  %vm173_vm11 = vmor %vm101_vm9, %vm165_vm8  ;;  %v227_v29 = vrot.slane %v219_v25, %v3132_v24  ;;  %vm1264_vm9 = vcmask 261120   ;;  %vm1286_vm10 = vcmask 1041408  }
  0x8b   :  { %v2524_v27 = vsel %vm173_vm11, 1.0, %v2877_v6  ;;  %vm1288_vm11 = vcmask 1043456  }
  0x8c   :  { %v220_v28 = vcombine.low %v2524_v27, %v2525_v26 }
  0x8e   :  { %v234_v30 = vrot.slane %v220_v28, %v3132_v24 }
  0x90   :  { %v235_v31 = vcombine.low %v227_v29, %v234_v30 }
  0x92   :  { %2530 = vmatmul.mubr.msk.f32.vlgmr.msra.gmra.mrb[0].mxu0 %vm253_vm12, %v235_v31 }
  0x93   :  { %328 = vmatprep.mubr.f32.mxu0 %v2877_v6  ;;  %2624 = vmatpush1.bf16.msra.mxu0 %v2976_v13 }
  0x94   :  { %2626 = vmatprep.subr.bf16.mxu0 %v3045_v38 }
  0x97   :  { %2628 = vmatpush1.bf16.msra.mxu0 %v3058_v43 }
  0x98   :  { %2630 = vmatprep.subr.bf16.mxu0 %v3060_v45 }
  0x9b   :  { %2632 = vmatpush1.bf16.msra.mxu0 %v3076_v51 }
  0x9c   :  { %2634 = vmatprep.subr.bf16.mxu0 %v3095_v59 }
  0x9f   :  { %2636 = vmatpush1.bf16.msra.mxu0 %v3098_v61 }
  0xa0   :  { %2654 = vmatprep.subr.bf16.mxu0 %v2965_v8 }
  0xea   :  { %v420_v32 = vpop.f32.mrb[0].mxu1 }
  0xeb   :  { %v422_v33 = vpop.f32.mrb[1].mxu1 }
 0x165   :  { %v3148_v34 = vpop.f32.mrb[0].mxu0 }
 0x166   :  { %v425_v35 = vadd.f32 %v420_v32, %v3148_v34  ;;  %v3151_v36 = vpop.f32.mrb[1].mxu0 }
 0x167   :  { %v3154_v37 = vadd.f32 %v422_v33, %v3151_v36 }
 0x168   :  { %v2532_v49 = vmul.f32 -1.442695, %v425_v35 }
 0x169   :  { %2757 = vtanh.f32 %v3154_v37  ;;  %v2533_v30 = vmul.f32 -1.442695, %v3154_v37 }
 0x16a   :  { %2759 = vpow2.f32 %v2532_v49 }
 0x173   :  { %v2758_v40 = vpop.eup %2757 }
 0x174   :  { %442 = vrot.lane.b32.xlu0 %v2758_v40, %s2879_s3  ;;  %v2760_v50 = vpop.eup %2759 }
 0x175   :  { %v433_v52 = vadd.f32 1.0, %v2760_v50 }
 0x177   :  { %2761 = vrcp.f32 %v433_v52 }
 0x178   :  { %76 = vbcast.lane.b32.xlu0 %v74_v41, 256 }
 0x17c   :  { %90 = vbcast.lane.b32.xlu0 %v88_v46, 256 }
 0x180   :  { %140 = vbcast.lane.b32.xlu0 %v138_v47, 256 }
 0x181   :  { %v2762_v54 = vpop.eup %2761 }
 0x182   :  { %v440_v4 = vmul.f32 0.0, %v2762_v54 }
 0x184   :  { %154 = vbcast.lane.b32.xlu0 %v152_v48, 256 }
 0x1e6   :  { %v443_v55 = vpop.permute.xlu0 %442 }
 0x1e7   :  { %v445_v56 = vmul.f32 %v2762_v54, %v443_v55 }
 0x1e9   :  { %447 = vrot.lane.b32.xlu1 %v445_v56, %s2879_s3 }
 0x1ea   :  { %v77_v1 = vpop.permute.xlu0 %76 }
 0x1eb   :  { %vm103_vm13 = vcmp.eq.s32.totalorder %v3119_v10, %v77_v1 }
 0x1ed   :  { %83 = vbcast.lane.b32.xlu1 %v81_v57, 256 }
 0x1ee   :  { %v91_v3 = vpop.permute.xlu0 %90 }
 0x1ef   :  { %vm105_vm15 = vcmp.eq.s32.totalorder %v3119_v10, %v91_v3 }
 0x1f1   :  { %97 = vbcast.lane.b32.xlu1 %v95_v60, 256 }
 0x1f2   :  { %v141_v11 = vpop.permute.xlu0 %140 }
 0x1f3   :  { %vm167_vm14 = vcmp.eq.s32.totalorder %v3119_v10, %v141_v11 }
 0x1f4   :  { %vm175_vm0 = vmor %vm103_vm13, %vm167_vm14  ;;  %vm1290_vm13 = vcmask 1045504   ;;  %vm1391_vm14 = vcmask 64512  }
 0x1f5   :  { %147 = vbcast.lane.b32.xlu1 %v145_v62, 256  ;;  %v2526_v16 = vsel %vm175_vm0, 1.0, %v2877_v6  ;;  %vm1523_vm0 = vcmask 1041409  }
 0x1f6   :  { %v155_v2 = vpop.permute.xlu0 %154 }
 0x1f7   :  { %vm169_vm1 = vcmp.eq.s32.totalorder %v3119_v10, %v155_v2 }
 0x1f8   :  { %vm177_vm4 = vmor %vm105_vm15, %vm169_vm1 }
 0x1f9   :  { %161 = vbcast.lane.b32.xlu1 %v159_v63, 256  ;;  %v2528_v22 = vsel %vm177_vm4, 1.0, %v2877_v6 }
 0x25b   :  { %v448_v5 = vpop.permute.xlu1 %447 }
 0x25c   :  { %v3187_v9 = vadd.f32 %v448_v5, %v440_v4 }
 0x25e   :  { %2763 = vtanh.f32 %v3187_v9  ;;  %v553_v63 = vrot.slane %v3187_v9, 6 }
 0x25f   :  { %v84_v12 = vpop.permute.xlu1 %83  ;;  %2765 = vpow2.f32 %v2533_v30 }
 0x260   :  { %vm104_vm2 = vcmp.eq.s32.totalorder %v3119_v10, %v84_v12 }
 0x263   :  { %v98_v14 = vpop.permute.xlu1 %97 }
 0x264   :  { %vm106_vm6 = vcmp.eq.s32.totalorder %v3119_v10, %v98_v14 }
 0x267   :  { %v148_v42 = vpop.permute.xlu1 %147 }
 0x268   :  { %v2764_v15 = vpop.eup %2763  ;;  %vm168_vm3 = vcmp.eq.s32.totalorder %v3119_v10, %v148_v42 }
 0x269   :  { %453 = vrot.lane.b32.xlu0 %v2764_v15, %s2879_s3  ;;  %vm176_vm5 = vmor %vm104_vm2, %vm168_vm3  ;;  %v2766_v31 = vpop.eup %2765 }
 0x26a   :  { %v2527_v20 = vsel %vm176_vm5, 1.0, %v2877_v6  ;;  %v434_v32 = vadd.f32 1.0, %v2766_v31 }
 0x26b   :  { %v236_v0 = vcombine.low %v2526_v16, %v2527_v20  ;;  %v162_v21 = vpop.permute.xlu1 %161 }
 0x26c   :  { %vm170_vm7 = vcmp.eq.s32.totalorder %v3119_v10, %v162_v21  ;;  %2767 = vrcp.f32 %v434_v32 }
 0x26d   :  { %vm178_vm8 = vmor %vm106_vm6, %vm170_vm7  ;;  %v244_v26 = vrot.slane %v236_v0, %v3132_v24 }
 0x26e   :  { %v2529_v25 = vsel %vm178_vm8, 1.0, %v2877_v6 }
 0x26f   :  { %v237_v27 = vcombine.low %v2528_v22, %v2529_v25 }
 0x271   :  { %v251_v28 = vrot.slane %v237_v27, %v3132_v24 }
 0x273   :  { %v252_v29 = vcombine.low %v244_v26, %v251_v28 }
 0x275   :  { %2531 = vmatmul.mubr.msk.f32.gmra.mrb[2].mxu0 %vm253_vm12, %v252_v29 }
 0x276   :  { %524 = vmatprep.mubr.f32.mxu0 %v2877_v6  ;;  %v2768_v33 = vpop.eup %2767 }
 0x2db   :  { %v454_v35 = vpop.permute.xlu0 %453 }
 0x2dc   :  { %v3208_v40 = vmul.f32 %v2768_v33, %v454_v35 }
 0x2de   :  { %2534 = vmatmul.mubr.msk.f32.vlgmr.msra.gmra.mrb[4].mxu0 %vm253_vm12, %v3208_v40 }
 0x2df   :  { %2656 = vmatpush1.bf16.msra.mxu0 %v2976_v13  ;;  %756 = vmatprep.mubr.f32.mxu0 %v2877_v6 }
 0x2e0   :  { %2658 = vmatprep.subr.bf16.mxu0 %v3045_v38 }
 0x2e3   :  { %2660 = vmatpush1.bf16.msra.mxu0 %v3058_v43 }
 0x2e4   :  { %2662 = vmatprep.subr.bf16.mxu0 %v3060_v45 }
 0x2e7   :  { %2664 = vmatpush1.bf16.msra.mxu0 %v3076_v51 }
 0x2e8   :  { %2666 = vmatprep.subr.bf16.mxu0 %v3095_v59 }
 0x2eb   :  { %2668 = vmatpush1.bf16.msra.mxu0 %v3098_v61 }
 0x2ec   :  { %2686 = vmatprep.subr.bf16.mxu0 %v2965_v8 }
 0x348   :  { %v3221_v24 = vpop.f32.mrb[2].mxu0 }
 0x349   :  { %v3223_v37 = vpop.f32.mrb[3].mxu0 }
 0x3b1   :  { %v526_v41 = vpop.f32.mrb[4].mxu0 }
 0x3b2   :  { %v533_v46 = vrot.slane %v526_v41, 6  ;;  %v528_v47 = vpop.f32.mrb[5].mxu0 }
 0x3b3   :  { %v534_v48 = vrot.slane %v528_v47, 6 }
 0x3b4   :  { %v537_v49 = vadd.f32 %v533_v46, %v3148_v34 }
 0x3b5   :  { %v538_v50 = vadd.f32 %v534_v48, %v3151_v36 }
 0x3b6   :  { %v2535_v54 = vmul.f32 -1.442695, %v537_v49 }
 0x3b7   :  { %2769 = vtanh.f32 %v538_v50  ;;  %v2536_v11 = vmul.f32 -1.442695, %v538_v50 }
 0x3b8   :  { %2771 = vpow2.f32 %v2535_v54 }
 0x3c1   :  { %v2770_v52 = vpop.eup %2769 }
 0x3c2   :  { %557 = vrot.lane.b32.xlu1 %v2770_v52, %s2879_s3  ;;  %v2772_v55 = vpop.eup %2771 }
 0x3c3   :  { %v545_v56 = vadd.f32 1.0, %v2772_v55 }
 0x3c5   :  { %2773 = vrcp.f32 %v545_v56 }
 0x3cf   :  { %v2774_v57 = vpop.eup %2773 }
 0x3d0   :  { %v555_v1 = vmul.f32 %v2774_v57, %v553_v63 }
 0x434   :  { %v558_v60 = vpop.permute.xlu1 %557 }
 0x435   :  { %v560_v62 = vmul.f32 %v2774_v57, %v558_v60 }
 0x437   :  { %562 = vrot.lane.b32.xlu0 %v560_v62, %s2879_s3 }
 0x4a9   :  { %v563_v3 = vpop.permute.xlu0 %562 }
 0x4aa   :  { %v565_v4 = vadd.f32 %v563_v3, %v555_v1 }
 0x4ac   :  { %2775 = vtanh.f32 %v565_v4  ;;  %v669_v33 = vrot.slane %v565_v4, 6 }
 0x4ad   :  { %2777 = vpow2.f32 %v2536_v11 }
 0x4b6   :  { %v2776_v5 = vpop.eup %2775 }
 0x4b7   :  { %568 = vrot.lane.b32.xlu1 %v2776_v5, %s2879_s3  ;;  %v2778_v12 = vpop.eup %2777 }
 0x4b8   :  { %v546_v2 = vadd.f32 1.0, %v2778_v12 }
 0x4ba   :  { %2779 = vrcp.f32 %v546_v2 }
 0x4c4   :  { %v2780_v14 = vpop.eup %2779 }
 0x529   :  { %v569_v42 = vpop.permute.xlu1 %568 }
 0x52a   :  { %v3231_v15 = vmul.f32 %v2780_v14, %v569_v42 }
 0x52c   :  { %v573_v16 = vrot.slane %v3231_v15, 2 }
 0x52e   :  { %2537 = vmatmul.mubr.msk.f32.vlgmr.msra.gmra.mrb[2].mxu1 %vm253_vm12, %v573_v16 }
 0x52f   :  { %2672 = vmatpush1.bf16.msra.mxu1 %v2976_v13  ;;  %872 = vmatprep.mubr.f32.mxu1 %v2877_v6 }
 0x530   :  { %2674 = vmatprep.subr.bf16.mxu1 %v3045_v38 }
 0x533   :  { %2676 = vmatpush1.bf16.msra.mxu1 %v3058_v43 }
 0x534   :  { %2678 = vmatprep.subr.bf16.mxu1 %v3060_v45 }
 0x537   :  { %2680 = vmatpush1.bf16.msra.mxu1 %v3076_v51 }
 0x538   :  { %2682 = vmatprep.subr.bf16.mxu1 %v3095_v59 }
 0x53b   :  { %2684 = vmatpush1.bf16.msra.mxu1 %v3098_v61 }
 0x53c   :  { %2702 = vmatprep.subr.bf16.mxu1 %v2965_v8 }
 0x601   :  { %v642_v9 = vpop.f32.mrb[2].mxu1 }
 0x602   :  { %v649_v20 = vrot.slane %v642_v9, 4  ;;  %v644_v0 = vpop.f32.mrb[3].mxu1 }
 0x603   :  { %v650_v21 = vrot.slane %v644_v0, 4 }
 0x604   :  { %v653_v22 = vadd.f32 %v649_v20, %v3148_v34 }
 0x605   :  { %v654_v25 = vadd.f32 %v650_v21, %v3151_v36 }
 0x606   :  { %v2538_v27 = vmul.f32 -1.442695, %v653_v22 }
 0x607   :  { %2781 = vtanh.f32 %v654_v25  ;;  %v2539_v48 = vmul.f32 -1.442695, %v654_v25 }
 0x608   :  { %2783 = vpow2.f32 %v2538_v27 }
 0x611   :  { %v2782_v26 = vpop.eup %2781 }
 0x612   :  { %673 = vrot.lane.b32.xlu0 %v2782_v26, %s2879_s3  ;;  %v2784_v28 = vpop.eup %2783 }
 0x613   :  { %v661_v29 = vadd.f32 1.0, %v2784_v28 }
 0x615   :  { %2785 = vrcp.f32 %v661_v29 }
 0x61f   :  { %v2786_v30 = vpop.eup %2785 }
 0x620   :  { %v671_v35 = vmul.f32 %v2786_v30, %v669_v33 }
 0x684   :  { %v674_v31 = vpop.permute.xlu0 %673 }
 0x685   :  { %v676_v32 = vmul.f32 %v2786_v30, %v674_v31 }
 0x687   :  { %678 = vrot.lane.b32.xlu1 %v676_v32, %s2879_s3 }
 0x6f9   :  { %v679_v41 = vpop.permute.xlu1 %678 }
 0x6fa   :  { %v681_v46 = vadd.f32 %v679_v41, %v671_v35 }
 0x6fc   :  { %2787 = vtanh.f32 %v681_v46  ;;  %v785_v42 = vrot.slane %v681_v46, 6 }
 0x6fd   :  { %2789 = vpow2.f32 %v2539_v48 }
 0x706   :  { %v2788_v47 = vpop.eup %2787 }
 0x707   :  { %684 = vrot.lane.b32.xlu0 %v2788_v47, %s2879_s3  ;;  %v2790_v49 = vpop.eup %2789 }
 0x708   :  { %v662_v50 = vadd.f32 1.0, %v2790_v49 }
 0x70a   :  { %2791 = vrcp.f32 %v662_v50 }
 0x714   :  { %v2792_v52 = vpop.eup %2791 }
 0x779   :  { %v685_v54 = vpop.permute.xlu0 %684 }
 0x77a   :  { %v3249_v55 = vmul.f32 %v2792_v52, %v685_v54 }
 0x77c   :  { %v689_v56 = vrot.slane %v3249_v55, 4 }
 0x77e   :  { %2540 = vmatmul.mubr.msk.f32.vlgmr.msra.gmra.mrb[6].mxu0 %vm253_vm12, %v689_v56 }
 0x77f   :  { %2688 = vmatpush1.bf16.msra.mxu0 %v2976_v13  ;;  %981 = vmatprep.mubr.f32.mxu0 %v2877_v6 }
 0x780   :  { %2690 = vmatprep.subr.bf16.mxu0 %v3045_v38 }
 0x783   :  { %2692 = vmatpush1.bf16.msra.mxu0 %v3058_v43 }
 0x784   :  { %2694 = vmatprep.subr.bf16.mxu0 %v3060_v45 }
 0x787   :  { %2696 = vmatpush1.bf16.msra.mxu0 %v3076_v51 }
 0x788   :  { %2698 = vmatprep.subr.bf16.mxu0 %v3095_v59 }
 0x78b   :  { %2700 = vmatpush1.bf16.msra.mxu0 %v3098_v61 }
 0x78c   :  { %2718 = vmatprep.subr.bf16.mxu0 %v2965_v8 }
 0x851   :  { %v758_v57 = vpop.f32.mrb[6].mxu0 }
 0x852   :  { %v765_v60 = vrot.slane %v758_v57, 2  ;;  %v760_v62 = vpop.f32.mrb[7].mxu0 }
 0x853   :  { %v766_v63 = vrot.slane %v760_v62, 2 }
 0x854   :  { %v769_v1 = vadd.f32 %v765_v60, %v3148_v34 }
 0x855   :  { %v770_v3 = vadd.f32 %v766_v63, %v3151_v36 }
 0x856   :  { %v2541_v5 = vmul.f32 -1.442695, %v769_v1 }
 0x857   :  { %2793 = vtanh.f32 %v770_v3  ;;  %v2542_v20 = vmul.f32 -1.442695, %v770_v3 }
 0x858   :  { %2795 = vpow2.f32 %v2541_v5 }
 0x861   :  { %v2794_v4 = vpop.eup %2793 }
 0x862   :  { %789 = vrot.lane.b32.xlu1 %v2794_v4, %s2879_s3  ;;  %v2796_v11 = vpop.eup %2795 }
 0x863   :  { %v777_v12 = vadd.f32 1.0, %v2796_v11 }
 0x865   :  { %2797 = vrcp.f32 %v777_v12 }
 0x86f   :  { %v2798_v2 = vpop.eup %2797 }
 0x870   :  { %v787_v16 = vmul.f32 %v2798_v2, %v785_v42 }
 0x8d4   :  { %v790_v14 = vpop.permute.xlu1 %789 }
 0x8d5   :  { %v792_v8 = vmul.f32 %v2798_v2, %v790_v14 }
 0x8d7   :  { %794 = vrot.lane.b32.xlu0 %v792_v8, %s2879_s3 }
 0x949   :  { %v795_v9 = vpop.permute.xlu0 %794 }
 0x94a   :  { %v797_v34 = vadd.f32 %v795_v9, %v787_v16 }
 0x94c   :  { %2799 = vtanh.f32 %v797_v34  ;;  %v895_v49 = vrot.slane %v797_v34, 6 }
 0x94d   :  { %2801 = vpow2.f32 %v2542_v20 }
 0x956   :  { %v2800_v36 = vpop.eup %2799 }
 0x957   :  { %800 = vrot.lane.b32.xlu1 %v2800_v36, %s2879_s3  ;;  %v2802_v0 = vpop.eup %2801 }
 0x958   :  { %v778_v21 = vadd.f32 1.0, %v2802_v0 }
 0x95a   :  { %2803 = vrcp.f32 %v778_v21 }
 0x964   :  { %v2804_v22 = vpop.eup %2803 }
 0x9c9   :  { %v801_v25 = vpop.permute.xlu1 %800 }
 0x9ca   :  { %v3267_v26 = vmul.f32 %v2804_v22, %v801_v25  ;;  %v1277_v22 = vrot.slane %v3249_v55, 2 }
 0x9cc   :  { %v805_v27 = vrot.slane %v3267_v26, 6 }
 0x9ce   :  { %2543 = vmatmul.mubr.msk.f32.vlgmr.msra.gmra.mrb[4].mxu1 %vm253_vm12, %v805_v27 }
 0x9cf   :  { %2704 = vmatpush1.bf16.msra.mxu1 %v2976_v13  ;;  %1097 = vmatprep.mubr.f32.mxu1 %v2877_v6 }
 0x9d0   :  { %2706 = vmatprep.subr.bf16.mxu1 %v3045_v38 }
 0x9d3   :  { %2708 = vmatpush1.bf16.msra.mxu1 %v3058_v43 }
 0x9d4   :  { %2710 = vmatprep.subr.bf16.mxu1 %v3060_v45 }
 0x9d7   :  { %2712 = vmatpush1.bf16.msra.mxu1 %v3076_v51 }
 0x9d8   :  { %2714 = vmatprep.subr.bf16.mxu1 %v3095_v59 }
 0x9db   :  { %2716 = vmatpush1.bf16.msra.mxu1 %v3098_v61 }
 0xaa1   :  { %v874_v28 = vpop.f32.mrb[4].mxu1 }
 0xaa2   :  { %v879_v29 = vadd.f32 %v874_v28, %v3221_v24  ;;  %v876_v30 = vpop.f32.mrb[5].mxu1 }
 0xaa3   :  { %v880_v31 = vadd.f32 %v876_v30, %v3223_v37 }
 0xaa4   :  { %v2544_v33 = vmul.f32 -1.442695, %v879_v29 }
 0xaa5   :  { %2805 = vtanh.f32 %v880_v31  ;;  %v2545_v57 = vmul.f32 -1.442695, %v880_v31 }
 0xaa6   :  { %2807 = vpow2.f32 %v2544_v33 }
 0xaaf   :  { %v2806_v32 = vpop.eup %2805 }
 0xab0   :  { %899 = vrot.lane.b32.xlu0 %v2806_v32, %s2879_s3  ;;  %v2808_v35 = vpop.eup %2807 }
 0xab1   :  { %v887_v41 = vadd.f32 1.0, %v2808_v35 }
 0xab3   :  { %2809 = vrcp.f32 %v887_v41 }
 0xabd   :  { %v2810_v46 = vpop.eup %2809 }
 0xabe   :  { %v897_v50 = vmul.f32 %v2810_v46, %v895_v49 }
 0xb22   :  { %v900_v47 = vpop.permute.xlu0 %899 }
 0xb23   :  { %v902_v48 = vmul.f32 %v2810_v46, %v900_v47 }
 0xb25   :  { %904 = vrot.lane.b32.xlu1 %v902_v48, %s2879_s3 }
 0xb97   :  { %v905_v52 = vpop.permute.xlu1 %904 }
 0xb98   :  { %v907_v54 = vadd.f32 %v905_v52, %v897_v50 }
 0xb9a   :  { %2811 = vtanh.f32 %v907_v54  ;;  %v1010_v14 = vrot.slane %v907_v54, 6 }
 0xb9b   :  { %2813 = vpow2.f32 %v2545_v57 }
 0xba4   :  { %v2812_v56 = vpop.eup %2811 }
 0xba5   :  { %910 = vrot.lane.b32.xlu0 %v2812_v56, %s2879_s3  ;;  %v2814_v60 = vpop.eup %2813 }
 0xba6   :  { %v888_v62 = vadd.f32 1.0, %v2814_v60 }
 0xba8   :  { %2815 = vrcp.f32 %v888_v62 }
 0xbb2   :  { %v2816_v63 = vpop.eup %2815 }
 0xc17   :  { %v911_v1 = vpop.permute.xlu0 %910 }
 0xc18   :  { %v3286_v3 = vmul.f32 %v2816_v63, %v911_v1 }
 0xc1a   :  { %2546 = vmatmul.mubr.msk.f32.vlgmr.msra.gmra.mrb[8].mxu0 %vm253_vm12, %v3286_v3  ;;  %v1276_v28 = vsel %vm1264_vm9, %v3286_v3, %v805_v27 }
 0xc1b   :  { %2720 = vmatpush1.bf16.msra.mxu0 %v2976_v13  ;;  %1213 = vmatprep.mubr.f32.mxu0 %v2877_v6 }
 0xc1c   :  { %2722 = vmatprep.subr.bf16.mxu0 %v3045_v38 }
 0xc1f   :  { %2724 = vmatpush1.bf16.msra.mxu0 %v3058_v43 }
 0xc20   :  { %2726 = vmatprep.subr.bf16.mxu0 %v3060_v45 }
 0xc23   :  { %2728 = vmatpush1.bf16.msra.mxu0 %v3076_v51 }
 0xc24   :  { %2730 = vmatprep.subr.bf16.mxu0 %v3095_v59 }
 0xc27   :  { %2732 = vmatpush1.bf16.msra.mxu0 %v3098_v61 }
 0xced   :  { %v983_v4 = vpop.f32.mrb[8].mxu0 }
 0xcee   :  { %v990_v5 = vrot.slane %v983_v4, 6  ;;  %v985_v11 = vpop.f32.mrb[9].mxu0 }
 0xcef   :  { %v991_v12 = vrot.slane %v985_v11, 6 }
 0xcf0   :  { %v994_v13 = vadd.f32 %v990_v5, %v3221_v24 }
 0xcf1   :  { %v995_v6 = vadd.f32 %v991_v12, %v3223_v37 }
 0xcf2   :  { %v2547_v43 = vmul.f32 -1.442695, %v994_v13 }
 0xcf3   :  { %2817 = vtanh.f32 %v995_v6  ;;  %v2548_v34 = vmul.f32 -1.442695, %v995_v6  ;;  %v1280_v6 = vrot.slane %v3231_v15, 6 }
 0xcf4   :  { %2819 = vpow2.f32 %v2547_v43 }
 0xcfd   :  { %v2818_v38 = vpop.eup %2817 }
 0xcfe   :  { %1014 = vrot.lane.b32.xlu1 %v2818_v38, %s2879_s3  ;;  %v2820_v45 = vpop.eup %2819 }
 0xcff   :  { %v1002_v51 = vadd.f32 1.0, %v2820_v45 }
 0xd01   :  { %2821 = vrcp.f32 %v1002_v51 }
 0xd0b   :  { %v2822_v59 = vpop.eup %2821 }
 0xd0c   :  { %v1012_v8 = vmul.f32 %v2822_v59, %v1010_v14 }
 0xd70   :  { %v1015_v2 = vpop.permute.xlu1 %1014 }
 0xd71   :  { %v1017_v61 = vmul.f32 %v2822_v59, %v1015_v2 }
 0xd73   :  { %1019 = vrot.lane.b32.xlu0 %v1017_v61, %s2879_s3 }
 0xde5   :  { %v1020_v42 = vpop.permute.xlu0 %1019 }
 0xde6   :  { %v1022_v16 = vadd.f32 %v1020_v42, %v1012_v8 }
 0xde8   :  { %2823 = vtanh.f32 %v1022_v16  ;;  %v1126_v57 = vrot.slane %v1022_v16, 6 }
 0xde9   :  { %2825 = vpow2.f32 %v2548_v34 }
 0xdf2   :  { %v2824_v9 = vpop.eup %2823 }
 0xdf3   :  { %1025 = vrot.lane.b32.xlu1 %v2824_v9, %s2879_s3  ;;  %v2826_v36 = vpop.eup %2825 }
 0xdf4   :  { %v1003_v20 = vadd.f32 1.0, %v2826_v36 }
 0xdf6   :  { %2827 = vrcp.f32 %v1003_v20 }
 0xe00   :  { %v2828_v0 = vpop.eup %2827 }
 0xe65   :  { %v1026_v21 = vpop.permute.xlu1 %1025 }
 0xe66   :  { %v3304_v25 = vmul.f32 %v2828_v0, %v1026_v21 }
 0xe68   :  { %v1030_v29 = vrot.slane %v3304_v25, 2  ;;  %v1279_v30 = vsel %vm1264_vm9, %v3304_v25, %v1277_v22  ;;  %v1297_v22 = vld [vmem:[%s3861_s5 + $0x10] sm:$0xff] }
 0xe69   :  { %v1292_v31 = vsel %vm1286_vm10, %v1276_v28, %v1279_v30 }
 0xe6a   :  { %2549 = vmatmul.mubr.msk.f32.vlgmr.msra.gmra.mrb[6].mxu1 %vm253_vm12, %v1030_v29  ;;  %v1298_v29 = vld [vmem:[%s3861_s5 + $0x18] sm:$0xff] }
 0xe6b   :  { %v2737_v30 = vpack.c.bf16 %v1298_v29, %v1297_v22  ;;  %v3417_v29 = vld [vmem:[%s3863_s7] sm:$0xff] }
 0xf3d   :  { %v1099_v32 = vpop.f32.mrb[6].mxu1 }
 0xf3e   :  { %v1106_v33 = vrot.slane %v1099_v32, 4  ;;  %v1101_v35 = vpop.f32.mrb[7].mxu1 }
 0xf3f   :  { %v1107_v41 = vrot.slane %v1101_v35, 4  ;;  %v1300_v35 = vld [vmem:[%s3861_s5 + $0x28] sm:$0xff] }
 0xf40   :  { %v1110_v46 = vadd.f32 %v1106_v33, %v3221_v24  ;;  %v1299_v33 = vld [vmem:[%s3861_s5 + $0x20] sm:$0xff] }
 0xf41   :  { %v1111_v47 = vadd.f32 %v1107_v41, %v3223_v37 }
 0xf42   :  { %v2550_v27 = vmul.f32 -1.442695, %v1110_v46  ;;  %v2741_v46 = vpack.c.bf16 %v1300_v35, %v1299_v33 }
 0xf43   :  { %2829 = vtanh.f32 %v1111_v47  ;;  %v2551_v4 = vmul.f32 -1.442695, %v1111_v47 }
 0xf44   :  { %2831 = vpow2.f32 %v2550_v27  ;;  %v1302_v27 = vld [vmem:[%s3861_s5 + $0x38] sm:$0xff] }
 0xf4d   :  { %v2830_v48 = vpop.eup %2829 }
 0xf4e   :  { %1130 = vrot.lane.b32.xlu0 %v2830_v48, %s2879_s3  ;;  %v2832_v49 = vpop.eup %2831  ;;  %v1301_v48 = vld [vmem:[%s3861_s5 + $0x30] sm:$0xff] }
 0xf4f   :  { %v1118_v50 = vadd.f32 1.0, %v2832_v49  ;;  %v2745_v49 = vpack.c.bf16 %v1302_v27, %v1301_v48  ;;  %v1396_v48 = vld [vmem:[%s3857_s1 + $0x4] sm:$0x3]  ;;  %v1395_v27 = vld [vmem:[%s3857_s1 + $0x2] sm:$0x3] }
 0xf50   :  { %vm1402_vm15 = vcmp.gt.s32.totalorder %v1395_v27, 0 }
 0xf51   :  { %2833 = vrcp.f32 %v1118_v50 }
 0xf5b   :  { %v2834_v52 = vpop.eup %2833 }
 0xf5c   :  { %v1128_v60 = vmul.f32 %v2834_v52, %v1126_v57 }
 0xfc0   :  { %v1131_v54 = vpop.permute.xlu0 %1130 }
 0xfc1   :  { %v1133_v56 = vmul.f32 %v2834_v52, %v1131_v54 }
 0xfc3   :  { %1135 = vrot.lane.b32.xlu1 %v1133_v56, %s2879_s3 }
0x1035   :  { %v1136_v62 = vpop.permute.xlu1 %1135 }
0x1036   :  { %v1138_v63 = vadd.f32 %v1136_v62, %v1128_v60  ;;  %v1283_v62 = vrot.slane %v3208_v40, 2 }
0x1038   :  { %2835 = vtanh.f32 %v1138_v63 }
0x1039   :  { %2837 = vpow2.f32 %v2551_v4  ;;  %v1269_v4 = vrot.slane %v3304_v25, 6 }
0x1042   :  { %v2836_v1 = vpop.eup %2835 }
0x1043   :  { %1141 = vrot.lane.b32.xlu0 %v2836_v1, %s2879_s3  ;;  %v2838_v5 = vpop.eup %2837 }
0x1044   :  { %v1119_v11 = vadd.f32 1.0, %v2838_v5  ;;  %v1272_v5 = vrot.slane %v3286_v3, 2 }
0x1046   :  { %2839 = vrcp.f32 %v1119_v11  ;;  %v1274_v25 = vsel %vm1264_vm9, %v3267_v26, %v1272_v5 }
0x1050   :  { %v2840_v12 = vpop.eup %2839 }
0x10b5   :  { %v1142_v13 = vpop.permute.xlu0 %1141 }
0x10b6   :  { %v3321_v38 = vmul.f32 %v2840_v12, %v1142_v13 }
0x10b8   :  { %v1146_v43 = vrot.slane %v3321_v38, 4  ;;  %v1282_v45 = vsel %vm1264_vm9, %v3321_v38, %v1280_v6 }
0x10b9   :  { %v3327_v51 = vsel %vm1288_vm11, %v1292_v31, %v1282_v45  ;;  %v1242_v31 = vrot.slane %v1138_v63, 6  ;;  %v1266_v63 = vrot.slane %v3321_v38, 2  ;;  %v1271_v38 = vsel %vm1264_vm9, %v3249_v55, %v1269_v4 }
0x10ba   :  { %2552 = vmatmul.mubr.msk.f32.vlgmr.msra.gmra.mrb[10].mxu0 %vm253_vm12, %v1146_v43 }
0x10bb   :  { %v1268_v6 = vsel %vm1264_vm9, %v3231_v15, %v1266_v63  ;;  %v2555_v15 = vld [vmem:[%s3862_s6] ss:$0 sm:$0xff] }
0x118d   :  { %v1215_v59 = vpop.f32.mrb[10].mxu0 }
0x118e   :  { %v1222_v2 = vrot.slane %v1215_v59, 2  ;;  %v1217_v61 = vpop.f32.mrb[11].mxu0 }
0x118f   :  { %v1223_v14 = vrot.slane %v1217_v61, 2 }
0x1190   :  { %v1226_v8 = vadd.f32 %v1222_v2, %v3221_v24  ;;  %v1295_v24 = vld [vmem:[%s3861_s5] sm:$0xff] }
0x1191   :  { %v1227_v42 = vadd.f32 %v1223_v14, %v3223_v37  ;;  %v1296_v37 = vld [vmem:[%s3861_s5 + $0x8] sm:$0xff] }
0x1192   :  { %v2553_v9 = vmul.f32 -1.442695, %v1226_v8  ;;  %v2733_v28 = vpack.c.bf16 %v1296_v37, %v1295_v24  ;;  %v2880_v8 = vmov 0  }
0x1193   :  { %2841 = vtanh.f32 %v1227_v42  ;;  %v2554_v52 = vmul.f32 -1.442695, %v1227_v42  ;;  %2755 = vset.pattern.permute.xlu0 %v2880_v8  ;;  %2756 = vset.pattern.permute.xlu1 %v2880_v8  ;;  %v2881_v42 = vmov 1966171168  }
0x1194   :  { %2843 = vpow2.f32 %v2553_v9  ;;  %2734 = vmatprep.subr.bf16.mxu1 %v2733_v28 }
0x1195   :  { %2736 = vmatpush3.bf16.msra.mxu1 %v2733_v28 }
0x1196   :  { %2738 = vmatprep.subr.bf16.mxu1 %v2737_v30 }
0x1199   :  { %2740 = vmatpush3.bf16.msra.mxu1 %v2737_v30 }
0x119a   :  { %2742 = vmatprep.subr.bf16.mxu1 %v2741_v46 }
0x119d   :  { %v2842_v16 = vpop.eup %2841  ;;  %2744 = vmatpush3.bf16.msra.mxu1 %v2741_v46 }
0x119e   :  { %1246 = vrot.lane.b32.xlu1 %v2842_v16, %s2879_s3  ;;  %v2844_v34 = vpop.eup %2843  ;;  %2746 = vmatprep.subr.bf16.mxu1 %v2745_v49  ;;  %v1419_v16 = vunpack.c.l.s4 %v2881_v42 }
0x119f   :  { %v1234_v36 = vadd.f32 1.0, %v2844_v34  ;;  %v2558_v34 = vld [vmem:[%s3864_s8] ss:$0 sm:$0xff] }
0x11a0   :  { %v1420_v9 = vunpack.c.0.s8 %v1419_v16 }
0x11a1   :  { %2845 = vrcp.f32 %v1234_v36  ;;  %2748 = vmatpush3.bf16.msra.mxu1 %v2745_v49 }
0x11a2   :  { %v3406_v36 = vsub.s32 %v1420_v9, %v2963_v7 }
0x11ab   :  { %v2846_v20 = vpop.eup %2845 }
0x11ac   :  { %v1244_v32 = vmul.f32 %v2846_v20, %v1242_v31 }
0x1210   :  { %v1247_v0 = vpop.permute.xlu1 %1246 }
0x1211   :  { %v1249_v21 = vmul.f32 %v2846_v20, %v1247_v0 }
0x1213   :  { %1251 = vrot.lane.b32.xlu0 %v1249_v21, %s2879_s3 }
0x1285   :  { %v1252_v41 = vpop.permute.xlu0 %1251 }
0x1286   :  { %v1254_v47 = vadd.f32 %v1252_v41, %v1244_v32 }
0x1288   :  { %2847 = vtanh.f32 %v1254_v47 }
0x1289   :  { %2849 = vpow2.f32 %v2554_v52  ;;  %v1508_v52 = vsel %vm1402_vm15, 1, %v2880_v8 }
0x1292   :  { %v2848_v50 = vpop.eup %2847 }
0x1293   :  { %1257 = vrot.lane.b32.xlu1 %v2848_v50, %s2879_s3  ;;  %v2850_v54 = vpop.eup %2849 }
0x1294   :  { %v1235_v56 = vadd.f32 1.0, %v2850_v54 }
0x1296   :  { %2851 = vrcp.f32 %v1235_v56  ;;  %v3441_v56 = vsub.s32 %v3119_v10, %v2963_v7 }
0x12a0   :  { %v2852_v57 = vpop.eup %2851 }
0x1305   :  { %v1258_v60 = vpop.permute.xlu1 %1257 }
0x1306   :  { %v1260_v1 = vmul.f32 %v2852_v57, %v1258_v60 }
0x1308   :  { %v1262_v11 = vrot.slane %v1260_v1, 6  ;;  %v1285_v12 = vsel %vm1264_vm9, %v1260_v1, %v1283_v62 }
0x1309   :  { %v1294_v13 = vsel %vm1290_vm13, %v3327_v51, %v1285_v12 }
0x130a   :  { %v1265_v43 = vsel %vm1264_vm9, %v3208_v40, %v1262_v11 }
0x130b   :  { %v1287_v45 = vsel %vm1286_vm10, %v1265_v43, %v1268_v6 }
0x130c   :  { %v1289_v3 = vsel %vm1288_vm11, %v1287_v45, %v1271_v38 }
0x130d   :  { %v1291_v59 = vsel %vm1290_vm13, %v1289_v3, %v1274_v25 }
0x130e   :  { %2586 = vmatprep.mubr.msk.f32.mxu1 %vm253_vm12, %v1291_v59 }
0x130f   :  { %2587 = vmatmul.mubr.msk.f32.vlgmr.msra.gmra.mrb[8].mxu1 %vm253_vm12, %v1294_v13  ;;  %vm1403_vm12 = vcmp.gt.s32.totalorder %v1396_v48, 0 }
0x1310   :  { %v1618_v50 = vsel %vm1403_vm12, 1, %v2880_v8 }
0x13e2   :  { %v2588_v40 = vpop.f32.mrb[8].mxu1 }
0x13e3   :  { %v3380_v51 = vadd.f32 %v2588_v40, %v2555_v15  ;;  %v1382_v55 = vpop.f32.mrb[9].mxu1 }
0x13e4   :  { %v3382_v2 = vadd.f32 %v2555_v15, %v1382_v55  ;;  %v1397_v55 = vld [vmem:[%s3857_s1 + $0x6] sm:$0x3] }
0x13e5   :  { %1393 = vst.msk [vmem:[%s3866_s10 + $0x8] sm:$0xff] %vm1391_vm14, %v3380_v51  ;;  %vm1404_vm2 = vcmp.gt.s32.totalorder %v1397_v55, 0 }
0x13e6   :  { %1392 = vst.msk [vmem:[%s3866_s10] sm:$0xff] %vm1391_vm14, %v3382_v2  ;;  %v1462_v26 = vrot.slane %v3382_v2, %v2994_v19  ;;  %v1455_v61 = vrot.slane %v3382_v2, %v2991_v18  ;;  %v1565_v14 = vrot.slane %v3382_v2, %v3158_v39  ;;  %v1416_v20 = vadd.f32 %v2558_v34, %v3382_v2 }
0x13e7   :  { %v1572_v49 = vrot.slane %v3382_v2, %v3173_v53 }
0x13e8   :  { %1464 = vbcast.lane.b32.xlu1 %v1462_v26, 256  ;;  %1457 = vbcast.lane.b32.xlu0 %v1455_v61, 256  ;;  %v1424_v0 = vrot.slane %v1416_v20, %v3406_v36  ;;  %v1681_v26 = vrot.slane %v3382_v2, %v3179_v58  ;;  %v1727_v61 = vsel %vm1404_vm2, 1, %v2880_v8 }
0x13ea   :  { %v1425_v21 = vcombine.high %v1424_v0, %v1424_v0  ;;  %v1432_v37 = vrot.slane %v1424_v0, %v3406_v36 }
0x13ec   :  { %1567 = vbcast.lane.b32.xlu1 %v1565_v14, 256  ;;  %v1439_v24 = vrot.slane %v1425_v21, %v3406_v36  ;;  %v1443_v28 = vrot.slane %v1432_v37, %v2988_v17  ;;  %v1674_v14 = vrot.slane %v3382_v2, %v3164_v44 }
0x13ee   :  { %v1447_v22 = vrot.slane %v1439_v24, %v2988_v17  ;;  %v1450_v31 = vadd.f32 %v1443_v28, %v3417_v29 }
0x13f0   :  { %v1451_v30 = vadd.f32 %v1447_v22, %v3417_v29 }
0x145a   :  { %v1465_v32 = vpop.permute.xlu1 %1464  ;;  %v1458_v33 = vpop.permute.xlu0 %1457 }
0x145b   :  { %v3421_v35 = vadd.f32 %v1465_v32, %v1451_v30  ;;  %v3423_v41 = vadd.f32 %v1458_v33, %v1450_v31 }
0x145d   :  { %v1468_v46 = vsel %vm1391_vm14, %v3423_v41, -inf  ;;  %v1471_v47 = vsel %vm1391_vm14, %v3421_v35, -inf }
0x145e   :  { %1469 = vmax.xlane.f32.xlu0 %v1468_v46  ;;  %1472 = vmax.xlane.f32.xlu1 %v1471_v47  ;;  %v1568_v54 = vpop.permute.xlu1 %1567 }
0x146f   :  { %1574 = vbcast.lane.b32.xlu1 %v1572_v49, 256 }
0x1473   :  { %1620 = vperm.xlu1 %2756, %v1618_v50   ;;  %v1398_v50 = vld [vmem:[%s3857_s1 + $0x8] sm:$0x3] }
0x1474   :  { %1510 = vperm.xlu0 %2755, %v1508_v52   ;;  %v1790_v52 = vrot.slane %v3380_v51, %v3007_v23  ;;  %vm1405_vm4 = vcmp.gt.s32.totalorder %v1398_v50, 0 }
0x14eb   :  { %v3443_v57 = vpop.xlane.xlu0 %1469  ;;  %v3445_v60 = vpop.xlane.xlu1 %1472 }
0x14ec   :  { %v1518_v62 = vrot.slane %v3443_v57, %v3441_v56  ;;  %v1522_v63 = vrot.slane %v3445_v60, %v3441_v56 }
0x14ee   :  { %v1524_v4 = vsel %vm1523_vm0, %v1522_v63, %v1518_v62  ;;  %v1783_v62 = vrot.slane %v3380_v51, %v2988_v17 }
0x14ef   :  { %v1575_v3 = vpop.permute.xlu1 %1574 }
0x14f3   :  { %v1511_v1 = vpop.permute.xlu0 %1510  ;;  %v1621_v42 = vpop.permute.xlu1 %1620 }
0x14f4   :  { %vm1512_vm1 = vcmp.eq.s32.totalorder %v1511_v1, 1  ;;  %vm1622_vm3 = vcmp.eq.s32.totalorder %v1621_v42, 1 }
0x14f5   :  { %v1526_v5 = vsel %vm1512_vm1, %v1524_v4, %v1416_v20  ;;  %vm2190_vm1 = vcmask 58368  }
0x14f6   :  { %v1534_v11 = vrot.slane %v1526_v5, %v3406_v36 }
0x14f8   :  { %v1535_v7 = vcombine.high %v1534_v11, %v1534_v11  ;;  %v1542_v12 = vrot.slane %v1534_v11, %v3406_v36 }
0x14fa   :  { %v1549_v13 = vrot.slane %v1535_v7, %v3406_v36  ;;  %v1553_v6 = vrot.slane %v1542_v12, %v2988_v17 }
0x14fc   :  { %v1560_v43 = vadd.f32 %v1553_v6, %v3417_v29  ;;  %v1557_v38 = vrot.slane %v1549_v13, %v2988_v17 }
0x14fe   :  { %v3458_v45 = vadd.f32 %v1568_v54, %v1560_v43  ;;  %v1561_v25 = vadd.f32 %v1557_v38, %v3417_v29  ;;  %v1836_v54 = vsel %vm1405_vm4, 1, %v2880_v8 }
0x1500   :  { %v1578_v59 = vsel %vm1391_vm14, %v3458_v45, -inf  ;;  %v3463_v15 = vadd.f32 %v1575_v3, %v1561_v25 }
0x1501   :  { %1579 = vmax.xlane.f32.xlu1 %v1578_v59 }
0x1502   :  { %v1581_v40 = vsel %vm1391_vm14, %v3463_v15, -inf }
0x1503   :  { %1582 = vmax.xlane.f32.xlu0 %v1581_v40 }
0x1512   :  { %1683 = vbcast.lane.b32.xlu1 %v1681_v26, 256 }
0x1516   :  { %1729 = vperm.xlu1 %2756, %v1727_v61  }
0x1519   :  { %1676 = vbcast.lane.b32.xlu0 %v1674_v14, 256 }
0x158e   :  { %v3475_v16 = vpop.xlane.xlu1 %1579 }
0x158f   :  { %v1628_v34 = vrot.slane %v3475_v16, %v3441_v56 }
0x1590   :  { %v3477_v9 = vpop.xlane.xlu0 %1582 }
0x1591   :  { %v1632_v20 = vrot.slane %v3477_v9, %v3441_v56 }
0x1592   :  { %v1684_v47 = vpop.permute.xlu1 %1683 }
0x1593   :  { %v1633_v0 = vsel %vm1523_vm0, %v1632_v20, %v1628_v34  ;;  %v1399_v34 = vld [vmem:[%s3857_s1 + $0xa] sm:$0x3]  ;;  %v1899_v20 = vrot.slane %v3380_v51, %v2994_v19 }
0x1594   :  { %v1635_v21 = vsel %vm1622_vm3, %v1633_v0, %v1526_v5  ;;  %v1677_v32 = vpop.permute.xlu0 %1676  ;;  %vm1406_vm6 = vcmp.gt.s32.totalorder %v1399_v34, 0 }
0x1595   :  { %v1643_v24 = vrot.slane %v1635_v21, %v3406_v36  ;;  %v1945_v0 = vsel %vm1406_vm6, 1, %v2880_v8  ;;  %vm2211_vm6 = vcmp.eq.s32.totalorder %v3119_v10, 0 }
0x1596   :  { %v1730_v63 = vpop.permute.xlu1 %1729 }
0x1597   :  { %v1644_v37 = vcombine.high %v1643_v24, %v1643_v24  ;;  %v1651_v2 = vrot.slane %v1643_v24, %v3406_v36  ;;  %vm1731_vm5 = vcmp.eq.s32.totalorder %v1730_v63, 1 }
0x1599   :  { %v1658_v22 = vrot.slane %v1644_v37, %v3406_v36  ;;  %v1662_v28 = vrot.slane %v1651_v2, %v2988_v17 }
0x159b   :  { %v1666_v30 = vrot.slane %v1658_v22, %v2988_v17  ;;  %v1669_v31 = vadd.f32 %v1662_v28, %v3417_v29 }
0x159d   :  { %v1670_v33 = vadd.f32 %v1666_v30, %v3417_v29  ;;  %v3491_v46 = vadd.f32 %v1677_v32, %v1669_v31 }
0x159f   :  { %v3493_v48 = vadd.f32 %v1684_v47, %v1670_v33  ;;  %v1687_v27 = vsel %vm1391_vm14, %v3491_v46, -inf }
0x15a0   :  { %1688 = vmax.xlane.f32.xlu1 %v1687_v27 }
0x15a1   :  { %v1690_v49 = vsel %vm1391_vm14, %v3493_v48, -inf }
0x15a2   :  { %1691 = vmax.xlane.f32.xlu0 %v1690_v49 }
0x15b1   :  { %1792 = vbcast.lane.b32.xlu1 %v1790_v52, 256 }
0x15b5   :  { %1838 = vperm.xlu1 %2756, %v1836_v54  }
0x15b8   :  { %1785 = vbcast.lane.b32.xlu0 %v1783_v62, 256 }
0x162d   :  { %v3507_v1 = vpop.xlane.xlu1 %1688 }
0x162e   :  { %v1737_v5 = vrot.slane %v3507_v1, %v3441_v56 }
0x162f   :  { %v3509_v4 = vpop.xlane.xlu0 %1691 }
0x1630   :  { %v1741_v23 = vrot.slane %v3509_v4, %v3441_v56 }
0x1631   :  { %v1793_v26 = vpop.permute.xlu1 %1792 }
0x1632   :  { %v1742_v11 = vsel %vm1523_vm0, %v1741_v23, %v1737_v5 }
0x1633   :  { %v1744_v7 = vsel %vm1731_vm5, %v1742_v11, %v1635_v21  ;;  %v1786_v59 = vpop.permute.xlu0 %1785  ;;  %v1892_v21 = vrot.slane %v3380_v51, %v2991_v18  ;;  %v2008_v11 = vrot.slane %v3380_v51, %v3173_v53 }
0x1634   :  { %v1752_v12 = vrot.slane %v1744_v7, %v3406_v36 }
0x1635   :  { %v1839_v24 = vpop.permute.xlu1 %1838 }
0x1636   :  { %v1753_v13 = vcombine.high %v1752_v12, %v1752_v12  ;;  %v1760_v6 = vrot.slane %v1752_v12, %v3406_v36  ;;  %vm1840_vm7 = vcmp.eq.s32.totalorder %v1839_v24, 1 }
0x1638   :  { %v1767_v43 = vrot.slane %v1753_v13, %v3406_v36  ;;  %v1771_v38 = vrot.slane %v1760_v6, %v2988_v17 }
0x163a   :  { %v1775_v25 = vrot.slane %v1767_v43, %v2988_v17  ;;  %v1778_v3 = vadd.f32 %v1771_v38, %v3417_v29 }
0x163c   :  { %v1779_v40 = vadd.f32 %v1775_v25, %v3417_v29  ;;  %v3523_v55 = vadd.f32 %v1786_v59, %v1778_v3 }
0x163e   :  { %v3525_v61 = vadd.f32 %v1793_v26, %v1779_v40  ;;  %v1796_v14 = vsel %vm1391_vm14, %v3523_v55, -inf }
0x163f   :  { %1797 = vmax.xlane.f32.xlu1 %v1796_v14 }
0x1640   :  { %v1799_v42 = vsel %vm1391_vm14, %v3525_v61, -inf }
0x1641   :  { %1800 = vmax.xlane.f32.xlu0 %v1799_v42 }
0x1650   :  { %1901 = vbcast.lane.b32.xlu1 %v1899_v20, 256 }
0x1654   :  { %1947 = vperm.xlu1 %2756, %v1945_v0  }
0x1657   :  { %1894 = vbcast.lane.b32.xlu0 %v1892_v21, 256 }
0x16cc   :  { %v3539_v37 = vpop.xlane.xlu1 %1797 }
0x16cd   :  { %v1846_v22 = vrot.slane %v3539_v37, %v3441_v56 }
0x16ce   :  { %v3541_v2 = vpop.xlane.xlu0 %1800 }
0x16cf   :  { %v1850_v19 = vrot.slane %v3541_v2, %v3441_v56 }
0x16d0   :  { %v1902_v62 = vpop.permute.xlu1 %1901 }
0x16d1   :  { %v1851_v28 = vsel %vm1523_vm0, %v1850_v19, %v1846_v22 }
0x16d2   :  { %v1853_v30 = vsel %vm1840_vm7, %v1851_v28, %v1744_v7  ;;  %v1895_v50 = vpop.permute.xlu0 %1894  ;;  %v2001_v7 = vrot.slane %v3380_v51, %v3158_v39  ;;  %v2110_v28 = vrot.slane %v3380_v51, %v3164_v44 }
0x16d3   :  { %v1861_v31 = vrot.slane %v1853_v30, %v3406_v36 }
0x16d4   :  { %v1948_v12 = vpop.permute.xlu1 %1947 }
0x16d5   :  { %v1862_v32 = vcombine.high %v1861_v31, %v1861_v31  ;;  %v1869_v18 = vrot.slane %v1861_v31, %v3406_v36  ;;  %vm1949_vm8 = vcmp.eq.s32.totalorder %v1948_v12, 1  ;;  %v2117_v31 = vrot.slane %v3380_v51, %v3179_v58 }
0x16d7   :  { %v1876_v33 = vrot.slane %v1862_v32, %v3406_v36  ;;  %v1880_v47 = vrot.slane %v1869_v18, %v2988_v17 }
0x16d9   :  { %v1884_v27 = vrot.slane %v1876_v33, %v2988_v17  ;;  %v1887_v49 = vadd.f32 %v1880_v47, %v3417_v29 }
0x16db   :  { %v1888_v52 = vadd.f32 %v1884_v27, %v3417_v29  ;;  %v3555_v54 = vadd.f32 %v1895_v50, %v1887_v49 }
0x16dd   :  { %v3557_v63 = vadd.f32 %v1902_v62, %v1888_v52  ;;  %v1905_v5 = vsel %vm1391_vm14, %v3555_v54, -inf }
0x16de   :  { %1906 = vmax.xlane.f32.xlu1 %v1905_v5 }
0x16df   :  { %v1908_v23 = vsel %vm1391_vm14, %v3557_v63, -inf }
0x16e0   :  { %1909 = vmax.xlane.f32.xlu0 %v1908_v23 }
0x16ef   :  { %2010 = vbcast.lane.b32.xlu1 %v2008_v11, 256 }
0x16f6   :  { %2003 = vbcast.lane.b32.xlu0 %v2001_v7, 256 }
0x176b   :  { %v3567_v13 = vpop.xlane.xlu1 %1906 }
0x176c   :  { %v1955_v43 = vrot.slane %v3567_v13, %v3441_v56 }
0x176d   :  { %v3569_v6 = vpop.xlane.xlu0 %1909 }
0x176e   :  { %v1959_v38 = vrot.slane %v3569_v6, %v3441_v56 }
0x176f   :  { %v2011_v21 = vpop.permute.xlu1 %2010 }
0x1770   :  { %v1960_v25 = vsel %vm1523_vm0, %v1959_v38, %v1955_v43 }
0x1771   :  { %v1962_v53 = vsel %vm1949_vm8, %v1960_v25, %v1853_v30  ;;  %v2004_v34 = vpop.permute.xlu0 %2003  ;;  %v1400_v30 = vld [vmem:[%s3857_s1 + $0xc] sm:$0x3] }
0x1772   :  { %v1970_v3 = vrot.slane %v1962_v53, %v3406_v36  ;;  %vm1407_vm9 = vcmp.gt.s32.totalorder %v1400_v30, 0 }
0x1773   :  { %v2054_v32 = vsel %vm1407_vm9, 1, %v2880_v8 }
0x1774   :  { %v1971_v59 = vcombine.high %v1970_v3, %v1970_v3  ;;  %v1978_v39 = vrot.slane %v1970_v3, %v3406_v36 }
0x1776   :  { %v1985_v40 = vrot.slane %v1971_v59, %v3406_v36  ;;  %v1989_v26 = vrot.slane %v1978_v39, %v2988_v17 }
0x1778   :  { %v1993_v14 = vrot.slane %v1985_v40, %v2988_v17  ;;  %v1996_v42 = vadd.f32 %v1989_v26, %v3417_v29 }
0x177a   :  { %v1997_v20 = vadd.f32 %v1993_v14, %v3417_v29  ;;  %v3583_v0 = vadd.f32 %v2004_v34, %v1996_v42 }
0x177c   :  { %v3585_v24 = vadd.f32 %v2011_v21, %v1997_v20  ;;  %v2014_v22 = vsel %vm1391_vm14, %v3583_v0, -inf }
0x177d   :  { %2015 = vmax.xlane.f32.xlu1 %v2014_v22 }
0x177e   :  { %v2017_v19 = vsel %vm1391_vm14, %v3585_v24, -inf }
0x177f   :  { %2018 = vmax.xlane.f32.xlu0 %v2017_v19  ;;  %v2559_v19 = vld [vmem:[%s3865_s9] ss:$0 sm:$0xff] }
0x178e   :  { %2112 = vbcast.lane.b32.xlu1 %v2110_v28, 256 }
0x1792   :  { %2119 = vbcast.lane.b32.xlu1 %v2117_v31, 256 }
0x1795   :  { %2056 = vperm.xlu0 %2755, %v2054_v32  }
0x180a   :  { %v2016_v33 = vpop.xlane.xlu1 %2015 }
0x180b   :  { %v2064_v44 = vrot.slane %v2016_v33, %v3441_v56  ;;  %vm2020_vm2 = vcmp.ge.f32.partialorder %v3583_v0, %v2016_v33 }
0x180c   :  { %v3599_v18 = vpop.xlane.xlu0 %2018 }
0x180d   :  { %v2068_v47 = vrot.slane %v3599_v18, %v3441_v56 }
0x180e   :  { %v2113_v62 = vpop.permute.xlu1 %2112 }
0x180f   :  { %v2069_v49 = vsel %vm1523_vm0, %v2068_v47, %v2064_v44 }
0x1812   :  { %v2120_v38 = vpop.permute.xlu1 %2119 }
0x1814   :  { %v2057_v27 = vpop.permute.xlu0 %2056 }
0x1815   :  { %vm2058_vm10 = vcmp.eq.s32.totalorder %v2057_v27, 1  ;;  %v2022_v27 = vsel %vm2020_vm2, %v3119_v10, 8 }
0x1816   :  { %v2071_v50 = vsel %vm2058_vm10, %v2069_v49, %v1962_v53  ;;  %vm2021_vm10 = vcmp.ge.f32.partialorder %v3585_v24, %v3599_v18 }
0x1817   :  { %v2079_v52 = vrot.slane %v2071_v50, %v3406_v36 }
0x1819   :  { %v2080_v58 = vcombine.high %v2079_v52, %v2079_v52  ;;  %v2087_v51 = vrot.slane %v2079_v52, %v3406_v36 }
0x181b   :  { %v2094_v5 = vrot.slane %v2080_v58, %v3406_v36  ;;  %v2098_v23 = vrot.slane %v2087_v51, %v2988_v17  ;;  %v1401_v36 = vld [vmem:[%s3857_s1 + $0xe] sm:$0x3] }
0x181c   :  { %vm1408_vm11 = vcmp.gt.s32.totalorder %v1401_v36, 0 }
0x181d   :  { %v2105_v11 = vadd.f32 %v2098_v23, %v3417_v29  ;;  %v2102_v7 = vrot.slane %v2094_v5, %v2988_v17  ;;  %v2163_v59 = vsel %vm1408_vm11, 1, %v2880_v8  ;;  %vm1911_vm11 = vcmp.ge.f32.partialorder %v3555_v54, %v3567_v13 }
0x181f   :  { %v2121_v12 = vadd.f32 %v2113_v62, %v2105_v11  ;;  %v2106_v43 = vadd.f32 %v2102_v7, %v3417_v29  ;;  %v3632_v62 = vsel %vm1391_vm14, %v2022_v27, 2147483647 }
0x1820   :  { %v2026_v23 = vshra.s32 %v3632_v62, 16 }
0x1821   :  { %v2123_v25 = vsel %vm1391_vm14, %v2121_v12, -inf  ;;  %v2122_v53 = vadd.f32 %v2120_v38, %v2106_v43 }
0x1822   :  { %2124 = vmax.xlane.f32.xlu0 %v2123_v25  ;;  %v3635_v33 = vcvt.s32.f32 %v2026_v23 }
0x1823   :  { %v2126_v3 = vsel %vm1391_vm14, %v2122_v53, -inf }
0x1824   :  { %2127 = vmax.xlane.f32.xlu1 %v2126_v3 }
0x1838   :  { %2165 = vperm.xlu0 %2755, %v2163_v59  }
0x18af   :  { %v2125_v17 = vpop.xlane.xlu0 %2124 }
0x18b0   :  { %vm2129_vm13 = vcmp.ge.f32.partialorder %v2121_v12, %v2125_v17  ;;  %v2173_v8 = vrot.slane %v2125_v17, %v3441_v56 }
0x18b1   :  { %v2131_v29 = vsel %vm2129_vm13, %v3119_v10, 8  ;;  %v2128_v39 = vpop.xlane.xlu1 %2127 }
0x18b2   :  { %vm2130_vm12 = vcmp.ge.f32.partialorder %v2122_v53, %v2128_v39  ;;  %v2133_v40 = vsel %vm1391_vm14, %v2131_v29, 2147483647  ;;  %v2177_v42 = vrot.slane %v2128_v39, %v3441_v56 }
0x18b3   :  { %v2132_v26 = vsel %vm2130_vm12, %v3119_v10, 8  ;;  %v2135_v14 = vshra.s32 %v2133_v40, 16  ;;  %v2134_v44 = vand.u32 65535, %v2133_v40 }
0x18b4   :  { %v2148_v34 = vsel %vm1391_vm14, %v2132_v26, 2147483647  ;;  %v2178_v28 = vsel %vm1523_vm0, %v2177_v42, %v2173_v8 }
0x18b5   :  { %v2137_v20 = vcvt.s32.f32 %v2135_v14  ;;  %v2150_v21 = vshra.s32 %v2148_v34, 16  ;;  %v2136_v52 = vcvt.s32.f32 %v2134_v44  ;;  %v2149_v58 = vand.u32 65535, %v2148_v34 }
0x18b7   :  { %v2166_v22 = vpop.permute.xlu0 %2165  ;;  %2138 = vmin.xlane.f32.xlu1 %v2137_v20  ;;  %v2152_v31 = vcvt.s32.f32 %v2150_v21  ;;  %v2151_v5 = vcvt.s32.f32 %v2149_v58 }
0x18b8   :  { %vm2167_vm15 = vcmp.eq.s32.totalorder %v2166_v22, 1 }
0x18b9   :  { %v2180_v30 = vsel %vm2167_vm15, %v2178_v28, %v2071_v50 }
0x18ba   :  { %v2188_v32 = vadd.f32 %v2559_v19, %v2180_v30 }
0x18bb   :  { %2153 = vmin.xlane.f32.xlu1 %v2152_v31 }
0x18bc   :  { %v2191_v47 = vsel %vm2190_vm1, %v2188_v32, -inf }
0x18bf   :  { %2192 = vmax.xlane.f32.xlu1 %v2191_v47 }
0x1944   :  { %v2139_v49 = vpop.xlane.xlu1 %2138 }
0x1945   :  { %vm2140_vm3 = vcmp.eq.f32.partialorder %v2137_v20, %v2139_v49  ;;  %v2145_v25 = vcvt.f32.s32 %v2139_v49 }
0x1946   :  { %v2141_v51 = vsel %vm2140_vm3, %v2136_v52, inf }
0x1947   :  { %2142 = vmin.xlane.f32.xlu1 %v2141_v51  ;;  %v2146_v59 = vshll.u32 %v2145_v25, 16 }
0x1948   :  { %v2154_v50 = vpop.xlane.xlu1 %2153 }
0x1949   :  { %vm2155_vm4 = vcmp.eq.f32.partialorder %v2152_v31, %v2154_v50  ;;  %v2160_v3 = vcvt.f32.s32 %v2154_v50  ;;  %v3650_v50 = vld [vmem:[%s3858_s2] sm:$0x3]  ;;  %s2882_s2 = smov [#allocation2]  }
0x194a   :  { %v2156_v11 = vsel %vm2155_vm4, %v2151_v5, inf  ;;  %vm2236_vm8 = vcmp.gt.s32.totalorder %v3650_v50, 7  ;;  %vm2235_vm9 = vcmp.eq.s32.totalorder %v3650_v50, 7  ;;  %vm2265_vm2 = vcmp.gt.s32.totalorder %v3650_v50, 6  ;;  %s2511_s21 = sshll.u32 %s2882_s2, 4  ;;  %s2512_s21 = int_to_ptr.vmem [resolvable:$true] %s2511_s21 }
0x194b   :  { %2157 = vmin.xlane.f32.xlu0 %v2156_v11  ;;  %v2161_v29 = vshll.u32 %v2160_v3, 16  ;;  %vm2264_vm3 = vcmp.eq.s32.totalorder %v3650_v50, 6  ;;  %vm1912_vm4 = vcmp.ge.f32.partialorder %v3557_v63, %v3569_v6  ;;  %s2853_s5 = scalar_lea.vmem %s2512_s21, 32  ;;  %p2858_p1 = scmp.lt.s32.totalorder %s2512_s21, %s2512_s21 }
0x194c   :  { %v2193_v0 = vpop.xlane.xlu1 %2192  ;;  %p2854_p0 = scmp.ne.s32.totalorder %s2512_s21, %s2853_s5  ;;  %p2859_p2 = scmp.lt.s32.totalorder %s2853_s5, %s2853_s5 }
0x194d   :  { %vm2194_vm5 = vcmp.ge.f32.partialorder %v2188_v32, %v2193_v0 }
0x194e   :  { %v2195_v7 = vsel %vm2194_vm5, %v3119_v10, 8  ;;  %vm1802_vm5 = vcmp.ge.f32.partialorder %v3523_v55, %v3539_v37  ;;  %p2860_p3 = por %p2859_p2, %p2858_p1 }
0x194f   :  { %v2196_v12 = vsel %vm2190_vm1, %v2195_v7, 2147483647  ;;  %2029 = vmin.xlane.f32.xlu0 %v3635_v33 }
0x1950   :  { %v2198_v43 = vshra.s32 %v2196_v12, 16  ;;  %v2197_v30 = vand.u32 65535, %v2196_v12  ;;  %p2861_p4 = pnand %p2860_p3, %p2854_p0 }
0x1952   :  { %v2200_v38 = vcvt.s32.f32 %v2198_v43  ;;  %v2199_v32 = vcvt.s32.f32 %v2197_v30 }
0x1954   :  { %2201 = vmin.xlane.f32.xlu1 %v2200_v38 }
0x19d4   :  { %v2143_v53 = vpop.xlane.xlu1 %2142 }
0x19d5   :  { %v2144_v36 = vcvt.f32.s32 %v2143_v53  ;;  %v1913_v53 = vsel %vm1911_vm11, %v3119_v10, 8  ;;  %vm2302_vm11 = vcmp.eq.s32.totalorder %v3650_v50, 5 }
0x19d7   :  { %v2147_v39 = vadd.s32 %v2146_v59, %v2144_v36  ;;  %v3668_v36 = vsel %vm1391_vm14, %v1913_v53, 2147483647 }
0x19d8   :  { %v2158_v17 = vpop.xlane.xlu0 %2157 }
0x19d9   :  { %v2159_v40 = vcvt.f32.s32 %v2158_v17  ;;  %v2215_v14 = vrot.slane %v2147_v39, %v3441_v56  ;;  %v1917_v17 = vshra.s32 %v3668_v36, 16 }
0x19db   :  { %v2162_v26 = vadd.s32 %v2161_v29, %v2159_v40  ;;  %v3671_v29 = vcvt.s32.f32 %v1917_v17 }
0x19dd   :  { %v2219_v42 = vrot.slane %v2162_v26, %v3441_v56  ;;  %v2030_v26 = vpop.xlane.xlu0 %2029 }
0x19de   :  { %vm2031_vm12 = vcmp.eq.f32.partialorder %v3635_v33, %v2030_v26  ;;  %v2036_v55 = vcvt.f32.s32 %v2030_v26 }
0x19df   :  { %v2220_v34 = vsel %vm1523_vm0, %v2219_v42, %v2215_v14  ;;  %v2025_v14 = vand.u32 65535, %v3632_v62 }
0x19e0   :  { %v2221_v20 = vsel %vm2211_vm6, %v2220_v34, 0 }
0x19e1   :  { %v2222_v21 = vsel %vm2190_vm1, %v2221_v20, 0  ;;  %v2202_v28 = vpop.xlane.xlu1 %2201  ;;  %v2027_v20 = vcvt.s32.f32 %v2025_v14 }
0x19e2   :  { %v2224_v8 = vshrl.u32 %v2222_v21, 16  ;;  %v2223_v19 = vand.u32 65535, %v2222_v21  ;;  %vm2203_vm7 = vcmp.eq.f32.partialorder %v2200_v38, %v2202_v28  ;;  %v2208_v52 = vcvt.f32.s32 %v2202_v28 }
0x19e3   :  { %v2204_v47 = vsel %vm2203_vm7, %v2199_v32, inf  ;;  %v2023_v38 = vsel %vm2021_vm10, %v3119_v10, 8  ;;  %v2032_v21 = vsel %vm2031_vm12, %v2027_v20, inf  ;;  %vm2303_vm10 = vcmp.gt.s32.totalorder %v3650_v50, 5 }
0x19e4   :  { %v2226_v22 = vcvt.s32.f32 %v2224_v8  ;;  %v2225_v31 = vcvt.s32.f32 %v2223_v19  ;;  %v2209_v11 = vshll.u32 %v2208_v52, 16  ;;  %v2039_v25 = vsel %vm1391_vm14, %v2023_v38, 2147483647 }
0x19e5   :  { %v2041_v3 = vshra.s32 %v2039_v25, 16  ;;  %v2040_v8 = vand.u32 65535, %v2039_v25  ;;  %v1804_v52 = vsel %vm1802_vm5, %v3119_v10, 8  ;;  %v2037_v25 = vshll.u32 %v2036_v55, 16 }
0x19e6   :  { %2229 = vadd.xlane.f32.xlu1 %v2226_v22  ;;  %vm1693_vm12 = vcmp.ge.f32.partialorder %v3491_v46, %v3507_v1  ;;  %vm2340_vm5 = vcmp.eq.s32.totalorder %v3650_v50, 4 }
0x19e7   :  { %v2043_v59 = vcvt.s32.f32 %v2041_v3  ;;  %v2042_v19 = vcvt.s32.f32 %v2040_v8 }
0x19ea   :  { %2227 = vadd.xlane.f32.xlu1 %v2225_v31 }
0x19ee   :  { %2205 = vmin.xlane.f32.xlu1 %v2204_v47 }
0x1a73   :  { %v2230_v44 = vpop.xlane.xlu1 %2229 }
0x1a74   :  { %v2232_v27 = vcvt.f32.s32 %v2230_v44 }
0x1a76   :  { %v2233_v51 = vshll.u32 %v2232_v27, 16  ;;  %v1914_v27 = vsel %vm1912_vm4, %v3119_v10, 8  ;;  %vm2341_vm4 = vcmp.gt.s32.totalorder %v3650_v50, 4 }
0x1a77   :  { %v2228_v49 = vpop.xlane.xlu1 %2227 }
0x1a78   :  { %v2231_v58 = vcvt.f32.s32 %v2228_v49  ;;  %v1930_v49 = vsel %vm1391_vm14, %v1914_v27, 2147483647 }
0x1a7a   :  { %v2234_v5 = vadd.s32 %v2233_v51, %v2231_v58  ;;  %v1932_v58 = vshra.s32 %v1930_v49, 16  ;;  %v3693_v51 = vsel %vm1391_vm14, %v1804_v52, 2147483647  ;;  %v1695_v52 = vsel %vm1693_vm12, %v3119_v10, 8 }
0x1a7b   :  { %v2206_v23 = vpop.xlane.xlu1 %2205  ;;  %vm2378_vm12 = vcmp.eq.s32.totalorder %v3650_v50, 3 }
0x1a7c   :  { %v2207_v0 = vcvt.f32.s32 %v2206_v23  ;;  %v2237_v12 = vsel %vm2236_vm8, %v2234_v5, 0  ;;  %v1934_v5 = vcvt.s32.f32 %v1932_v58  ;;  %v1808_v23 = vshra.s32 %v3693_v51, 16 }
0x1a7e   :  { %v3654_v7 = vadd.s32 %v2209_v11, %v2207_v0  ;;  %v3696_v11 = vcvt.s32.f32 %v1808_v23 }
0x1a80   :  { %v3657_v43 = vsel %vm2235_vm9, %v3654_v7, %v2237_v12 }
0x1a81   :  { %2247 = vperm.xlu1 %2756, %v3657_v43  }
0x1aa5   :  { %2044 = vmin.xlane.f32.xlu1 %v2043_v59 }
0x1aa9   :  { %1920 = vmin.xlane.f32.xlu1 %v3671_v29 }
0x1b00   :  { %v2248_v24 = vpop.permute.xlu1 %2247 }
0x1b01   :  { %vm2249_vm13 = vcmp.eq.s32.totalorder %v3119_v10, %v2248_v24 }
0x1b02   :  { %v2250_v54 = vsel %vm2249_vm13, %v2220_v34, 0  ;;  %vm1803_vm13 = vcmp.ge.f32.partialorder %v3525_v61, %v3541_v2 }
0x1b03   :  { %v2251_v13 = vsel %vm2190_vm1, %v2250_v54, 0  ;;  %v1805_v27 = vsel %vm1803_vm13, %v3119_v10, 8  ;;  %vm2379_vm13 = vcmp.gt.s32.totalorder %v3650_v50, 3 }
0x1b04   :  { %v2253_v18 = vshrl.u32 %v2251_v13, 16  ;;  %v2252_v40 = vand.u32 65535, %v2251_v13 }
0x1b06   :  { %v2255_v39 = vcvt.s32.f32 %v2253_v18  ;;  %v2254_v42 = vcvt.s32.f32 %v2252_v40 }
0x1b08   :  { %2258 = vadd.xlane.f32.xlu0 %v2255_v39 }
0x1b0c   :  { %2256 = vadd.xlane.f32.xlu0 %v2254_v42  ;;  %v1916_v42 = vand.u32 65535, %v3668_v36 }
0x1b10   :  { %2033 = vmin.xlane.f32.xlu0 %v2032_v21  ;;  %v1918_v21 = vcvt.s32.f32 %v1916_v42 }
0x1b32   :  { %v2045_v22 = vpop.xlane.xlu1 %2044 }
0x1b33   :  { %vm2046_vm15 = vcmp.eq.f32.partialorder %v2043_v59, %v2045_v22  ;;  %v2051_v0 = vcvt.f32.s32 %v2045_v22  ;;  %v1931_v22 = vand.u32 65535, %v1930_v49  ;;  %v1821_v49 = vsel %vm1391_vm14, %v1805_v27, 2147483647 }
0x1b34   :  { %v2047_v34 = vsel %vm2046_vm15, %v2042_v19, inf  ;;  %v1823_v58 = vshra.s32 %v1821_v49, 16 }
0x1b35   :  { %2048 = vmin.xlane.f32.xlu0 %v2047_v34  ;;  %v2052_v12 = vshll.u32 %v2051_v0, 16  ;;  %v1933_v34 = vcvt.s32.f32 %v1931_v22 }
0x1b36   :  { %v1921_v14 = vpop.xlane.xlu1 %1920  ;;  %v1825_v23 = vcvt.s32.f32 %v1823_v58 }
0x1b37   :  { %vm1922_vm8 = vcmp.eq.f32.partialorder %v3671_v29, %v1921_v14  ;;  %v1927_v46 = vcvt.f32.s32 %v1921_v14 }
0x1b38   :  { %v1923_v8 = vsel %vm1922_vm8, %v1918_v21, inf  ;;  %v1822_v21 = vand.u32 65535, %v1821_v49  ;;  %vm1584_vm8 = vcmp.ge.f32.partialorder %v3458_v45, %v3475_v16 }
0x1b3a   :  { %v1824_v22 = vcvt.s32.f32 %v1822_v21 }
0x1b95   :  { %v2259_v28 = vpop.xlane.xlu0 %2258 }
0x1b96   :  { %v2261_v30 = vcvt.f32.s32 %v2259_v28 }
0x1b98   :  { %v2262_v32 = vshll.u32 %v2261_v30, 16 }
0x1b99   :  { %v2257_v31 = vpop.xlane.xlu0 %2256 }
0x1b9a   :  { %v2260_v47 = vcvt.f32.s32 %v2257_v31 }
0x1b9c   :  { %v2263_v62 = vadd.s32 %v2262_v32, %v2260_v47 }
0x1b9d   :  { %v2034_v63 = vpop.xlane.xlu0 %2033 }
0x1b9e   :  { %v2266_v33 = vsel %vm2265_vm2, %v2263_v62, %v3657_v43  ;;  %v2035_v38 = vcvt.f32.s32 %v2034_v63 }
0x1b9f   :  { %v3682_v44 = vsel %vm2264_vm3, %v3654_v7, %v2266_v33 }
0x1ba0   :  { %2276 = vperm.xlu0 %2755, %v3682_v44   ;;  %v2038_v3 = vadd.s32 %v2037_v25, %v2035_v38 }
0x1ba2   :  { %v2282_v17 = vrot.slane %v2038_v3, %v3441_v56 }
0x1bbf   :  { %1935 = vmin.xlane.f32.xlu0 %v1934_v5 }
0x1bc2   :  { %v2049_v6 = vpop.xlane.xlu0 %2048 }
0x1bc3   :  { %1811 = vmin.xlane.f32.xlu0 %v3696_v11  ;;  %v2050_v37 = vcvt.f32.s32 %v2049_v6 }
0x1bc5   :  { %v2053_v53 = vadd.s32 %v2052_v12, %v2050_v37  ;;  %v1928_v12 = vshll.u32 %v1927_v46, 16 }
0x1bc7   :  { %v2286_v59 = vrot.slane %v2053_v53, %v3441_v56 }
0x1bc9   :  { %v2287_v54 = vsel %vm1523_vm0, %v2286_v59, %v2282_v17 }
0x1c1f   :  { %v2277_v24 = vpop.permute.xlu0 %2276 }
0x1c20   :  { %vm2278_vm7 = vcmp.eq.s32.totalorder %v3119_v10, %v2277_v24 }
0x1c21   :  { %v2288_v13 = vsel %vm2278_vm7, %v2287_v54, 0  ;;  %vm1694_vm7 = vcmp.ge.f32.partialorder %v3493_v48, %v3509_v4 }
0x1c22   :  { %v2289_v18 = vsel %vm2190_vm1, %v2288_v13, 0 }
0x1c23   :  { %v2291_v39 = vshrl.u32 %v2289_v18, 16  ;;  %v2290_v40 = vand.u32 65535, %v2289_v18 }
0x1c25   :  { %v2293_v26 = vcvt.s32.f32 %v2291_v39  ;;  %v2292_v20 = vcvt.s32.f32 %v2290_v40 }
0x1c27   :  { %2296 = vadd.xlane.f32.xlu1 %v2293_v26  ;;  %v1807_v26 = vand.u32 65535, %v3693_v51 }
0x1c29   :  { %v1809_v42 = vcvt.s32.f32 %v1807_v26 }
0x1c2b   :  { %2294 = vadd.xlane.f32.xlu1 %v2292_v20 }
0x1c2f   :  { %1924 = vmin.xlane.f32.xlu1 %v1923_v8 }
0x1c4c   :  { %v1936_v19 = vpop.xlane.xlu0 %1935 }
0x1c4d   :  { %vm1937_vm9 = vcmp.eq.f32.partialorder %v1934_v5, %v1936_v19  ;;  %v3721_v5 = vsel %vm1391_vm14, %v1695_v52, 2147483647  ;;  %v1942_v0 = vcvt.f32.s32 %v1936_v19 }
0x1c4e   :  { %v1938_v28 = vsel %vm1937_vm9, %v1933_v34, inf  ;;  %v1699_v63 = vshra.s32 %v3721_v5, 16 }
0x1c4f   :  { %1939 = vmin.xlane.f32.xlu1 %v1938_v28  ;;  %v1943_v55 = vshll.u32 %v1942_v0, 16 }
0x1c50   :  { %v3724_v6 = vcvt.s32.f32 %v1699_v63  ;;  %v1812_v40 = vpop.xlane.xlu0 %1811 }
0x1c51   :  { %vm1813_vm2 = vcmp.eq.f32.partialorder %v3696_v11, %v1812_v40  ;;  %v1818_v45 = vcvt.f32.s32 %v1812_v40 }
0x1c52   :  { %v1814_v20 = vsel %vm1813_vm2, %v1809_v42, inf  ;;  %vm1474_vm2 = vcmp.ge.f32.partialorder %v3423_v41, %v3443_v57 }
0x1c53   :  { %v1819_v0 = vshll.u32 %v1818_v45, 16 }
0x1cb4   :  { %v2297_v30 = vpop.xlane.xlu1 %2296 }
0x1cb5   :  { %v2299_v31 = vcvt.f32.s32 %v2297_v30 }
0x1cb7   :  { %v2300_v47 = vshll.u32 %v2299_v31, 16 }
0x1cb8   :  { %v2295_v32 = vpop.xlane.xlu1 %2294 }
0x1cb9   :  { %v2298_v62 = vcvt.f32.s32 %v2295_v32 }
0x1cbb   :  { %v2301_v36 = vadd.s32 %v2300_v47, %v2298_v62  ;;  %v1696_v62 = vsel %vm1694_vm7, %v3119_v10, 8  ;;  %vm2417_vm7 = vcmp.gt.s32.totalorder %v3650_v50, 2 }
0x1cbc   :  { %v1925_v61 = vpop.xlane.xlu1 %1924 }
0x1cbd   :  { %v2304_v29 = vsel %vm2303_vm10, %v2301_v36, %v3682_v44  ;;  %v1926_v37 = vcvt.f32.s32 %v1925_v61  ;;  %v1712_v36 = vsel %vm1391_vm14, %v1696_v62, 2147483647 }
0x1cbe   :  { %v3710_v33 = vsel %vm2302_vm11, %v3654_v7, %v2304_v29  ;;  %v1586_v29 = vsel %vm1584_vm8, %v3119_v10, 8  ;;  %v1714_v27 = vshra.s32 %v1712_v36, 16  ;;  %v1713_v40 = vand.u32 65535, %v1712_v36 }
0x1cbf   :  { %2314 = vperm.xlu1 %2756, %v3710_v33   ;;  %v1929_v25 = vadd.s32 %v1928_v12, %v1926_v37  ;;  %v3749_v49 = vsel %vm1391_vm14, %v1586_v29, 2147483647  ;;  %vm2416_vm8 = vcmp.eq.s32.totalorder %v3650_v50, 2 }
0x1cc0   :  { %v1716_v52 = vcvt.s32.f32 %v1714_v27  ;;  %v1590_v58 = vshra.s32 %v3749_v49, 16 }
0x1cc1   :  { %v2320_v3 = vrot.slane %v1929_v25, %v3441_v56 }
0x1cdc   :  { %v1940_v2 = vpop.xlane.xlu1 %1939 }
0x1cdd   :  { %v1941_v1 = vcvt.f32.s32 %v1940_v2 }
0x1cdf   :  { %v1944_v38 = vadd.s32 %v1943_v55, %v1941_v1 }
0x1ce1   :  { %v2324_v53 = vrot.slane %v1944_v38, %v3441_v56 }
0x1ce3   :  { %1826 = vmin.xlane.f32.xlu1 %v1825_v23  ;;  %v2325_v17 = vsel %vm1523_vm0, %v2324_v53, %v2320_v3 }
0x1ce7   :  { %1702 = vmin.xlane.f32.xlu1 %v3724_v6 }
0x1d3e   :  { %v2315_v59 = vpop.permute.xlu1 %2314 }
0x1d3f   :  { %vm2316_vm15 = vcmp.eq.s32.totalorder %v3119_v10, %v2315_v59 }
0x1d40   :  { %v2326_v24 = vsel %vm2316_vm15, %v2325_v17, 0  ;;  %vm1585_vm15 = vcmp.ge.f32.partialorder %v3463_v15, %v3477_v9 }
0x1d41   :  { %v2327_v54 = vsel %vm2190_vm1, %v2326_v24, 0 }
0x1d42   :  { %v2329_v13 = vshrl.u32 %v2327_v54, 16  ;;  %v2328_v39 = vand.u32 65535, %v2327_v54  ;;  %v1698_v54 = vand.u32 65535, %v3721_v5 }
0x1d44   :  { %v2331_v18 = vcvt.s32.f32 %v2329_v13  ;;  %v2330_v14 = vcvt.s32.f32 %v2328_v39 }
0x1d46   :  { %2334 = vadd.xlane.f32.xlu0 %v2331_v18  ;;  %v1700_v18 = vcvt.s32.f32 %v1698_v54 }
0x1d4a   :  { %2332 = vadd.xlane.f32.xlu0 %v2330_v14  ;;  %v1715_v14 = vcvt.s32.f32 %v1713_v40 }
0x1d4e   :  { %1815 = vmin.xlane.f32.xlu0 %v1814_v20 }
0x1d70   :  { %v1827_v8 = vpop.xlane.xlu1 %1826 }
0x1d71   :  { %vm1828_vm3 = vcmp.eq.f32.partialorder %v1825_v23, %v1827_v8  ;;  %v3752_v23 = vcvt.s32.f32 %v1590_v58  ;;  %v1833_v63 = vcvt.f32.s32 %v1827_v8 }
0x1d72   :  { %v1829_v19 = vsel %vm1828_vm3, %v1824_v22, inf }
0x1d73   :  { %1830 = vmin.xlane.f32.xlu0 %v1829_v19  ;;  %v1834_v61 = vshll.u32 %v1833_v63, 16 }
0x1d74   :  { %v1703_v24 = vpop.xlane.xlu1 %1702 }
0x1d75   :  { %vm1704_vm10 = vcmp.eq.f32.partialorder %v3724_v6, %v1703_v24  ;;  %v1709_v41 = vcvt.f32.s32 %v1703_v24 }
0x1d76   :  { %v1705_v39 = vsel %vm1704_vm10, %v1700_v18, inf }
0x1d77   :  { %v1710_v58 = vshll.u32 %v1709_v41, 16 }
0x1dd3   :  { %v2335_v34 = vpop.xlane.xlu0 %2334 }
0x1dd4   :  { %v2337_v28 = vcvt.f32.s32 %v2335_v34 }
0x1dd6   :  { %v2338_v31 = vshll.u32 %v2337_v28, 16  ;;  %v1587_v28 = vsel %vm1585_vm15, %v3119_v10, 8 }
0x1dd7   :  { %v2333_v30 = vpop.xlane.xlu0 %2332 }
0x1dd8   :  { %v2336_v32 = vcvt.f32.s32 %v2333_v30  ;;  %v1603_v30 = vsel %vm1391_vm14, %v1587_v28, 2147483647 }
0x1dda   :  { %v2339_v51 = vadd.s32 %v2338_v31, %v2336_v32  ;;  %v1476_v31 = vsel %vm1474_vm2, %v3119_v10, 8  ;;  %v1605_v32 = vshra.s32 %v1603_v30, 16  ;;  %vm2420_vm2 = vcmp.ge.s32.totalorder %v3650_v50, 2 }
0x1ddb   :  { %v1816_v48 = vpop.xlane.xlu0 %1815 }
0x1ddc   :  { %v2342_v11 = vsel %vm2341_vm4, %v2339_v51, %v3710_v33  ;;  %v1817_v2 = vcvt.f32.s32 %v1816_v48  ;;  %v3777_v51 = vsel %vm1391_vm14, %v1476_v31, 2147483647 }
0x1ddd   :  { %v3738_v47 = vsel %vm2340_vm5, %v3654_v7, %v2342_v11  ;;  %v1607_v11 = vcvt.s32.f32 %v1605_v32  ;;  %v1480_v62 = vshra.s32 %v3777_v51, 16 }
0x1dde   :  { %2352 = vperm.xlu0 %2755, %v3738_v47   ;;  %v1820_v1 = vadd.s32 %v1819_v0, %v1817_v2 }
0x1ddf   :  { %v3780_v36 = vcvt.s32.f32 %v1480_v62 }
0x1de0   :  { %v2358_v37 = vrot.slane %v1820_v1, %v3441_v56 }
0x1dfd   :  { %1717 = vmin.xlane.f32.xlu0 %v1716_v52 }
0x1e00   :  { %v1831_v4 = vpop.xlane.xlu0 %1830 }
0x1e01   :  { %1593 = vmin.xlane.f32.xlu0 %v3752_v23  ;;  %v1832_v16 = vcvt.f32.s32 %v1831_v4 }
0x1e03   :  { %v1835_v46 = vadd.s32 %v1834_v61, %v1832_v16 }
0x1e05   :  { %v2362_v55 = vrot.slane %v1835_v46, %v3441_v56 }
0x1e07   :  { %v2363_v38 = vsel %vm1523_vm0, %v2362_v55, %v2358_v37 }
0x1e5d   :  { %v2353_v12 = vpop.permute.xlu0 %2352 }
0x1e5e   :  { %vm2354_vm9 = vcmp.eq.s32.totalorder %v3119_v10, %v2353_v12  ;;  %v1589_v12 = vand.u32 65535, %v3749_v49 }
0x1e5f   :  { %v2364_v25 = vsel %vm2354_vm9, %v2363_v38, 0  ;;  %vm1475_vm9 = vcmp.ge.f32.partialorder %v3421_v35, %v3445_v60 }
0x1e60   :  { %v2365_v53 = vsel %vm2190_vm1, %v2364_v25, 0  ;;  %v1591_v25 = vcvt.s32.f32 %v1589_v12 }
0x1e61   :  { %v2367_v3 = vshrl.u32 %v2365_v53, 16  ;;  %v2366_v59 = vand.u32 65535, %v2365_v53 }
0x1e63   :  { %v2369_v17 = vcvt.s32.f32 %v2367_v3  ;;  %v2368_v13 = vcvt.s32.f32 %v2366_v59  ;;  %v1604_v3 = vand.u32 65535, %v1603_v30 }
0x1e65   :  { %2372 = vadd.xlane.f32.xlu1 %v2369_v17  ;;  %v1606_v17 = vcvt.s32.f32 %v1604_v3 }
0x1e69   :  { %2370 = vadd.xlane.f32.xlu1 %v2368_v13 }
0x1e6d   :  { %1706 = vmin.xlane.f32.xlu1 %v1705_v39 }
0x1e8a   :  { %v1718_v26 = vpop.xlane.xlu0 %1717 }
0x1e8b   :  { %vm1719_vm11 = vcmp.eq.f32.partialorder %v1716_v52, %v1718_v26  ;;  %v1724_v29 = vcvt.f32.s32 %v1718_v26 }
0x1e8c   :  { %v1720_v42 = vsel %vm1719_vm11, %v1715_v14, inf  ;;  %v1477_v14 = vsel %vm1475_vm9, %v3119_v10, 8  ;;  %vm2493_vm9 = vcmp.gt.s32.totalorder %v3650_v50, 0 }
0x1e8d   :  { %1721 = vmin.xlane.f32.xlu1 %v1720_v42  ;;  %v1725_v27 = vshll.u32 %v1724_v29, 16  ;;  %v1493_v42 = vsel %vm1391_vm14, %v1477_v14, 2147483647 }
0x1e8e   :  { %v1594_v37 = vpop.xlane.xlu0 %1593 }
0x1e8f   :  { %vm1595_vm4 = vcmp.eq.f32.partialorder %v3752_v23, %v1594_v37 }
0x1e90   :  { %v1596_v53 = vsel %vm1595_vm4, %v1591_v25, inf  ;;  %vm2306_vm4 = vcmp.ge.s32.totalorder %v3650_v50, 5 }
0x1ef2   :  { %v2373_v20 = vpop.xlane.xlu1 %2372 }
0x1ef3   :  { %v2375_v21 = vcvt.f32.s32 %v2373_v20  ;;  %v1495_v20 = vshra.s32 %v1493_v42, 16 }
0x1ef5   :  { %v2376_v22 = vshll.u32 %v2375_v21, 16  ;;  %v1497_v21 = vcvt.s32.f32 %v1495_v20 }
0x1ef6   :  { %v2371_v8 = vpop.xlane.xlu1 %2370 }
0x1ef7   :  { %v2374_v19 = vcvt.f32.s32 %v2371_v8 }
0x1ef9   :  { %v2377_v5 = vadd.s32 %v2376_v22, %v2374_v19 }
0x1efa   :  { %v1707_v15 = vpop.xlane.xlu1 %1706 }
0x1efb   :  { %v2380_v6 = vsel %vm2379_vm13, %v2377_v5, %v3738_v47  ;;  %v1708_v52 = vcvt.f32.s32 %v1707_v15  ;;  %v1600_v5 = vcvt.f32.s32 %v1594_v37  ;;  %vm2455_vm13 = vcmp.gt.s32.totalorder %v3650_v50, 1 }
0x1efc   :  { %v3766_v34 = vsel %vm2378_vm12, %v3654_v7, %v2380_v6  ;;  %vm2454_vm12 = vcmp.eq.s32.totalorder %v3650_v50, 1 }
0x1efd   :  { %2390 = vperm.xlu1 %2756, %v3766_v34   ;;  %v1711_v4 = vadd.s32 %v1710_v58, %v1708_v52  ;;  %v1601_v31 = vshll.u32 %v1600_v5, 16  ;;  %v1479_v58 = vand.u32 65535, %v3777_v51 }
0x1eff   :  { %v2396_v45 = vrot.slane %v1711_v4, %v3441_v56  ;;  %v1481_v4 = vcvt.s32.f32 %v1479_v58 }
0x1f1a   :  { %v1722_v9 = vpop.xlane.xlu1 %1721 }
0x1f1b   :  { %v1723_v57 = vcvt.f32.s32 %v1722_v9 }
0x1f1d   :  { %v1726_v48 = vadd.s32 %v1725_v27, %v1723_v57 }
0x1f1f   :  { %v2400_v63 = vrot.slane %v1726_v48, %v3441_v56 }
0x1f21   :  { %1608 = vmin.xlane.f32.xlu1 %v1607_v11  ;;  %v2401_v61 = vsel %vm1523_vm0, %v2400_v63, %v2396_v45  ;;  %v1494_v45 = vand.u32 65535, %v1493_v42 }
0x1f25   :  { %1483 = vmin.xlane.f32.xlu1 %v3780_v36 }
0x1f7c   :  { %v2391_v16 = vpop.permute.xlu1 %2390 }
0x1f7d   :  { %vm2392_vm3 = vcmp.eq.s32.totalorder %v3119_v10, %v2391_v16 }
0x1f7e   :  { %v2402_v2 = vsel %vm2392_vm3, %v2401_v61, 0  ;;  %v1496_v61 = vcvt.s32.f32 %v1494_v45  ;;  %vm2239_vm3 = vcmp.ge.s32.totalorder %v3650_v50, 7 }
0x1f7f   :  { %v2403_v0 = vsel %vm2190_vm1, %v2402_v2, 0 }
0x1f80   :  { %v2405_v46 = vshrl.u32 %v2403_v0, 16  ;;  %v2404_v1 = vand.u32 65535, %v2403_v0 }
0x1f82   :  { %v2407_v55 = vcvt.s32.f32 %v2405_v46  ;;  %v2406_v38 = vcvt.s32.f32 %v2404_v1 }
0x1f84   :  { %2410 = vadd.xlane.f32.xlu0 %v2407_v55 }
0x1f88   :  { %2408 = vadd.xlane.f32.xlu0 %v2406_v38 }
0x1f8c   :  { %1597 = vmin.xlane.f32.xlu0 %v1596_v53 }
0x1fae   :  { %v1609_v59 = vpop.xlane.xlu1 %1608 }
0x1faf   :  { %vm1610_vm5 = vcmp.eq.f32.partialorder %v1607_v11, %v1609_v59  ;;  %v1615_v19 = vcvt.f32.s32 %v1609_v59 }
0x1fb0   :  { %v1611_v24 = vsel %vm1610_vm5, %v1606_v17, inf  ;;  %vm2344_vm5 = vcmp.ge.s32.totalorder %v3650_v50, 4 }
0x1fb1   :  { %1612 = vmin.xlane.f32.xlu0 %v1611_v24  ;;  %v1616_v28 = vshll.u32 %v1615_v19, 16 }
0x1fb2   :  { %v1484_v52 = vpop.xlane.xlu1 %1483 }
0x1fb3   :  { %vm1485_vm10 = vcmp.eq.f32.partialorder %v3780_v36, %v1484_v52  ;;  %v1490_v3 = vcvt.f32.s32 %v1484_v52 }
0x1fb4   :  { %v1486_v63 = vsel %vm1485_vm10, %v1481_v4, inf  ;;  %vm2496_vm10 = vcmp.ge.s32.totalorder %v3650_v50, 0 }
0x2011   :  { %v2411_v54 = vpop.xlane.xlu0 %2410 }
0x2012   :  { %v2413_v13 = vcvt.f32.s32 %v2411_v54  ;;  %v1491_v54 = vshll.u32 %v1490_v3, 16 }
0x2014   :  { %v2414_v39 = vshll.u32 %v2413_v13, 16 }
0x2015   :  { %v2409_v18 = vpop.xlane.xlu0 %2408 }
0x2016   :  { %v2412_v40 = vcvt.f32.s32 %v2409_v18 }
0x2018   :  { %v2415_v49 = vadd.s32 %v2414_v39, %v2412_v40 }
0x2019   :  { %v1598_v8 = vpop.xlane.xlu0 %1597 }
0x201a   :  { %v2418_v23 = vsel %vm2417_vm7, %v2415_v49, %v3766_v34  ;;  %v1599_v30 = vcvt.f32.s32 %v1598_v8  ;;  %vm2382_vm7 = vcmp.ge.s32.totalorder %v3650_v50, 3 }
0x201b   :  { %v3794_v26 = vsel %vm2416_vm8, %v3654_v7, %v2418_v23  ;;  %vm2458_vm8 = vcmp.ge.s32.totalorder %v3650_v50, 1 }
0x201c   :  { %2428 = vperm.xlu0 %2755, %v3794_v26   ;;  %v1602_v11 = vadd.s32 %v1601_v31, %v1599_v30  ;;  %v2421_v19 = vsel %vm2420_vm2, %v3794_v26, 4294967295  ;;  %vm2384_vm2 = vcmp.eq.s32.totalorder %v3119_v10, 3 }
0x201e   :  { %v2434_v35 = vrot.slane %v1602_v11, %v3441_v56 }
0x203b   :  { %1498 = vmin.xlane.f32.xlu0 %v1497_v21 }
0x203e   :  { %v1613_v22 = vpop.xlane.xlu0 %1612 }
0x203f   :  { %v1614_v6 = vcvt.f32.s32 %v1613_v22 }
0x2041   :  { %v1617_v32 = vadd.s32 %v1616_v28, %v1614_v6  ;;  %v2307_v6 = vsel %vm2306_vm4, %v3710_v33, 4294967295 }
0x2043   :  { %v2438_v62 = vrot.slane %v1617_v32, %v3441_v56 }
0x2045   :  { %v2439_v15 = vsel %vm1523_vm0, %v2438_v62, %v2434_v35 }
0x209b   :  { %v2429_v60 = vpop.permute.xlu0 %2428 }
0x209c   :  { %vm2430_vm14 = vcmp.eq.s32.totalorder %v3119_v10, %v2429_v60 }
0x209d   :  { %v2440_v9 = vsel %vm2430_vm14, %v2439_v15, 0  ;;  %vm2492_vm14 = vcmp.eq.s32.totalorder %v3650_v50, 0 }
0x209e   :  { %v2441_v29 = vsel %vm2190_vm1, %v2440_v9, 0 }
0x209f   :  { %v2443_v41 = vshrl.u32 %v2441_v29, 16  ;;  %v2442_v57 = vand.u32 65535, %v2441_v29 }
0x20a1   :  { %v2445_v27 = vcvt.s32.f32 %v2443_v41  ;;  %v2444_v48 = vcvt.s32.f32 %v2442_v57 }
0x20a3   :  { %2448 = vadd.xlane.f32.xlu1 %v2445_v27 }
0x20a7   :  { %2446 = vadd.xlane.f32.xlu1 %v2444_v48 }
0x20ab   :  { %1487 = vmin.xlane.f32.xlu1 %v1486_v63 }
0x20c8   :  { %v1499_v16 = vpop.xlane.xlu0 %1498 }
0x20c9   :  { %vm1500_vm11 = vcmp.eq.f32.partialorder %v1497_v21, %v1499_v16  ;;  %v1505_v53 = vcvt.f32.s32 %v1499_v16 }
0x20ca   :  { %v1501_v2 = vsel %vm1500_vm11, %v1496_v61, inf  ;;  %vm2241_vm11 = vcmp.eq.s32.totalorder %v3119_v10, 7 }
0x20cb   :  { %1502 = vmin.xlane.f32.xlu1 %v1501_v2  ;;  %v1506_v17 = vshll.u32 %v1505_v53, 16 }
0x2130   :  { %v2449_v0 = vpop.xlane.xlu1 %2448 }
0x2131   :  { %v2451_v46 = vcvt.f32.s32 %v2449_v0 }
0x2133   :  { %v2452_v55 = vshll.u32 %v2451_v46, 16 }
0x2134   :  { %v2447_v1 = vpop.xlane.xlu1 %2446 }
0x2135   :  { %v2450_v37 = vcvt.f32.s32 %v2447_v1 }
0x2137   :  { %v2453_v51 = vadd.s32 %v2452_v55, %v2450_v37 }
0x2138   :  { %v1488_v38 = vpop.xlane.xlu1 %1487 }
0x2139   :  { %v2456_v36 = vsel %vm2455_vm13, %v2453_v51, %v3794_v26  ;;  %v1489_v24 = vcvt.f32.s32 %v1488_v38  ;;  %v2345_v26 = vsel %vm2344_vm5, %v3738_v47, 4294967295  ;;  %vm2270_vm13 = vcmp.eq.s32.totalorder %v3119_v10, 6 }
0x213a   :  { %v2457_v12 = vsel %vm2454_vm12, %v3654_v7, %v2456_v36  ;;  %vm2308_vm12 = vcmp.eq.s32.totalorder %v3119_v10, 5 }
0x213b   :  { %2466 = vperm.xlu1 %2756, %v2457_v12   ;;  %v1492_v18 = vadd.s32 %v1491_v54, %v1489_v24  ;;  %v2459_v28 = vsel %vm2458_vm8, %v2457_v12, 4294967295 }
0x213d   :  { %v2472_v40 = vrot.slane %v1492_v18, %v3441_v56 }
0x2158   :  { %v1503_v25 = vpop.xlane.xlu1 %1502 }
0x2159   :  { %v1504_v59 = vcvt.f32.s32 %v1503_v25 }
0x215b   :  { %v1507_v13 = vadd.s32 %v1506_v17, %v1504_v59 }
0x215d   :  { %v2476_v39 = vrot.slane %v1507_v13, %v3441_v56  ;;  %v2240_v56 = vsel %vm2239_vm3, %v3657_v43, 4294967295  ;;  %v2383_v43 = vsel %vm2382_vm7, %v3766_v34, 4294967295  ;;  %vm2422_vm3 = vcmp.eq.s32.totalorder %v3119_v10, 2 }
0x215f   :  { %v2477_v23 = vsel %vm1523_vm0, %v2476_v39, %v2472_v40  ;;  %vm2268_vm0 = vcmp.ge.s32.totalorder %v3650_v50, 6 }
0x2160   :  { %v2269_v5 = vsel %vm2268_vm0, %v3682_v44, 4294967295  ;;  %vm2460_vm0 = vcmp.eq.s32.totalorder %v3119_v10, 1 }
0x21ba   :  { %v2467_v49 = vpop.permute.xlu1 %2466 }
0x21bb   :  { %vm2468_vm15 = vcmp.eq.s32.totalorder %v3119_v10, %v2467_v49 }
0x21bc   :  { %v2478_v14 = vsel %vm2468_vm15, %v2477_v23, 0  ;;  %vm2346_vm15 = vcmp.eq.s32.totalorder %v3119_v10, 4 }
0x21bd   :  { %v2479_v42 = vsel %vm2190_vm1, %v2478_v14, 0 }
0x21be   :  { %v2480_v20 = vand.u32 65535, %v2479_v42  ;;  %v2481_v21 = vshrl.u32 %v2479_v42, 16 }
0x21c0   :  { %v2483_v8 = vcvt.s32.f32 %v2481_v21  ;;  %v2482_v22 = vcvt.s32.f32 %v2480_v20 }
0x21c2   :  { %2486 = vadd.xlane.f32.xlu0 %v2483_v8  ;;  %2484 = vadd.xlane.f32.xlu1 %v2482_v22 }
0x21d3   :  { %2424 = vperm.xlu1 %2756, %v2421_v19  }
0x21d8   :  { %2243 = vperm.xlu0 %2755, %v2240_v56  }
0x21dc   :  { %2272 = vperm.xlu0 %2755, %v2269_v5  }
0x21e0   :  { %2310 = vperm.xlu0 %2755, %v2307_v6  }
0x21e4   :  { %2348 = vperm.xlu0 %2755, %v2345_v26  }
0x21e8   :  { %2386 = vperm.xlu0 %2755, %v2383_v43  }
0x21ec   :  { %2462 = vperm.xlu0 %2755, %v2459_v28  }
0x224f   :  { %v2487_v44 = vpop.xlane.xlu0 %2486  ;;  %v2485_v30 = vpop.xlane.xlu1 %2484 }
0x2250   :  { %v2489_v31 = vcvt.f32.s32 %v2487_v44  ;;  %v2488_v33 = vcvt.f32.s32 %v2485_v30 }
0x2252   :  { %v2490_v32 = vshll.u32 %v2489_v31, 16 }
0x2253   :  { %v2425_v58 = vpop.permute.xlu1 %2424 }
0x2254   :  { %v2491_v11 = vadd.s32 %v2490_v32, %v2488_v33 }
0x2256   :  { %v2494_v47 = vsel %vm2493_vm9, %v2491_v11, %v2457_v12 }
0x2257   :  { %v2495_v34 = vsel %vm2492_vm14, %v3654_v7, %v2494_v47  ;;  %v2244_v35 = vpop.permute.xlu0 %2243 }
0x2258   :  { %v2497_v62 = vsel %vm2496_vm10, %v2495_v34, 4294967295  ;;  %v2245_v41 = vsel %vm2241_vm11, %v2244_v35, 4294967295 }
0x2259   :  { %2499 = vperm.xlu0 %2755, %v2497_v62  }
0x225b   :  { %v2273_v60 = vpop.permute.xlu0 %2272 }
0x225c   :  { %v2274_v50 = vsel %vm2270_vm13, %v2273_v60, %v2245_v41 }
0x225f   :  { %v2311_v15 = vpop.permute.xlu0 %2310 }
0x2260   :  { %v2312_v7 = vsel %vm2308_vm12, %v2311_v15, %v2274_v50 }
0x2263   :  { %v2349_v9 = vpop.permute.xlu0 %2348 }
0x2264   :  { %v2350_v57 = vsel %vm2346_vm15, %v2349_v9, %v2312_v7 }
0x2267   :  { %v2387_v29 = vpop.permute.xlu0 %2386 }
0x2268   :  { %v2388_v27 = vsel %vm2384_vm2, %v2387_v29, %v2350_v57 }
0x2269   :  { %v2426_v48 = vsel %vm2422_vm3, %v2425_v58, %v2388_v27 }
0x226b   :  { %v2463_v52 = vpop.permute.xlu0 %2462 }
0x226c   :  { %v2464_v4 = vsel %vm2460_vm0, %v2463_v52, %v2426_v48 }
0x22d8   :  { %v2500_v63 = vpop.permute.xlu0 %2499 }
0x22d9   :  { %v2501_v45 = vsel %vm2211_vm6, %v2500_v63, %v2464_v4 }
0x22da   :  { %2502 = vst.msk [vmem:[#allocation2] sm:$0x3] %vm2190_vm1, %v2501_v45 }
0x22db   :  { %2864 = shalt.err (!%p2861_p4)
}
0x22dc   :  { %s2865_s24 = scalar_lea.hbm %s3867_s11, 32 }
0x22dd   :  { %p2866_p5 = scmp.ne.s32.totalorder %s3867_s11, %s2865_s24  ;;  %p2869_p6 = scmp.lt.u32.totalorder %s2865_s24, %s3867_s11 }
0x22df   :  { %p2871_p7 = pnand %p2869_p6, %p2866_p5 }
0x22e1   :  { %2874 = shalt.err (!%p2871_p7)
}
0x22e2   :  { %2514 = dma.vmem_to_hbm [thread:$0]  %s2512_s21, 32, %s3867_s11, [#allocation3]  }
0x22e3   :  { %2875 = dma.done.wait [#allocation3], 32  }
0x22e4   :  { %2876 = vsyncadd [#allocation3], 4294967264 }
0x22e5   :  { %2520 = vsyncpa [#allocation3], 1 }

</bundles_post_ra>
